<compile_context>
chip_gen: v7x
topology: tpu7x:2x2x1
jax: 0.10.0
libtpu: 0.0.40
codegen_flags: <defaults>
</compile_context>

<pallas_src>
import jax
import jax.numpy as jnp
from jax.experimental import pallas as pl
from jax.experimental.pallas import tpu as pltpu


# ---------------------------------------------------------------------------
# Fused Seq2Seq kernel (no grid: one program does the whole forward pass)
# ---------------------------------------------------------------------------
def _seq2seq_kernel(src_ids_ref, trg_ids_ref, tf_ref,
                    enc_gi_ref, enc_whh_ref, enc_brz_ref, enc_bin_ref, enc_bhn_ref,
                    dec_gi_ref, dec_whh_ref, dec_brz_ref, dec_bin_ref, dec_bhn_ref,
                    wfc_ref, bfc_ref,
                    out_ref,
                    enc_gi_scr, dec_gi_scr):
    T, B, V = out_ref.shape
    LB = src_ids_ref.shape[0]
    TB = trg_ids_ref.shape[0]
    L = LB // B
    GH = enc_gi_ref.shape[-1]          # 3H
    H = GH // 3

    # Hoist all weights (tiny, VMEM resident) out of the recurrences.
    enc_gi_tbl = enc_gi_ref[...]       # [V, 3H] bf16   (enc_emb @ enc_wih)
    dec_gi_tbl = dec_gi_ref[...]       # [V, 3H] bf16   (dec_emb @ dec_wih)
    enc_whh = enc_whh_ref[...]         # [H, 3H] bf16
    dec_whh = dec_whh_ref[...]
    enc_brz, enc_bin, enc_bhn = enc_brz_ref[...], enc_bin_ref[...], enc_bhn_ref[...]
    dec_brz, dec_bin, dec_bhn = dec_brz_ref[...], dec_bin_ref[...], dec_bhn_ref[...]
    wfc = wfc_ref[...]                 # [H, V] bf16
    bfc = bfc_ref[...]                 # [1, V] f32

    # --- in-kernel embedding gather fused with the GRU input projection -----
    # onehot(ids) @ (emb @ Wih) == emb[ids] @ Wih  (exact: row selection
    # commutes with the matmul).  One well-shaped MXU matmul per sequence.
    src_oh = (jax.lax.broadcasted_iota(jnp.int32, (LB, V), 1)
              == src_ids_ref[...]).astype(jnp.bfloat16)                 # [L*B, V]
    enc_gi_scr[...] = jnp.dot(
        src_oh, enc_gi_tbl, preferred_element_type=jnp.float32).reshape(L, B, GH)

    trg_oh = (jax.lax.broadcasted_iota(jnp.int32, (TB, V), 1)
              == trg_ids_ref[...]).astype(jnp.bfloat16)                 # [T*B, V]
    dec_gi_scr[...] = jnp.dot(
        trg_oh, dec_gi_tbl, preferred_element_type=jnp.float32).reshape(T, B, GH)

    # --- GRU cell with the input projection (gi = x @ Wih) precomputed ------
    # PyTorch nn.GRU semantics, gate order r, z, n; carry & gates stay f32,
    # only the MXU operands are bf16.
    def gru_step(gi, h, whh, b_rz, b_in, b_hn):
        gh = jnp.dot(h.astype(jnp.bfloat16), whh,
                     preferred_element_type=jnp.float32)                # [B, 3H]
        rz = jax.nn.sigmoid(gi[:, :2 * H] + gh[:, :2 * H] + b_rz)
        r = rz[:, :H]
        z = rz[:, H:]
        n = jnp.tanh(gi[:, 2 * H:] + b_in + r * (gh[:, 2 * H:] + b_hn))
        return (1.0 - z) * n + z * h

    # --- encoder scan (h0 = 0, PyTorch default) -----------------------------
    def enc_body(l, h):
        return gru_step(enc_gi_scr[l], h, enc_whh, enc_brz, enc_bin, enc_bhn)

    h = jax.lax.fori_loop(0, L, enc_body, jnp.zeros((B, H), jnp.float32),
                          unroll=True)   # bound the unroll for long sequences

    # --- decoder scan (greedy feedback vs teacher forcing) ------------------
    out_ref[0] = jnp.zeros((B, V), jnp.float32)      # outputs[:, 0] stays zero

    def dec_body(t, carry):
        h, gi_fb = carry
        use_teacher = tf_ref[t] > 0                               # SMEM scalar
        gi = jnp.where(use_teacher, dec_gi_scr[t], gi_fb)         # [B, 3H]
        h = gru_step(gi, h, dec_whh, dec_brz, dec_bin, dec_bhn)
        logits = jnp.dot(h.astype(jnp.bfloat16), wfc,
                         preferred_element_type=jnp.float32) + bfc   # [B, V]
        out_ref[t] = logits
        # greedy top-1 feedback: first-index argmax -> one-hot -> gi-table row
        m = jnp.max(logits, axis=-1, keepdims=True)
        iota = jax.lax.broadcasted_iota(jnp.int32, (B, V), 1)
        idx = jnp.min(jnp.where(logits == m, iota, V), axis=-1, keepdims=True)
        onehot = (iota == idx).astype(jnp.bfloat16)
        gi_fb = jnp.dot(onehot, dec_gi_tbl, preferred_element_type=jnp.float32)
        return h, gi_fb

    jax.lax.fori_loop(1, T, dec_body,
                      (h, jnp.zeros((B, GH), jnp.float32)), unroll=True)


# ---------------------------------------------------------------------------
# Full Seq2Seq forward (mirrors the PyTorch module; fully jittable)
# ---------------------------------------------------------------------------
def seq2seq_forward(params, src, trg, teacher_forcing_ratio, tf_key):
    B, L = src.shape
    _, T = trg.shape
    H = params["enc_whh"].shape[0]
    V = params["dec_wfc"].shape[1]
    GH = 3 * H

    # ----- pad batch to a sublane multiple (8); slice back at the end -------
    B_pad = ((B + 7) // 8) * 8
    if B_pad != B:
        src = jnp.pad(src, ((0, B_pad - B), (0, 0)))
        trg = jnp.pad(trg, ((0, B_pad - B), (0, 0)))

    # ----- fold emb @ Wih into per-token gate tables, cast MXU weights ------
    def fold(emb, wih, whh, bih, bhh):
        return ((emb @ wih).astype(jnp.bfloat16),        # [V, 3H] gi table
                whh.astype(jnp.bfloat16),                 # [H, 3H]
                bih[:, :2 * H] + bhh[:, :2 * H],          # folded r,z biases
                bih[:, 2 * H:],                           # b_in
                bhh[:, 2 * H:])                           # b_hn

    enc_gi, enc_whh, enc_brz, enc_bin, enc_bhn = fold(
        params["enc_emb"], params["enc_wih"], params["enc_whh"],
        params["enc_bih"], params["enc_bhh"])
    dec_gi, dec_whh, dec_brz, dec_bin, dec_bhn = fold(
        params["dec_emb"], params["dec_wih"], params["dec_whh"],
        params["dec_bih"], params["dec_bhh"])
    wfc = params["dec_wfc"].astype(jnp.bfloat16)
    bfc = params["dec_bfc"]

    # ----- token id streams, time-major, flattened for in-kernel one-hot ----
    src_ids = src.T.reshape(L * B_pad, 1).astype(jnp.int32)
    trg_prev = jnp.concatenate([trg[:, :1], trg[:, :-1]], axis=1)  # step t sees trg[:, t-1]
    trg_ids = trg_prev.T.reshape(T * B_pad, 1).astype(jnp.int32)

    # ----- teacher-forcing coins drawn once (no per-step host sync) ---------
    # PyTorch: input of step 1 is always trg[:, 0]; the coin drawn after
    # producing output t decides the input of step t+1 (last coin unused).
    coins = (jax.random.uniform(tf_key, (T,)) <
             teacher_forcing_ratio).astype(jnp.int32)
    tf_use = jnp.zeros((T,), jnp.int32)
    if T > 1:
        tf_use = tf_use.at[1].set(1)                     # step 1: always teacher
    if T > 2:
        tf_use = tf_use.at[2:].set(coins[1:T - 1])       # step t>=2: coin from t-1

    vmem = pl.BlockSpec(memory_space=pltpu.MemorySpace.VMEM)
    smem = pl.BlockSpec(memory_space=pltpu.MemorySpace.SMEM)

    out_tm = pl.pallas_call(
        _seq2seq_kernel,
        out_shape=jax.ShapeDtypeStruct((T, B_pad, V), jnp.float32),
        in_specs=[vmem, vmem, smem] + [vmem] * 12,
        out_specs=vmem,
        scratch_shapes=[
            pltpu.VMEM((L, B_pad, GH), jnp.float32),   # encoder gi = src_emb @ Wih
            pltpu.VMEM((T, B_pad, GH), jnp.float32),   # teacher   gi = trg_emb @ Wih
        ],
        compiler_params=pltpu.CompilerParams(
            vmem_limit_bytes=48 * 1024 * 1024),
    )(src_ids, trg_ids, tf_use,
      enc_gi, enc_whh, enc_brz, enc_bin, enc_bhn,
      dec_gi, dec_whh, dec_brz, dec_bin, dec_bhn,
      wfc, bfc)

    # [T, B_pad, V] -> [B, T, V]  (lane-dense V=128 stays the minor dim)
    return jnp.transpose(out_tm, (1, 0, 2))[:B]


# ---------------------------------------------------------------------------
# Deterministic parameter init (raw module-style parameters)
# ---------------------------------------------------------------------------
def init_params(key, vocab_size, emb_dim, hidden_dim):
    E, H, V = emb_dim, hidden_dim, vocab_size
    ks = jax.random.split(key, 12)
    s = 0.1

    def norm(k, shape):
        return s * jax.random.normal(k, shape, jnp.float32)

    return {
        "enc_emb": norm(ks[0], (V, E)),
        "enc_wih": norm(ks[1], (E, 3 * H)),
        "enc_whh": norm(ks[2], (H, 3 * H)),
        "enc_bih": norm(ks[3], (1, 3 * H)),
        "enc_bhh": norm(ks[4], (1, 3 * H)),
        "dec_emb": norm(ks[5], (V, E)),
        "dec_wih": norm(ks[6], (E, 3 * H)),
        "dec_whh": norm(ks[7], (H, 3 * H)),
        "dec_bih": norm(ks[8], (1, 3 * H)),
        "dec_bhh": norm(ks[9], (1, 3 * H)),
        "dec_wfc": norm(ks[10], (H, V)),
        "dec_bfc": norm(ks[11], (1, V)),
    }


if __name__ == "__main__":
    B, SRC_LEN, TRG_LEN = 2, 8, 8
    EMB, HID, VOCAB = 32, 32, 128
    PAD_IDX = 0  # unused in forward (matches the PyTorch module)

    key = jax.random.PRNGKey(0)
    kp, ks, kt = jax.random.split(key, 3)
    params = init_params(kp, VOCAB, EMB, HID)
    src = jax.random.randint(ks, (B, SRC_LEN), 0, VOCAB, dtype=jnp.int32)
    trg = jax.random.randint(kt, (B, TRG_LEN), 0, VOCAB, dtype=jnp.int32)

    fwd = jax.jit(lambda p, s, t, k: seq2seq_forward(p, s, t, 0.5, k))
    outputs = fwd(params, src, trg, jax.random.PRNGKey(42))
    jax.block_until_ready(outputs)
    assert outputs.shape == (B, TRG_LEN, VOCAB)
    print("KERNEL_OK")
</pallas_src>

<mosaic_0001>
module attributes {stable_mosaic.version = 11 : i64} {
  func.func @_seq2seq_kernel(%arg0: memref<64x1xi32, #tpu.memory_space<vmem>>, %arg1: memref<64x1xi32, #tpu.memory_space<vmem>>, %arg2: memref<8xi32, #tpu.memory_space<smem>>, %arg3: memref<128x96xbf16, #tpu.memory_space<vmem>>, %arg4: memref<32x96xbf16, #tpu.memory_space<vmem>>, %arg5: memref<1x64xf32, #tpu.memory_space<vmem>>, %arg6: memref<1x32xf32, #tpu.memory_space<vmem>>, %arg7: memref<1x32xf32, #tpu.memory_space<vmem>>, %arg8: memref<128x96xbf16, #tpu.memory_space<vmem>>, %arg9: memref<32x96xbf16, #tpu.memory_space<vmem>>, %arg10: memref<1x64xf32, #tpu.memory_space<vmem>>, %arg11: memref<1x32xf32, #tpu.memory_space<vmem>>, %arg12: memref<1x32xf32, #tpu.memory_space<vmem>>, %arg13: memref<32x128xbf16, #tpu.memory_space<vmem>>, %arg14: memref<1x128xf32, #tpu.memory_space<vmem>>, %arg15: memref<8x8x128xf32, #tpu.memory_space<vmem>>, %arg16: memref<8x8x96xf32, #tpu.memory_space<vmem>>, %arg17: memref<8x8x96xf32, #tpu.memory_space<vmem>>) attributes {dimension_semantics = [], scalar_prefetch = 0 : i64, scratch_operands = 2 : i64, tpu.core_type = #tpu.core_type<tc>} {
    %c0 = arith.constant 0 : index
    %c0_0 = arith.constant 0 : index
    %0 = vector.load %arg3[%c0, %c0_0] : memref<128x96xbf16, #tpu.memory_space<vmem>>, vector<128x96xbf16>
    %c0_1 = arith.constant 0 : index
    %c0_2 = arith.constant 0 : index
    %1 = vector.load %arg8[%c0_1, %c0_2] : memref<128x96xbf16, #tpu.memory_space<vmem>>, vector<128x96xbf16>
    %c0_3 = arith.constant 0 : index
    %c0_4 = arith.constant 0 : index
    %2 = vector.load %arg4[%c0_3, %c0_4] : memref<32x96xbf16, #tpu.memory_space<vmem>>, vector<32x96xbf16>
    %c0_5 = arith.constant 0 : index
    %c0_6 = arith.constant 0 : index
    %3 = vector.load %arg9[%c0_5, %c0_6] : memref<32x96xbf16, #tpu.memory_space<vmem>>, vector<32x96xbf16>
    %c0_7 = arith.constant 0 : index
    %c0_8 = arith.constant 0 : index
    %4 = vector.load %arg5[%c0_7, %c0_8] : memref<1x64xf32, #tpu.memory_space<vmem>>, vector<1x64xf32>
    %c0_9 = arith.constant 0 : index
    %c0_10 = arith.constant 0 : index
    %5 = vector.load %arg6[%c0_9, %c0_10] : memref<1x32xf32, #tpu.memory_space<vmem>>, vector<1x32xf32>
    %c0_11 = arith.constant 0 : index
    %c0_12 = arith.constant 0 : index
    %6 = vector.load %arg7[%c0_11, %c0_12] : memref<1x32xf32, #tpu.memory_space<vmem>>, vector<1x32xf32>
    %c0_13 = arith.constant 0 : index
    %c0_14 = arith.constant 0 : index
    %7 = vector.load %arg10[%c0_13, %c0_14] : memref<1x64xf32, #tpu.memory_space<vmem>>, vector<1x64xf32>
    %c0_15 = arith.constant 0 : index
    %c0_16 = arith.constant 0 : index
    %8 = vector.load %arg11[%c0_15, %c0_16] : memref<1x32xf32, #tpu.memory_space<vmem>>, vector<1x32xf32>
    %c0_17 = arith.constant 0 : index
    %c0_18 = arith.constant 0 : index
    %9 = vector.load %arg12[%c0_17, %c0_18] : memref<1x32xf32, #tpu.memory_space<vmem>>, vector<1x32xf32>
    %c0_19 = arith.constant 0 : index
    %c0_20 = arith.constant 0 : index
    %10 = vector.load %arg13[%c0_19, %c0_20] : memref<32x128xbf16, #tpu.memory_space<vmem>>, vector<32x128xbf16>
    %c0_21 = arith.constant 0 : index
    %c0_22 = arith.constant 0 : index
    %11 = vector.load %arg14[%c0_21, %c0_22] : memref<1x128xf32, #tpu.memory_space<vmem>>, vector<1x128xf32>
    %12 = tpu.iota {dimensions = array<i32: 1>} : vector<64x128xi32>
    %c0_23 = arith.constant 0 : index
    %c0_24 = arith.constant 0 : index
    %13 = vector.load %arg0[%c0_23, %c0_24] : memref<64x1xi32, #tpu.memory_space<vmem>>, vector<64x1xi32>
    %14 = vector.broadcast %13 : vector<64x1xi32> to vector<64x128xi32>
    %15 = arith.cmpi eq, %12, %14 : vector<64x128xi32>
    %16 = arith.extui %15 : vector<64x128xi1> to vector<64x128xi32>
    %17 = arith.sitofp %16 : vector<64x128xi32> to vector<64x128xf32>
    %18 = arith.truncf %17 : vector<64x128xf32> to vector<64x128xbf16>
    %cst = arith.constant dense<0.000000e+00> : vector<64x96xf32>
    %19 = tpu.matmul %18, %0, %cst {dimension_numbers = #tpu.dot_dimension_numbers<[1], [0], [0], [1], [0, 0, 1, 1], [], []>} : vector<64x128xbf16>, vector<128x96xbf16>, vector<64x96xf32> -> vector<64x96xf32>
    %20 = vector.shape_cast %19 : vector<64x96xf32> to vector<8x8x96xf32>
    %c0_25 = arith.constant 0 : index
    %c0_26 = arith.constant 0 : index
    %c0_27 = arith.constant 0 : index
    %21 = vector.load %arg16[%c0_25, %c0_26, %c0_27] : memref<8x8x96xf32, #tpu.memory_space<vmem>>, vector<8x8x96xf32>
    tpu.vector_store %arg16[%c0_25, %c0_26, %c0_27], %20 {strides = array<i32>} : memref<8x8x96xf32, #tpu.memory_space<vmem>>, vector<8x8x96xf32>,
    %22 = tpu.iota {dimensions = array<i32: 1>} : vector<64x128xi32>
    %c0_28 = arith.constant 0 : index
    %c0_29 = arith.constant 0 : index
    %23 = vector.load %arg1[%c0_28, %c0_29] : memref<64x1xi32, #tpu.memory_space<vmem>>, vector<64x1xi32>
    %24 = vector.broadcast %23 : vector<64x1xi32> to vector<64x128xi32>
    %25 = arith.cmpi eq, %22, %24 : vector<64x128xi32>
    %26 = arith.extui %25 : vector<64x128xi1> to vector<64x128xi32>
    %27 = arith.sitofp %26 : vector<64x128xi32> to vector<64x128xf32>
    %28 = arith.truncf %27 : vector<64x128xf32> to vector<64x128xbf16>
    %cst_30 = arith.constant dense<0.000000e+00> : vector<64x96xf32>
    %29 = tpu.matmul %28, %1, %cst_30 {dimension_numbers = #tpu.dot_dimension_numbers<[1], [0], [0], [1], [0, 0, 1, 1], [], []>} : vector<64x128xbf16>, vector<128x96xbf16>, vector<64x96xf32> -> vector<64x96xf32>
    %30 = vector.shape_cast %29 : vector<64x96xf32> to vector<8x8x96xf32>
    %c0_31 = arith.constant 0 : index
    %c0_32 = arith.constant 0 : index
    %c0_33 = arith.constant 0 : index
    %31 = vector.load %arg17[%c0_31, %c0_32, %c0_33] : memref<8x8x96xf32, #tpu.memory_space<vmem>>, vector<8x8x96xf32>
    tpu.vector_store %arg17[%c0_31, %c0_32, %c0_33], %30 {strides = array<i32>} : memref<8x8x96xf32, #tpu.memory_space<vmem>>, vector<8x8x96xf32>,
    %cst_34 = arith.constant 0.000000e+00 : f32
    %32 = vector.broadcast %cst_34 : f32 to vector<8x32xf32>
    %c0_i32 = arith.constant 0 : i32
    %33 = arith.index_cast %c0_i32 : i32 to index
    %c0_35 = arith.constant 0 : index
    %c0_36 = arith.constant 0 : index
    %34 = vector.load %arg16[%33, %c0_35, %c0_36] : memref<8x8x96xf32, #tpu.memory_space<vmem>>, vector<1x8x96xf32>
    %35 = vector.shape_cast %34 : vector<1x8x96xf32> to vector<8x96xf32>
    %36 = arith.truncf %32 : vector<8x32xf32> to vector<8x32xbf16>
    %cst_37 = arith.constant dense<0.000000e+00> : vector<8x96xf32>
    %37 = tpu.matmul %36, %2, %cst_37 {dimension_numbers = #tpu.dot_dimension_numbers<[1], [0], [0], [1], [0, 0, 1, 1], [], []>} : vector<8x32xbf16>, vector<32x96xbf16>, vector<8x96xf32> -> vector<8x96xf32>
    %38 = vector.extract_strided_slice %35 {offsets = [0, 0], sizes = [8, 64], strides = [1, 1]} : vector<8x96xf32> to vector<8x64xf32>
    %39 = vector.extract_strided_slice %37 {offsets = [0, 0], sizes = [8, 64], strides = [1, 1]} : vector<8x96xf32> to vector<8x64xf32>
    %40 = arith.addf %38, %39 : vector<8x64xf32>
    %41 = vector.broadcast %4 : vector<1x64xf32> to vector<8x64xf32>
    %42 = arith.addf %40, %41 : vector<8x64xf32>
    %43 = arith.negf %42 : vector<8x64xf32>
    %44 = math.exp %43 : vector<8x64xf32>
    %cst_38 = arith.constant 1.000000e+00 : f32
    %45 = vector.broadcast %cst_38 : f32 to vector<8x64xf32>
    %46 = arith.addf %45, %44 : vector<8x64xf32>
    %47 = arith.divf %45, %46 : vector<8x64xf32>
    %48 = vector.extract_strided_slice %47 {offsets = [0, 0], sizes = [8, 32], strides = [1, 1]} : vector<8x64xf32> to vector<8x32xf32>
    %49 = vector.extract_strided_slice %47 {offsets = [0, 32], sizes = [8, 32], strides = [1, 1]} : vector<8x64xf32> to vector<8x32xf32>
    %50 = vector.extract_strided_slice %35 {offsets = [0, 64], sizes = [8, 32], strides = [1, 1]} : vector<8x96xf32> to vector<8x32xf32>
    %51 = vector.broadcast %5 : vector<1x32xf32> to vector<8x32xf32>
    %52 = arith.addf %50, %51 : vector<8x32xf32>
    %53 = vector.extract_strided_slice %37 {offsets = [0, 64], sizes = [8, 32], strides = [1, 1]} : vector<8x96xf32> to vector<8x32xf32>
    %54 = vector.broadcast %6 : vector<1x32xf32> to vector<8x32xf32>
    %55 = arith.addf %53, %54 : vector<8x32xf32>
    %56 = arith.mulf %48, %55 : vector<8x32xf32>
    %57 = arith.addf %52, %56 : vector<8x32xf32>
    %58 = math.tanh %57 : vector<8x32xf32>
    %cst_39 = arith.constant 1.000000e+00 : f32
    %59 = vector.broadcast %cst_39 : f32 to vector<8x32xf32>
    %60 = arith.subf %59, %49 : vector<8x32xf32>
    %61 = arith.mulf %60, %58 : vector<8x32xf32>
    %62 = arith.mulf %49, %32 : vector<8x32xf32>
    %63 = arith.addf %61, %62 : vector<8x32xf32>
    %c1_i32 = arith.constant 1 : i32
    %64 = arith.index_cast %c1_i32 : i32 to index
    %c0_40 = arith.constant 0 : index
    %c0_41 = arith.constant 0 : index
    %65 = vector.load %arg16[%64, %c0_40, %c0_41] : memref<8x8x96xf32, #tpu.memory_space<vmem>>, vector<1x8x96xf32>
    %66 = vector.shape_cast %65 : vector<1x8x96xf32> to vector<8x96xf32>
    %67 = arith.truncf %63 : vector<8x32xf32> to vector<8x32xbf16>
    %cst_42 = arith.constant dense<0.000000e+00> : vector<8x96xf32>
    %68 = tpu.matmul %67, %2, %cst_42 {dimension_numbers = #tpu.dot_dimension_numbers<[1], [0], [0], [1], [0, 0, 1, 1], [], []>} : vector<8x32xbf16>, vector<32x96xbf16>, vector<8x96xf32> -> vector<8x96xf32>
    %69 = vector.extract_strided_slice %66 {offsets = [0, 0], sizes = [8, 64], strides = [1, 1]} : vector<8x96xf32> to vector<8x64xf32>
    %70 = vector.extract_strided_slice %68 {offsets = [0, 0], sizes = [8, 64], strides = [1, 1]} : vector<8x96xf32> to vector<8x64xf32>
    %71 = arith.addf %69, %70 : vector<8x64xf32>
    %72 = vector.broadcast %4 : vector<1x64xf32> to vector<8x64xf32>
    %73 = arith.addf %71, %72 : vector<8x64xf32>
    %74 = arith.negf %73 : vector<8x64xf32>
    %75 = math.exp %74 : vector<8x64xf32>
    %cst_43 = arith.constant 1.000000e+00 : f32
    %76 = vector.broadcast %cst_43 : f32 to vector<8x64xf32>
    %77 = arith.addf %76, %75 : vector<8x64xf32>
    %78 = arith.divf %76, %77 : vector<8x64xf32>
    %79 = vector.extract_strided_slice %78 {offsets = [0, 0], sizes = [8, 32], strides = [1, 1]} : vector<8x64xf32> to vector<8x32xf32>
    %80 = vector.extract_strided_slice %78 {offsets = [0, 32], sizes = [8, 32], strides = [1, 1]} : vector<8x64xf32> to vector<8x32xf32>
    %81 = vector.extract_strided_slice %66 {offsets = [0, 64], sizes = [8, 32], strides = [1, 1]} : vector<8x96xf32> to vector<8x32xf32>
    %82 = vector.broadcast %5 : vector<1x32xf32> to vector<8x32xf32>
    %83 = arith.addf %81, %82 : vector<8x32xf32>
    %84 = vector.extract_strided_slice %68 {offsets = [0, 64], sizes = [8, 32], strides = [1, 1]} : vector<8x96xf32> to vector<8x32xf32>
    %85 = vector.broadcast %6 : vector<1x32xf32> to vector<8x32xf32>
    %86 = arith.addf %84, %85 : vector<8x32xf32>
    %87 = arith.mulf %79, %86 : vector<8x32xf32>
    %88 = arith.addf %83, %87 : vector<8x32xf32>
    %89 = math.tanh %88 : vector<8x32xf32>
    %cst_44 = arith.constant 1.000000e+00 : f32
    %90 = vector.broadcast %cst_44 : f32 to vector<8x32xf32>
    %91 = arith.subf %90, %80 : vector<8x32xf32>
    %92 = arith.mulf %91, %89 : vector<8x32xf32>
    %93 = arith.mulf %80, %63 : vector<8x32xf32>
    %94 = arith.addf %92, %93 : vector<8x32xf32>
    %c2_i32 = arith.constant 2 : i32
    %95 = arith.index_cast %c2_i32 : i32 to index
    %c0_45 = arith.constant 0 : index
    %c0_46 = arith.constant 0 : index
    %96 = vector.load %arg16[%95, %c0_45, %c0_46] : memref<8x8x96xf32, #tpu.memory_space<vmem>>, vector<1x8x96xf32>
    %97 = vector.shape_cast %96 : vector<1x8x96xf32> to vector<8x96xf32>
    %98 = arith.truncf %94 : vector<8x32xf32> to vector<8x32xbf16>
    %cst_47 = arith.constant dense<0.000000e+00> : vector<8x96xf32>
    %99 = tpu.matmul %98, %2, %cst_47 {dimension_numbers = #tpu.dot_dimension_numbers<[1], [0], [0], [1], [0, 0, 1, 1], [], []>} : vector<8x32xbf16>, vector<32x96xbf16>, vector<8x96xf32> -> vector<8x96xf32>
    %100 = vector.extract_strided_slice %97 {offsets = [0, 0], sizes = [8, 64], strides = [1, 1]} : vector<8x96xf32> to vector<8x64xf32>
    %101 = vector.extract_strided_slice %99 {offsets = [0, 0], sizes = [8, 64], strides = [1, 1]} : vector<8x96xf32> to vector<8x64xf32>
    %102 = arith.addf %100, %101 : vector<8x64xf32>
    %103 = vector.broadcast %4 : vector<1x64xf32> to vector<8x64xf32>
    %104 = arith.addf %102, %103 : vector<8x64xf32>
    %105 = arith.negf %104 : vector<8x64xf32>
    %106 = math.exp %105 : vector<8x64xf32>
    %cst_48 = arith.constant 1.000000e+00 : f32
    %107 = vector.broadcast %cst_48 : f32 to vector<8x64xf32>
    %108 = arith.addf %107, %106 : vector<8x64xf32>
    %109 = arith.divf %107, %108 : vector<8x64xf32>
    %110 = vector.extract_strided_slice %109 {offsets = [0, 0], sizes = [8, 32], strides = [1, 1]} : vector<8x64xf32> to vector<8x32xf32>
    %111 = vector.extract_strided_slice %109 {offsets = [0, 32], sizes = [8, 32], strides = [1, 1]} : vector<8x64xf32> to vector<8x32xf32>
    %112 = vector.extract_strided_slice %97 {offsets = [0, 64], sizes = [8, 32], strides = [1, 1]} : vector<8x96xf32> to vector<8x32xf32>
    %113 = vector.broadcast %5 : vector<1x32xf32> to vector<8x32xf32>
    %114 = arith.addf %112, %113 : vector<8x32xf32>
    %115 = vector.extract_strided_slice %99 {offsets = [0, 64], sizes = [8, 32], strides = [1, 1]} : vector<8x96xf32> to vector<8x32xf32>
    %116 = vector.broadcast %6 : vector<1x32xf32> to vector<8x32xf32>
    %117 = arith.addf %115, %116 : vector<8x32xf32>
    %118 = arith.mulf %110, %117 : vector<8x32xf32>
    %119 = arith.addf %114, %118 : vector<8x32xf32>
    %120 = math.tanh %119 : vector<8x32xf32>
    %cst_49 = arith.constant 1.000000e+00 : f32
    %121 = vector.broadcast %cst_49 : f32 to vector<8x32xf32>
    %122 = arith.subf %121, %111 : vector<8x32xf32>
    %123 = arith.mulf %122, %120 : vector<8x32xf32>
    %124 = arith.mulf %111, %94 : vector<8x32xf32>
    %125 = arith.addf %123, %124 : vector<8x32xf32>
    %c3_i32 = arith.constant 3 : i32
    %126 = arith.index_cast %c3_i32 : i32 to index
    %c0_50 = arith.constant 0 : index
    %c0_51 = arith.constant 0 : index
    %127 = vector.load %arg16[%126, %c0_50, %c0_51] : memref<8x8x96xf32, #tpu.memory_space<vmem>>, vector<1x8x96xf32>
    %128 = vector.shape_cast %127 : vector<1x8x96xf32> to vector<8x96xf32>
    %129 = arith.truncf %125 : vector<8x32xf32> to vector<8x32xbf16>
    %cst_52 = arith.constant dense<0.000000e+00> : vector<8x96xf32>
    %130 = tpu.matmul %129, %2, %cst_52 {dimension_numbers = #tpu.dot_dimension_numbers<[1], [0], [0], [1], [0, 0, 1, 1], [], []>} : vector<8x32xbf16>, vector<32x96xbf16>, vector<8x96xf32> -> vector<8x96xf32>
    %131 = vector.extract_strided_slice %128 {offsets = [0, 0], sizes = [8, 64], strides = [1, 1]} : vector<8x96xf32> to vector<8x64xf32>
    %132 = vector.extract_strided_slice %130 {offsets = [0, 0], sizes = [8, 64], strides = [1, 1]} : vector<8x96xf32> to vector<8x64xf32>
    %133 = arith.addf %131, %132 : vector<8x64xf32>
    %134 = vector.broadcast %4 : vector<1x64xf32> to vector<8x64xf32>
    %135 = arith.addf %133, %134 : vector<8x64xf32>
    %136 = arith.negf %135 : vector<8x64xf32>
    %137 = math.exp %136 : vector<8x64xf32>
    %cst_53 = arith.constant 1.000000e+00 : f32
    %138 = vector.broadcast %cst_53 : f32 to vector<8x64xf32>
    %139 = arith.addf %138, %137 : vector<8x64xf32>
    %140 = arith.divf %138, %139 : vector<8x64xf32>
    %141 = vector.extract_strided_slice %140 {offsets = [0, 0], sizes = [8, 32], strides = [1, 1]} : vector<8x64xf32> to vector<8x32xf32>
    %142 = vector.extract_strided_slice %140 {offsets = [0, 32], sizes = [8, 32], strides = [1, 1]} : vector<8x64xf32> to vector<8x32xf32>
    %143 = vector.extract_strided_slice %128 {offsets = [0, 64], sizes = [8, 32], strides = [1, 1]} : vector<8x96xf32> to vector<8x32xf32>
    %144 = vector.broadcast %5 : vector<1x32xf32> to vector<8x32xf32>
    %145 = arith.addf %143, %144 : vector<8x32xf32>
    %146 = vector.extract_strided_slice %130 {offsets = [0, 64], sizes = [8, 32], strides = [1, 1]} : vector<8x96xf32> to vector<8x32xf32>
    %147 = vector.broadcast %6 : vector<1x32xf32> to vector<8x32xf32>
    %148 = arith.addf %146, %147 : vector<8x32xf32>
    %149 = arith.mulf %141, %148 : vector<8x32xf32>
    %150 = arith.addf %145, %149 : vector<8x32xf32>
    %151 = math.tanh %150 : vector<8x32xf32>
    %cst_54 = arith.constant 1.000000e+00 : f32
    %152 = vector.broadcast %cst_54 : f32 to vector<8x32xf32>
    %153 = arith.subf %152, %142 : vector<8x32xf32>
    %154 = arith.mulf %153, %151 : vector<8x32xf32>
    %155 = arith.mulf %142, %125 : vector<8x32xf32>
    %156 = arith.addf %154, %155 : vector<8x32xf32>
    %c4_i32 = arith.constant 4 : i32
    %157 = arith.index_cast %c4_i32 : i32 to index
    %c0_55 = arith.constant 0 : index
    %c0_56 = arith.constant 0 : index
    %158 = vector.load %arg16[%157, %c0_55, %c0_56] : memref<8x8x96xf32, #tpu.memory_space<vmem>>, vector<1x8x96xf32>
    %159 = vector.shape_cast %158 : vector<1x8x96xf32> to vector<8x96xf32>
    %160 = arith.truncf %156 : vector<8x32xf32> to vector<8x32xbf16>
    %cst_57 = arith.constant dense<0.000000e+00> : vector<8x96xf32>
    %161 = tpu.matmul %160, %2, %cst_57 {dimension_numbers = #tpu.dot_dimension_numbers<[1], [0], [0], [1], [0, 0, 1, 1], [], []>} : vector<8x32xbf16>, vector<32x96xbf16>, vector<8x96xf32> -> vector<8x96xf32>
    %162 = vector.extract_strided_slice %159 {offsets = [0, 0], sizes = [8, 64], strides = [1, 1]} : vector<8x96xf32> to vector<8x64xf32>
    %163 = vector.extract_strided_slice %161 {offsets = [0, 0], sizes = [8, 64], strides = [1, 1]} : vector<8x96xf32> to vector<8x64xf32>
    %164 = arith.addf %162, %163 : vector<8x64xf32>
    %165 = vector.broadcast %4 : vector<1x64xf32> to vector<8x64xf32>
    %166 = arith.addf %164, %165 : vector<8x64xf32>
    %167 = arith.negf %166 : vector<8x64xf32>
    %168 = math.exp %167 : vector<8x64xf32>
    %cst_58 = arith.constant 1.000000e+00 : f32
    %169 = vector.broadcast %cst_58 : f32 to vector<8x64xf32>
    %170 = arith.addf %169, %168 : vector<8x64xf32>
    %171 = arith.divf %169, %170 : vector<8x64xf32>
    %172 = vector.extract_strided_slice %171 {offsets = [0, 0], sizes = [8, 32], strides = [1, 1]} : vector<8x64xf32> to vector<8x32xf32>
    %173 = vector.extract_strided_slice %171 {offsets = [0, 32], sizes = [8, 32], strides = [1, 1]} : vector<8x64xf32> to vector<8x32xf32>
    %174 = vector.extract_strided_slice %159 {offsets = [0, 64], sizes = [8, 32], strides = [1, 1]} : vector<8x96xf32> to vector<8x32xf32>
    %175 = vector.broadcast %5 : vector<1x32xf32> to vector<8x32xf32>
    %176 = arith.addf %174, %175 : vector<8x32xf32>
    %177 = vector.extract_strided_slice %161 {offsets = [0, 64], sizes = [8, 32], strides = [1, 1]} : vector<8x96xf32> to vector<8x32xf32>
    %178 = vector.broadcast %6 : vector<1x32xf32> to vector<8x32xf32>
    %179 = arith.addf %177, %178 : vector<8x32xf32>
    %180 = arith.mulf %172, %179 : vector<8x32xf32>
    %181 = arith.addf %176, %180 : vector<8x32xf32>
    %182 = math.tanh %181 : vector<8x32xf32>
    %cst_59 = arith.constant 1.000000e+00 : f32
    %183 = vector.broadcast %cst_59 : f32 to vector<8x32xf32>
    %184 = arith.subf %183, %173 : vector<8x32xf32>
    %185 = arith.mulf %184, %182 : vector<8x32xf32>
    %186 = arith.mulf %173, %156 : vector<8x32xf32>
    %187 = arith.addf %185, %186 : vector<8x32xf32>
    %c5_i32 = arith.constant 5 : i32
    %188 = arith.index_cast %c5_i32 : i32 to index
    %c0_60 = arith.constant 0 : index
    %c0_61 = arith.constant 0 : index
    %189 = vector.load %arg16[%188, %c0_60, %c0_61] : memref<8x8x96xf32, #tpu.memory_space<vmem>>, vector<1x8x96xf32>
    %190 = vector.shape_cast %189 : vector<1x8x96xf32> to vector<8x96xf32>
    %191 = arith.truncf %187 : vector<8x32xf32> to vector<8x32xbf16>
    %cst_62 = arith.constant dense<0.000000e+00> : vector<8x96xf32>
    %192 = tpu.matmul %191, %2, %cst_62 {dimension_numbers = #tpu.dot_dimension_numbers<[1], [0], [0], [1], [0, 0, 1, 1], [], []>} : vector<8x32xbf16>, vector<32x96xbf16>, vector<8x96xf32> -> vector<8x96xf32>
    %193 = vector.extract_strided_slice %190 {offsets = [0, 0], sizes = [8, 64], strides = [1, 1]} : vector<8x96xf32> to vector<8x64xf32>
    %194 = vector.extract_strided_slice %192 {offsets = [0, 0], sizes = [8, 64], strides = [1, 1]} : vector<8x96xf32> to vector<8x64xf32>
    %195 = arith.addf %193, %194 : vector<8x64xf32>
    %196 = vector.broadcast %4 : vector<1x64xf32> to vector<8x64xf32>
    %197 = arith.addf %195, %196 : vector<8x64xf32>
    %198 = arith.negf %197 : vector<8x64xf32>
    %199 = math.exp %198 : vector<8x64xf32>
    %cst_63 = arith.constant 1.000000e+00 : f32
    %200 = vector.broadcast %cst_63 : f32 to vector<8x64xf32>
    %201 = arith.addf %200, %199 : vector<8x64xf32>
    %202 = arith.divf %200, %201 : vector<8x64xf32>
    %203 = vector.extract_strided_slice %202 {offsets = [0, 0], sizes = [8, 32], strides = [1, 1]} : vector<8x64xf32> to vector<8x32xf32>
    %204 = vector.extract_strided_slice %202 {offsets = [0, 32], sizes = [8, 32], strides = [1, 1]} : vector<8x64xf32> to vector<8x32xf32>
    %205 = vector.extract_strided_slice %190 {offsets = [0, 64], sizes = [8, 32], strides = [1, 1]} : vector<8x96xf32> to vector<8x32xf32>
    %206 = vector.broadcast %5 : vector<1x32xf32> to vector<8x32xf32>
    %207 = arith.addf %205, %206 : vector<8x32xf32>
    %208 = vector.extract_strided_slice %192 {offsets = [0, 64], sizes = [8, 32], strides = [1, 1]} : vector<8x96xf32> to vector<8x32xf32>
    %209 = vector.broadcast %6 : vector<1x32xf32> to vector<8x32xf32>
    %210 = arith.addf %208, %209 : vector<8x32xf32>
    %211 = arith.mulf %203, %210 : vector<8x32xf32>
    %212 = arith.addf %207, %211 : vector<8x32xf32>
    %213 = math.tanh %212 : vector<8x32xf32>
    %cst_64 = arith.constant 1.000000e+00 : f32
    %214 = vector.broadcast %cst_64 : f32 to vector<8x32xf32>
    %215 = arith.subf %214, %204 : vector<8x32xf32>
    %216 = arith.mulf %215, %213 : vector<8x32xf32>
    %217 = arith.mulf %204, %187 : vector<8x32xf32>
    %218 = arith.addf %216, %217 : vector<8x32xf32>
    %c6_i32 = arith.constant 6 : i32
    %219 = arith.index_cast %c6_i32 : i32 to index
    %c0_65 = arith.constant 0 : index
    %c0_66 = arith.constant 0 : index
    %220 = vector.load %arg16[%219, %c0_65, %c0_66] : memref<8x8x96xf32, #tpu.memory_space<vmem>>, vector<1x8x96xf32>
    %221 = vector.shape_cast %220 : vector<1x8x96xf32> to vector<8x96xf32>
    %222 = arith.truncf %218 : vector<8x32xf32> to vector<8x32xbf16>
    %cst_67 = arith.constant dense<0.000000e+00> : vector<8x96xf32>
    %223 = tpu.matmul %222, %2, %cst_67 {dimension_numbers = #tpu.dot_dimension_numbers<[1], [0], [0], [1], [0, 0, 1, 1], [], []>} : vector<8x32xbf16>, vector<32x96xbf16>, vector<8x96xf32> -> vector<8x96xf32>
    %224 = vector.extract_strided_slice %221 {offsets = [0, 0], sizes = [8, 64], strides = [1, 1]} : vector<8x96xf32> to vector<8x64xf32>
    %225 = vector.extract_strided_slice %223 {offsets = [0, 0], sizes = [8, 64], strides = [1, 1]} : vector<8x96xf32> to vector<8x64xf32>
    %226 = arith.addf %224, %225 : vector<8x64xf32>
    %227 = vector.broadcast %4 : vector<1x64xf32> to vector<8x64xf32>
    %228 = arith.addf %226, %227 : vector<8x64xf32>
    %229 = arith.negf %228 : vector<8x64xf32>
    %230 = math.exp %229 : vector<8x64xf32>
    %cst_68 = arith.constant 1.000000e+00 : f32
    %231 = vector.broadcast %cst_68 : f32 to vector<8x64xf32>
    %232 = arith.addf %231, %230 : vector<8x64xf32>
    %233 = arith.divf %231, %232 : vector<8x64xf32>
    %234 = vector.extract_strided_slice %233 {offsets = [0, 0], sizes = [8, 32], strides = [1, 1]} : vector<8x64xf32> to vector<8x32xf32>
    %235 = vector.extract_strided_slice %233 {offsets = [0, 32], sizes = [8, 32], strides = [1, 1]} : vector<8x64xf32> to vector<8x32xf32>
    %236 = vector.extract_strided_slice %221 {offsets = [0, 64], sizes = [8, 32], strides = [1, 1]} : vector<8x96xf32> to vector<8x32xf32>
    %237 = vector.broadcast %5 : vector<1x32xf32> to vector<8x32xf32>
    %238 = arith.addf %236, %237 : vector<8x32xf32>
    %239 = vector.extract_strided_slice %223 {offsets = [0, 64], sizes = [8, 32], strides = [1, 1]} : vector<8x96xf32> to vector<8x32xf32>
    %240 = vector.broadcast %6 : vector<1x32xf32> to vector<8x32xf32>
    %241 = arith.addf %239, %240 : vector<8x32xf32>
    %242 = arith.mulf %234, %241 : vector<8x32xf32>
    %243 = arith.addf %238, %242 : vector<8x32xf32>
    %244 = math.tanh %243 : vector<8x32xf32>
    %cst_69 = arith.constant 1.000000e+00 : f32
    %245 = vector.broadcast %cst_69 : f32 to vector<8x32xf32>
    %246 = arith.subf %245, %235 : vector<8x32xf32>
    %247 = arith.mulf %246, %244 : vector<8x32xf32>
    %248 = arith.mulf %235, %218 : vector<8x32xf32>
    %249 = arith.addf %247, %248 : vector<8x32xf32>
    %c7_i32 = arith.constant 7 : i32
    %250 = arith.index_cast %c7_i32 : i32 to index
    %c0_70 = arith.constant 0 : index
    %c0_71 = arith.constant 0 : index
    %251 = vector.load %arg16[%250, %c0_70, %c0_71] : memref<8x8x96xf32, #tpu.memory_space<vmem>>, vector<1x8x96xf32>
    %252 = vector.shape_cast %251 : vector<1x8x96xf32> to vector<8x96xf32>
    %253 = arith.truncf %249 : vector<8x32xf32> to vector<8x32xbf16>
    %cst_72 = arith.constant dense<0.000000e+00> : vector<8x96xf32>
    %254 = tpu.matmul %253, %2, %cst_72 {dimension_numbers = #tpu.dot_dimension_numbers<[1], [0], [0], [1], [0, 0, 1, 1], [], []>} : vector<8x32xbf16>, vector<32x96xbf16>, vector<8x96xf32> -> vector<8x96xf32>
    %255 = vector.extract_strided_slice %252 {offsets = [0, 0], sizes = [8, 64], strides = [1, 1]} : vector<8x96xf32> to vector<8x64xf32>
    %256 = vector.extract_strided_slice %254 {offsets = [0, 0], sizes = [8, 64], strides = [1, 1]} : vector<8x96xf32> to vector<8x64xf32>
    %257 = arith.addf %255, %256 : vector<8x64xf32>
    %258 = vector.broadcast %4 : vector<1x64xf32> to vector<8x64xf32>
    %259 = arith.addf %257, %258 : vector<8x64xf32>
    %260 = arith.negf %259 : vector<8x64xf32>
    %261 = math.exp %260 : vector<8x64xf32>
    %cst_73 = arith.constant 1.000000e+00 : f32
    %262 = vector.broadcast %cst_73 : f32 to vector<8x64xf32>
    %263 = arith.addf %262, %261 : vector<8x64xf32>
    %264 = arith.divf %262, %263 : vector<8x64xf32>
    %265 = vector.extract_strided_slice %264 {offsets = [0, 0], sizes = [8, 32], strides = [1, 1]} : vector<8x64xf32> to vector<8x32xf32>
    %266 = vector.extract_strided_slice %264 {offsets = [0, 32], sizes = [8, 32], strides = [1, 1]} : vector<8x64xf32> to vector<8x32xf32>
    %267 = vector.extract_strided_slice %252 {offsets = [0, 64], sizes = [8, 32], strides = [1, 1]} : vector<8x96xf32> to vector<8x32xf32>
    %268 = vector.broadcast %5 : vector<1x32xf32> to vector<8x32xf32>
    %269 = arith.addf %267, %268 : vector<8x32xf32>
    %270 = vector.extract_strided_slice %254 {offsets = [0, 64], sizes = [8, 32], strides = [1, 1]} : vector<8x96xf32> to vector<8x32xf32>
    %271 = vector.broadcast %6 : vector<1x32xf32> to vector<8x32xf32>
    %272 = arith.addf %270, %271 : vector<8x32xf32>
    %273 = arith.mulf %265, %272 : vector<8x32xf32>
    %274 = arith.addf %269, %273 : vector<8x32xf32>
    %275 = math.tanh %274 : vector<8x32xf32>
    %cst_74 = arith.constant 1.000000e+00 : f32
    %276 = vector.broadcast %cst_74 : f32 to vector<8x32xf32>
    %277 = arith.subf %276, %266 : vector<8x32xf32>
    %278 = arith.mulf %277, %275 : vector<8x32xf32>
    %279 = arith.mulf %266, %249 : vector<8x32xf32>
    %280 = arith.addf %278, %279 : vector<8x32xf32>
    %c8_i32 = arith.constant 8 : i32
    %cst_75 = arith.constant 0.000000e+00 : f32
    %281 = vector.broadcast %cst_75 : f32 to vector<8x128xf32>
    %c0_76 = arith.constant 0 : index
    %c0_77 = arith.constant 0 : index
    %c0_78 = arith.constant 0 : index
    %282 = vector.load %arg15[%c0_76, %c0_77, %c0_78] : memref<8x8x128xf32, #tpu.memory_space<vmem>>, vector<1x8x128xf32>
    %283 = vector.shape_cast %282 : vector<1x8x128xf32> to vector<8x128xf32>
    %284 = vector.shape_cast %281 : vector<8x128xf32> to vector<1x8x128xf32>
    tpu.vector_store %arg15[%c0_76, %c0_77, %c0_78], %284 {strides = array<i32>} : memref<8x8x128xf32, #tpu.memory_space<vmem>>, vector<1x8x128xf32>,
    %cst_79 = arith.constant 0.000000e+00 : f32
    %285 = vector.broadcast %cst_79 : f32 to vector<8x96xf32>
    %c1_i32_80 = arith.constant 1 : i32
    %286 = arith.index_cast %c1_i32_80 : i32 to index
    %287 = memref.load %arg2[%286] : memref<8xi32, #tpu.memory_space<smem>>
    %c0_i32_81 = arith.constant 0 : i32
    %288 = arith.cmpi sgt, %287, %c0_i32_81 : i32
    %289 = arith.index_cast %c1_i32_80 : i32 to index
    %c0_82 = arith.constant 0 : index
    %c0_83 = arith.constant 0 : index
    %290 = vector.load %arg17[%289, %c0_82, %c0_83] : memref<8x8x96xf32, #tpu.memory_space<vmem>>, vector<1x8x96xf32>
    %291 = vector.shape_cast %290 : vector<1x8x96xf32> to vector<8x96xf32>
    %292 = arith.select %288, %291, %285 : vector<8x96xf32>
    %293 = arith.truncf %280 : vector<8x32xf32> to vector<8x32xbf16>
    %cst_84 = arith.constant dense<0.000000e+00> : vector<8x96xf32>
    %294 = tpu.matmul %293, %3, %cst_84 {dimension_numbers = #tpu.dot_dimension_numbers<[1], [0], [0], [1], [0, 0, 1, 1], [], []>} : vector<8x32xbf16>, vector<32x96xbf16>, vector<8x96xf32> -> vector<8x96xf32>
    %295 = vector.extract_strided_slice %292 {offsets = [0, 0], sizes = [8, 64], strides = [1, 1]} : vector<8x96xf32> to vector<8x64xf32>
    %296 = vector.extract_strided_slice %294 {offsets = [0, 0], sizes = [8, 64], strides = [1, 1]} : vector<8x96xf32> to vector<8x64xf32>
    %297 = arith.addf %295, %296 : vector<8x64xf32>
    %298 = vector.broadcast %7 : vector<1x64xf32> to vector<8x64xf32>
    %299 = arith.addf %297, %298 : vector<8x64xf32>
    %300 = arith.negf %299 : vector<8x64xf32>
    %301 = math.exp %300 : vector<8x64xf32>
    %cst_85 = arith.constant 1.000000e+00 : f32
    %302 = vector.broadcast %cst_85 : f32 to vector<8x64xf32>
    %303 = arith.addf %302, %301 : vector<8x64xf32>
    %304 = arith.divf %302, %303 : vector<8x64xf32>
    %305 = vector.extract_strided_slice %304 {offsets = [0, 0], sizes = [8, 32], strides = [1, 1]} : vector<8x64xf32> to vector<8x32xf32>
    %306 = vector.extract_strided_slice %304 {offsets = [0, 32], sizes = [8, 32], strides = [1, 1]} : vector<8x64xf32> to vector<8x32xf32>
    %307 = vector.extract_strided_slice %292 {offsets = [0, 64], sizes = [8, 32], strides = [1, 1]} : vector<8x96xf32> to vector<8x32xf32>
    %308 = vector.broadcast %8 : vector<1x32xf32> to vector<8x32xf32>
    %309 = arith.addf %307, %308 : vector<8x32xf32>
    %310 = vector.extract_strided_slice %294 {offsets = [0, 64], sizes = [8, 32], strides = [1, 1]} : vector<8x96xf32> to vector<8x32xf32>
    %311 = vector.broadcast %9 : vector<1x32xf32> to vector<8x32xf32>
    %312 = arith.addf %310, %311 : vector<8x32xf32>
    %313 = arith.mulf %305, %312 : vector<8x32xf32>
    %314 = arith.addf %309, %313 : vector<8x32xf32>
    %315 = math.tanh %314 : vector<8x32xf32>
    %cst_86 = arith.constant 1.000000e+00 : f32
    %316 = vector.broadcast %cst_86 : f32 to vector<8x32xf32>
    %317 = arith.subf %316, %306 : vector<8x32xf32>
    %318 = arith.mulf %317, %315 : vector<8x32xf32>
    %319 = arith.mulf %306, %280 : vector<8x32xf32>
    %320 = arith.addf %318, %319 : vector<8x32xf32>
    %321 = arith.truncf %320 : vector<8x32xf32> to vector<8x32xbf16>
    %cst_87 = arith.constant dense<0.000000e+00> : vector<8x128xf32>
    %322 = tpu.matmul %321, %10, %cst_87 {dimension_numbers = #tpu.dot_dimension_numbers<[1], [0], [0], [1], [0, 0, 1, 1], [], []>} : vector<8x32xbf16>, vector<32x128xbf16>, vector<8x128xf32> -> vector<8x128xf32>
    %323 = vector.broadcast %11 : vector<1x128xf32> to vector<8x128xf32>
    %324 = arith.addf %322, %323 : vector<8x128xf32>
    %325 = arith.index_cast %c1_i32_80 : i32 to index
    %c0_88 = arith.constant 0 : index
    %c0_89 = arith.constant 0 : index
    %326 = vector.load %arg15[%325, %c0_88, %c0_89] : memref<8x8x128xf32, #tpu.memory_space<vmem>>, vector<1x8x128xf32>
    %327 = vector.shape_cast %326 : vector<1x8x128xf32> to vector<8x128xf32>
    %328 = vector.shape_cast %324 : vector<8x128xf32> to vector<1x8x128xf32>
    tpu.vector_store %arg15[%325, %c0_88, %c0_89], %328 {strides = array<i32>} : memref<8x8x128xf32, #tpu.memory_space<vmem>>, vector<1x8x128xf32>,
    %cst_90 = arith.constant dense<0xFF800000> : vector<8xf32>
    %329 = vector.multi_reduction <maximumf>, %324, %cst_90 [1] : vector<8x128xf32> to vector<8xf32>
    %330 = vector.shape_cast %329 : vector<8xf32> to vector<8x1xf32>
    %331 = tpu.iota {dimensions = array<i32: 1>} : vector<8x128xi32>
    %332 = vector.broadcast %330 : vector<8x1xf32> to vector<8x128xf32>
    %333 = arith.cmpf oeq, %324, %332 : vector<8x128xf32>
    %c128_i32 = arith.constant 128 : i32
    %334 = vector.broadcast %c128_i32 : i32 to vector<8x128xi32>
    %335 = arith.select %333, %331, %334 : vector<8x128xi1>, vector<8x128xi32>
    %cst_91 = arith.constant dense<2147483647> : vector<8xi32>
    %336 = vector.multi_reduction <minsi>, %335, %cst_91 [1] : vector<8x128xi32> to vector<8xi32>
    %337 = vector.shape_cast %336 : vector<8xi32> to vector<8x1xi32>
    %338 = vector.broadcast %337 : vector<8x1xi32> to vector<8x128xi32>
    %339 = arith.cmpi eq, %331, %338 : vector<8x128xi32>
    %340 = arith.extui %339 : vector<8x128xi1> to vector<8x128xi32>
    %341 = arith.sitofp %340 : vector<8x128xi32> to vector<8x128xf32>
    %342 = arith.truncf %341 : vector<8x128xf32> to vector<8x128xbf16>
    %cst_92 = arith.constant dense<0.000000e+00> : vector<8x96xf32>
    %343 = tpu.matmul %342, %1, %cst_92 {dimension_numbers = #tpu.dot_dimension_numbers<[1], [0], [0], [1], [0, 0, 1, 1], [], []>} : vector<8x128xbf16>, vector<128x96xbf16>, vector<8x96xf32> -> vector<8x96xf32>
    %c2_i32_93 = arith.constant 2 : i32
    %344 = arith.index_cast %c2_i32_93 : i32 to index
    %345 = memref.load %arg2[%344] : memref<8xi32, #tpu.memory_space<smem>>
    %c0_i32_94 = arith.constant 0 : i32
    %346 = arith.cmpi sgt, %345, %c0_i32_94 : i32
    %347 = arith.index_cast %c2_i32_93 : i32 to index
    %c0_95 = arith.constant 0 : index
    %c0_96 = arith.constant 0 : index
    %348 = vector.load %arg17[%347, %c0_95, %c0_96] : memref<8x8x96xf32, #tpu.memory_space<vmem>>, vector<1x8x96xf32>
    %349 = vector.shape_cast %348 : vector<1x8x96xf32> to vector<8x96xf32>
    %350 = arith.select %346, %349, %343 : vector<8x96xf32>
    %351 = arith.truncf %320 : vector<8x32xf32> to vector<8x32xbf16>
    %cst_97 = arith.constant dense<0.000000e+00> : vector<8x96xf32>
    %352 = tpu.matmul %351, %3, %cst_97 {dimension_numbers = #tpu.dot_dimension_numbers<[1], [0], [0], [1], [0, 0, 1, 1], [], []>} : vector<8x32xbf16>, vector<32x96xbf16>, vector<8x96xf32> -> vector<8x96xf32>
    %353 = vector.extract_strided_slice %350 {offsets = [0, 0], sizes = [8, 64], strides = [1, 1]} : vector<8x96xf32> to vector<8x64xf32>
    %354 = vector.extract_strided_slice %352 {offsets = [0, 0], sizes = [8, 64], strides = [1, 1]} : vector<8x96xf32> to vector<8x64xf32>
    %355 = arith.addf %353, %354 : vector<8x64xf32>
    %356 = vector.broadcast %7 : vector<1x64xf32> to vector<8x64xf32>
    %357 = arith.addf %355, %356 : vector<8x64xf32>
    %358 = arith.negf %357 : vector<8x64xf32>
    %359 = math.exp %358 : vector<8x64xf32>
    %cst_98 = arith.constant 1.000000e+00 : f32
    %360 = vector.broadcast %cst_98 : f32 to vector<8x64xf32>
    %361 = arith.addf %360, %359 : vector<8x64xf32>
    %362 = arith.divf %360, %361 : vector<8x64xf32>
    %363 = vector.extract_strided_slice %362 {offsets = [0, 0], sizes = [8, 32], strides = [1, 1]} : vector<8x64xf32> to vector<8x32xf32>
    %364 = vector.extract_strided_slice %362 {offsets = [0, 32], sizes = [8, 32], strides = [1, 1]} : vector<8x64xf32> to vector<8x32xf32>
    %365 = vector.extract_strided_slice %350 {offsets = [0, 64], sizes = [8, 32], strides = [1, 1]} : vector<8x96xf32> to vector<8x32xf32>
    %366 = vector.broadcast %8 : vector<1x32xf32> to vector<8x32xf32>
    %367 = arith.addf %365, %366 : vector<8x32xf32>
    %368 = vector.extract_strided_slice %352 {offsets = [0, 64], sizes = [8, 32], strides = [1, 1]} : vector<8x96xf32> to vector<8x32xf32>
    %369 = vector.broadcast %9 : vector<1x32xf32> to vector<8x32xf32>
    %370 = arith.addf %368, %369 : vector<8x32xf32>
    %371 = arith.mulf %363, %370 : vector<8x32xf32>
    %372 = arith.addf %367, %371 : vector<8x32xf32>
    %373 = math.tanh %372 : vector<8x32xf32>
    %cst_99 = arith.constant 1.000000e+00 : f32
    %374 = vector.broadcast %cst_99 : f32 to vector<8x32xf32>
    %375 = arith.subf %374, %364 : vector<8x32xf32>
    %376 = arith.mulf %375, %373 : vector<8x32xf32>
    %377 = arith.mulf %364, %320 : vector<8x32xf32>
    %378 = arith.addf %376, %377 : vector<8x32xf32>
    %379 = arith.truncf %378 : vector<8x32xf32> to vector<8x32xbf16>
    %cst_100 = arith.constant dense<0.000000e+00> : vector<8x128xf32>
    %380 = tpu.matmul %379, %10, %cst_100 {dimension_numbers = #tpu.dot_dimension_numbers<[1], [0], [0], [1], [0, 0, 1, 1], [], []>} : vector<8x32xbf16>, vector<32x128xbf16>, vector<8x128xf32> -> vector<8x128xf32>
    %381 = vector.broadcast %11 : vector<1x128xf32> to vector<8x128xf32>
    %382 = arith.addf %380, %381 : vector<8x128xf32>
    %383 = arith.index_cast %c2_i32_93 : i32 to index
    %c0_101 = arith.constant 0 : index
    %c0_102 = arith.constant 0 : index
    %384 = vector.load %arg15[%383, %c0_101, %c0_102] : memref<8x8x128xf32, #tpu.memory_space<vmem>>, vector<1x8x128xf32>
    %385 = vector.shape_cast %384 : vector<1x8x128xf32> to vector<8x128xf32>
    %386 = vector.shape_cast %382 : vector<8x128xf32> to vector<1x8x128xf32>
    tpu.vector_store %arg15[%383, %c0_101, %c0_102], %386 {strides = array<i32>} : memref<8x8x128xf32, #tpu.memory_space<vmem>>, vector<1x8x128xf32>,
    %cst_103 = arith.constant dense<0xFF800000> : vector<8xf32>
    %387 = vector.multi_reduction <maximumf>, %382, %cst_103 [1] : vector<8x128xf32> to vector<8xf32>
    %388 = vector.shape_cast %387 : vector<8xf32> to vector<8x1xf32>
    %389 = tpu.iota {dimensions = array<i32: 1>} : vector<8x128xi32>
    %390 = vector.broadcast %388 : vector<8x1xf32> to vector<8x128xf32>
    %391 = arith.cmpf oeq, %382, %390 : vector<8x128xf32>
    %c128_i32_104 = arith.constant 128 : i32
    %392 = vector.broadcast %c128_i32_104 : i32 to vector<8x128xi32>
    %393 = arith.select %391, %389, %392 : vector<8x128xi1>, vector<8x128xi32>
    %cst_105 = arith.constant dense<2147483647> : vector<8xi32>
    %394 = vector.multi_reduction <minsi>, %393, %cst_105 [1] : vector<8x128xi32> to vector<8xi32>
    %395 = vector.shape_cast %394 : vector<8xi32> to vector<8x1xi32>
    %396 = vector.broadcast %395 : vector<8x1xi32> to vector<8x128xi32>
    %397 = arith.cmpi eq, %389, %396 : vector<8x128xi32>
    %398 = arith.extui %397 : vector<8x128xi1> to vector<8x128xi32>
    %399 = arith.sitofp %398 : vector<8x128xi32> to vector<8x128xf32>
    %400 = arith.truncf %399 : vector<8x128xf32> to vector<8x128xbf16>
    %cst_106 = arith.constant dense<0.000000e+00> : vector<8x96xf32>
    %401 = tpu.matmul %400, %1, %cst_106 {dimension_numbers = #tpu.dot_dimension_numbers<[1], [0], [0], [1], [0, 0, 1, 1], [], []>} : vector<8x128xbf16>, vector<128x96xbf16>, vector<8x96xf32> -> vector<8x96xf32>
    %c3_i32_107 = arith.constant 3 : i32
    %402 = arith.index_cast %c3_i32_107 : i32 to index
    %403 = memref.load %arg2[%402] : memref<8xi32, #tpu.memory_space<smem>>
    %c0_i32_108 = arith.constant 0 : i32
    %404 = arith.cmpi sgt, %403, %c0_i32_108 : i32
    %405 = arith.index_cast %c3_i32_107 : i32 to index
    %c0_109 = arith.constant 0 : index
    %c0_110 = arith.constant 0 : index
    %406 = vector.load %arg17[%405, %c0_109, %c0_110] : memref<8x8x96xf32, #tpu.memory_space<vmem>>, vector<1x8x96xf32>
    %407 = vector.shape_cast %406 : vector<1x8x96xf32> to vector<8x96xf32>
    %408 = arith.select %404, %407, %401 : vector<8x96xf32>
    %409 = arith.truncf %378 : vector<8x32xf32> to vector<8x32xbf16>
    %cst_111 = arith.constant dense<0.000000e+00> : vector<8x96xf32>
    %410 = tpu.matmul %409, %3, %cst_111 {dimension_numbers = #tpu.dot_dimension_numbers<[1], [0], [0], [1], [0, 0, 1, 1], [], []>} : vector<8x32xbf16>, vector<32x96xbf16>, vector<8x96xf32> -> vector<8x96xf32>
    %411 = vector.extract_strided_slice %408 {offsets = [0, 0], sizes = [8, 64], strides = [1, 1]} : vector<8x96xf32> to vector<8x64xf32>
    %412 = vector.extract_strided_slice %410 {offsets = [0, 0], sizes = [8, 64], strides = [1, 1]} : vector<8x96xf32> to vector<8x64xf32>
    %413 = arith.addf %411, %412 : vector<8x64xf32>
    %414 = vector.broadcast %7 : vector<1x64xf32> to vector<8x64xf32>
    %415 = arith.addf %413, %414 : vector<8x64xf32>
    %416 = arith.negf %415 : vector<8x64xf32>
    %417 = math.exp %416 : vector<8x64xf32>
    %cst_112 = arith.constant 1.000000e+00 : f32
    %418 = vector.broadcast %cst_112 : f32 to vector<8x64xf32>
    %419 = arith.addf %418, %417 : vector<8x64xf32>
    %420 = arith.divf %418, %419 : vector<8x64xf32>
    %421 = vector.extract_strided_slice %420 {offsets = [0, 0], sizes = [8, 32], strides = [1, 1]} : vector<8x64xf32> to vector<8x32xf32>
    %422 = vector.extract_strided_slice %420 {offsets = [0, 32], sizes = [8, 32], strides = [1, 1]} : vector<8x64xf32> to vector<8x32xf32>
    %423 = vector.extract_strided_slice %408 {offsets = [0, 64], sizes = [8, 32], strides = [1, 1]} : vector<8x96xf32> to vector<8x32xf32>
    %424 = vector.broadcast %8 : vector<1x32xf32> to vector<8x32xf32>
    %425 = arith.addf %423, %424 : vector<8x32xf32>
    %426 = vector.extract_strided_slice %410 {offsets = [0, 64], sizes = [8, 32], strides = [1, 1]} : vector<8x96xf32> to vector<8x32xf32>
    %427 = vector.broadcast %9 : vector<1x32xf32> to vector<8x32xf32>
    %428 = arith.addf %426, %427 : vector<8x32xf32>
    %429 = arith.mulf %421, %428 : vector<8x32xf32>
    %430 = arith.addf %425, %429 : vector<8x32xf32>
    %431 = math.tanh %430 : vector<8x32xf32>
    %cst_113 = arith.constant 1.000000e+00 : f32
    %432 = vector.broadcast %cst_113 : f32 to vector<8x32xf32>
    %433 = arith.subf %432, %422 : vector<8x32xf32>
    %434 = arith.mulf %433, %431 : vector<8x32xf32>
    %435 = arith.mulf %422, %378 : vector<8x32xf32>
    %436 = arith.addf %434, %435 : vector<8x32xf32>
    %437 = arith.truncf %436 : vector<8x32xf32> to vector<8x32xbf16>
    %cst_114 = arith.constant dense<0.000000e+00> : vector<8x128xf32>
    %438 = tpu.matmul %437, %10, %cst_114 {dimension_numbers = #tpu.dot_dimension_numbers<[1], [0], [0], [1], [0, 0, 1, 1], [], []>} : vector<8x32xbf16>, vector<32x128xbf16>, vector<8x128xf32> -> vector<8x128xf32>
    %439 = vector.broadcast %11 : vector<1x128xf32> to vector<8x128xf32>
    %440 = arith.addf %438, %439 : vector<8x128xf32>
    %441 = arith.index_cast %c3_i32_107 : i32 to index
    %c0_115 = arith.constant 0 : index
    %c0_116 = arith.constant 0 : index
    %442 = vector.load %arg15[%441, %c0_115, %c0_116] : memref<8x8x128xf32, #tpu.memory_space<vmem>>, vector<1x8x128xf32>
    %443 = vector.shape_cast %442 : vector<1x8x128xf32> to vector<8x128xf32>
    %444 = vector.shape_cast %440 : vector<8x128xf32> to vector<1x8x128xf32>
    tpu.vector_store %arg15[%441, %c0_115, %c0_116], %444 {strides = array<i32>} : memref<8x8x128xf32, #tpu.memory_space<vmem>>, vector<1x8x128xf32>,
    %cst_117 = arith.constant dense<0xFF800000> : vector<8xf32>
    %445 = vector.multi_reduction <maximumf>, %440, %cst_117 [1] : vector<8x128xf32> to vector<8xf32>
    %446 = vector.shape_cast %445 : vector<8xf32> to vector<8x1xf32>
    %447 = tpu.iota {dimensions = array<i32: 1>} : vector<8x128xi32>
    %448 = vector.broadcast %446 : vector<8x1xf32> to vector<8x128xf32>
    %449 = arith.cmpf oeq, %440, %448 : vector<8x128xf32>
    %c128_i32_118 = arith.constant 128 : i32
    %450 = vector.broadcast %c128_i32_118 : i32 to vector<8x128xi32>
    %451 = arith.select %449, %447, %450 : vector<8x128xi1>, vector<8x128xi32>
    %cst_119 = arith.constant dense<2147483647> : vector<8xi32>
    %452 = vector.multi_reduction <minsi>, %451, %cst_119 [1] : vector<8x128xi32> to vector<8xi32>
    %453 = vector.shape_cast %452 : vector<8xi32> to vector<8x1xi32>
    %454 = vector.broadcast %453 : vector<8x1xi32> to vector<8x128xi32>
    %455 = arith.cmpi eq, %447, %454 : vector<8x128xi32>
    %456 = arith.extui %455 : vector<8x128xi1> to vector<8x128xi32>
    %457 = arith.sitofp %456 : vector<8x128xi32> to vector<8x128xf32>
    %458 = arith.truncf %457 : vector<8x128xf32> to vector<8x128xbf16>
    %cst_120 = arith.constant dense<0.000000e+00> : vector<8x96xf32>
    %459 = tpu.matmul %458, %1, %cst_120 {dimension_numbers = #tpu.dot_dimension_numbers<[1], [0], [0], [1], [0, 0, 1, 1], [], []>} : vector<8x128xbf16>, vector<128x96xbf16>, vector<8x96xf32> -> vector<8x96xf32>
    %c4_i32_121 = arith.constant 4 : i32
    %460 = arith.index_cast %c4_i32_121 : i32 to index
    %461 = memref.load %arg2[%460] : memref<8xi32, #tpu.memory_space<smem>>
    %c0_i32_122 = arith.constant 0 : i32
    %462 = arith.cmpi sgt, %461, %c0_i32_122 : i32
    %463 = arith.index_cast %c4_i32_121 : i32 to index
    %c0_123 = arith.constant 0 : index
    %c0_124 = arith.constant 0 : index
    %464 = vector.load %arg17[%463, %c0_123, %c0_124] : memref<8x8x96xf32, #tpu.memory_space<vmem>>, vector<1x8x96xf32>
    %465 = vector.shape_cast %464 : vector<1x8x96xf32> to vector<8x96xf32>
    %466 = arith.select %462, %465, %459 : vector<8x96xf32>
    %467 = arith.truncf %436 : vector<8x32xf32> to vector<8x32xbf16>
    %cst_125 = arith.constant dense<0.000000e+00> : vector<8x96xf32>
    %468 = tpu.matmul %467, %3, %cst_125 {dimension_numbers = #tpu.dot_dimension_numbers<[1], [0], [0], [1], [0, 0, 1, 1], [], []>} : vector<8x32xbf16>, vector<32x96xbf16>, vector<8x96xf32> -> vector<8x96xf32>
    %469 = vector.extract_strided_slice %466 {offsets = [0, 0], sizes = [8, 64], strides = [1, 1]} : vector<8x96xf32> to vector<8x64xf32>
    %470 = vector.extract_strided_slice %468 {offsets = [0, 0], sizes = [8, 64], strides = [1, 1]} : vector<8x96xf32> to vector<8x64xf32>
    %471 = arith.addf %469, %470 : vector<8x64xf32>
    %472 = vector.broadcast %7 : vector<1x64xf32> to vector<8x64xf32>
    %473 = arith.addf %471, %472 : vector<8x64xf32>
    %474 = arith.negf %473 : vector<8x64xf32>
    %475 = math.exp %474 : vector<8x64xf32>
    %cst_126 = arith.constant 1.000000e+00 : f32
    %476 = vector.broadcast %cst_126 : f32 to vector<8x64xf32>
    %477 = arith.addf %476, %475 : vector<8x64xf32>
    %478 = arith.divf %476, %477 : vector<8x64xf32>
    %479 = vector.extract_strided_slice %478 {offsets = [0, 0], sizes = [8, 32], strides = [1, 1]} : vector<8x64xf32> to vector<8x32xf32>
    %480 = vector.extract_strided_slice %478 {offsets = [0, 32], sizes = [8, 32], strides = [1, 1]} : vector<8x64xf32> to vector<8x32xf32>
    %481 = vector.extract_strided_slice %466 {offsets = [0, 64], sizes = [8, 32], strides = [1, 1]} : vector<8x96xf32> to vector<8x32xf32>
    %482 = vector.broadcast %8 : vector<1x32xf32> to vector<8x32xf32>
    %483 = arith.addf %481, %482 : vector<8x32xf32>
    %484 = vector.extract_strided_slice %468 {offsets = [0, 64], sizes = [8, 32], strides = [1, 1]} : vector<8x96xf32> to vector<8x32xf32>
    %485 = vector.broadcast %9 : vector<1x32xf32> to vector<8x32xf32>
    %486 = arith.addf %484, %485 : vector<8x32xf32>
    %487 = arith.mulf %479, %486 : vector<8x32xf32>
    %488 = arith.addf %483, %487 : vector<8x32xf32>
    %489 = math.tanh %488 : vector<8x32xf32>
    %cst_127 = arith.constant 1.000000e+00 : f32
    %490 = vector.broadcast %cst_127 : f32 to vector<8x32xf32>
    %491 = arith.subf %490, %480 : vector<8x32xf32>
    %492 = arith.mulf %491, %489 : vector<8x32xf32>
    %493 = arith.mulf %480, %436 : vector<8x32xf32>
    %494 = arith.addf %492, %493 : vector<8x32xf32>
    %495 = arith.truncf %494 : vector<8x32xf32> to vector<8x32xbf16>
    %cst_128 = arith.constant dense<0.000000e+00> : vector<8x128xf32>
    %496 = tpu.matmul %495, %10, %cst_128 {dimension_numbers = #tpu.dot_dimension_numbers<[1], [0], [0], [1], [0, 0, 1, 1], [], []>} : vector<8x32xbf16>, vector<32x128xbf16>, vector<8x128xf32> -> vector<8x128xf32>
    %497 = vector.broadcast %11 : vector<1x128xf32> to vector<8x128xf32>
    %498 = arith.addf %496, %497 : vector<8x128xf32>
    %499 = arith.index_cast %c4_i32_121 : i32 to index
    %c0_129 = arith.constant 0 : index
    %c0_130 = arith.constant 0 : index
    %500 = vector.load %arg15[%499, %c0_129, %c0_130] : memref<8x8x128xf32, #tpu.memory_space<vmem>>, vector<1x8x128xf32>
    %501 = vector.shape_cast %500 : vector<1x8x128xf32> to vector<8x128xf32>
    %502 = vector.shape_cast %498 : vector<8x128xf32> to vector<1x8x128xf32>
    tpu.vector_store %arg15[%499, %c0_129, %c0_130], %502 {strides = array<i32>} : memref<8x8x128xf32, #tpu.memory_space<vmem>>, vector<1x8x128xf32>,
    %cst_131 = arith.constant dense<0xFF800000> : vector<8xf32>
    %503 = vector.multi_reduction <maximumf>, %498, %cst_131 [1] : vector<8x128xf32> to vector<8xf32>
    %504 = vector.shape_cast %503 : vector<8xf32> to vector<8x1xf32>
    %505 = tpu.iota {dimensions = array<i32: 1>} : vector<8x128xi32>
    %506 = vector.broadcast %504 : vector<8x1xf32> to vector<8x128xf32>
    %507 = arith.cmpf oeq, %498, %506 : vector<8x128xf32>
    %c128_i32_132 = arith.constant 128 : i32
    %508 = vector.broadcast %c128_i32_132 : i32 to vector<8x128xi32>
    %509 = arith.select %507, %505, %508 : vector<8x128xi1>, vector<8x128xi32>
    %cst_133 = arith.constant dense<2147483647> : vector<8xi32>
    %510 = vector.multi_reduction <minsi>, %509, %cst_133 [1] : vector<8x128xi32> to vector<8xi32>
    %511 = vector.shape_cast %510 : vector<8xi32> to vector<8x1xi32>
    %512 = vector.broadcast %511 : vector<8x1xi32> to vector<8x128xi32>
    %513 = arith.cmpi eq, %505, %512 : vector<8x128xi32>
    %514 = arith.extui %513 : vector<8x128xi1> to vector<8x128xi32>
    %515 = arith.sitofp %514 : vector<8x128xi32> to vector<8x128xf32>
    %516 = arith.truncf %515 : vector<8x128xf32> to vector<8x128xbf16>
    %cst_134 = arith.constant dense<0.000000e+00> : vector<8x96xf32>
    %517 = tpu.matmul %516, %1, %cst_134 {dimension_numbers = #tpu.dot_dimension_numbers<[1], [0], [0], [1], [0, 0, 1, 1], [], []>} : vector<8x128xbf16>, vector<128x96xbf16>, vector<8x96xf32> -> vector<8x96xf32>
    %c5_i32_135 = arith.constant 5 : i32
    %518 = arith.index_cast %c5_i32_135 : i32 to index
    %519 = memref.load %arg2[%518] : memref<8xi32, #tpu.memory_space<smem>>
    %c0_i32_136 = arith.constant 0 : i32
    %520 = arith.cmpi sgt, %519, %c0_i32_136 : i32
    %521 = arith.index_cast %c5_i32_135 : i32 to index
    %c0_137 = arith.constant 0 : index
    %c0_138 = arith.constant 0 : index
    %522 = vector.load %arg17[%521, %c0_137, %c0_138] : memref<8x8x96xf32, #tpu.memory_space<vmem>>, vector<1x8x96xf32>
    %523 = vector.shape_cast %522 : vector<1x8x96xf32> to vector<8x96xf32>
    %524 = arith.select %520, %523, %517 : vector<8x96xf32>
    %525 = arith.truncf %494 : vector<8x32xf32> to vector<8x32xbf16>
    %cst_139 = arith.constant dense<0.000000e+00> : vector<8x96xf32>
    %526 = tpu.matmul %525, %3, %cst_139 {dimension_numbers = #tpu.dot_dimension_numbers<[1], [0], [0], [1], [0, 0, 1, 1], [], []>} : vector<8x32xbf16>, vector<32x96xbf16>, vector<8x96xf32> -> vector<8x96xf32>
    %527 = vector.extract_strided_slice %524 {offsets = [0, 0], sizes = [8, 64], strides = [1, 1]} : vector<8x96xf32> to vector<8x64xf32>
    %528 = vector.extract_strided_slice %526 {offsets = [0, 0], sizes = [8, 64], strides = [1, 1]} : vector<8x96xf32> to vector<8x64xf32>
    %529 = arith.addf %527, %528 : vector<8x64xf32>
    %530 = vector.broadcast %7 : vector<1x64xf32> to vector<8x64xf32>
    %531 = arith.addf %529, %530 : vector<8x64xf32>
    %532 = arith.negf %531 : vector<8x64xf32>
    %533 = math.exp %532 : vector<8x64xf32>
    %cst_140 = arith.constant 1.000000e+00 : f32
    %534 = vector.broadcast %cst_140 : f32 to vector<8x64xf32>
    %535 = arith.addf %534, %533 : vector<8x64xf32>
    %536 = arith.divf %534, %535 : vector<8x64xf32>
    %537 = vector.extract_strided_slice %536 {offsets = [0, 0], sizes = [8, 32], strides = [1, 1]} : vector<8x64xf32> to vector<8x32xf32>
    %538 = vector.extract_strided_slice %536 {offsets = [0, 32], sizes = [8, 32], strides = [1, 1]} : vector<8x64xf32> to vector<8x32xf32>
    %539 = vector.extract_strided_slice %524 {offsets = [0, 64], sizes = [8, 32], strides = [1, 1]} : vector<8x96xf32> to vector<8x32xf32>
    %540 = vector.broadcast %8 : vector<1x32xf32> to vector<8x32xf32>
    %541 = arith.addf %539, %540 : vector<8x32xf32>
    %542 = vector.extract_strided_slice %526 {offsets = [0, 64], sizes = [8, 32], strides = [1, 1]} : vector<8x96xf32> to vector<8x32xf32>
    %543 = vector.broadcast %9 : vector<1x32xf32> to vector<8x32xf32>
    %544 = arith.addf %542, %543 : vector<8x32xf32>
    %545 = arith.mulf %537, %544 : vector<8x32xf32>
    %546 = arith.addf %541, %545 : vector<8x32xf32>
    %547 = math.tanh %546 : vector<8x32xf32>
    %cst_141 = arith.constant 1.000000e+00 : f32
    %548 = vector.broadcast %cst_141 : f32 to vector<8x32xf32>
    %549 = arith.subf %548, %538 : vector<8x32xf32>
    %550 = arith.mulf %549, %547 : vector<8x32xf32>
    %551 = arith.mulf %538, %494 : vector<8x32xf32>
    %552 = arith.addf %550, %551 : vector<8x32xf32>
    %553 = arith.truncf %552 : vector<8x32xf32> to vector<8x32xbf16>
    %cst_142 = arith.constant dense<0.000000e+00> : vector<8x128xf32>
    %554 = tpu.matmul %553, %10, %cst_142 {dimension_numbers = #tpu.dot_dimension_numbers<[1], [0], [0], [1], [0, 0, 1, 1], [], []>} : vector<8x32xbf16>, vector<32x128xbf16>, vector<8x128xf32> -> vector<8x128xf32>
    %555 = vector.broadcast %11 : vector<1x128xf32> to vector<8x128xf32>
    %556 = arith.addf %554, %555 : vector<8x128xf32>
    %557 = arith.index_cast %c5_i32_135 : i32 to index
    %c0_143 = arith.constant 0 : index
    %c0_144 = arith.constant 0 : index
    %558 = vector.load %arg15[%557, %c0_143, %c0_144] : memref<8x8x128xf32, #tpu.memory_space<vmem>>, vector<1x8x128xf32>
    %559 = vector.shape_cast %558 : vector<1x8x128xf32> to vector<8x128xf32>
    %560 = vector.shape_cast %556 : vector<8x128xf32> to vector<1x8x128xf32>
    tpu.vector_store %arg15[%557, %c0_143, %c0_144], %560 {strides = array<i32>} : memref<8x8x128xf32, #tpu.memory_space<vmem>>, vector<1x8x128xf32>,
    %cst_145 = arith.constant dense<0xFF800000> : vector<8xf32>
    %561 = vector.multi_reduction <maximumf>, %556, %cst_145 [1] : vector<8x128xf32> to vector<8xf32>
    %562 = vector.shape_cast %561 : vector<8xf32> to vector<8x1xf32>
    %563 = tpu.iota {dimensions = array<i32: 1>} : vector<8x128xi32>
    %564 = vector.broadcast %562 : vector<8x1xf32> to vector<8x128xf32>
    %565 = arith.cmpf oeq, %556, %564 : vector<8x128xf32>
    %c128_i32_146 = arith.constant 128 : i32
    %566 = vector.broadcast %c128_i32_146 : i32 to vector<8x128xi32>
    %567 = arith.select %565, %563, %566 : vector<8x128xi1>, vector<8x128xi32>
    %cst_147 = arith.constant dense<2147483647> : vector<8xi32>
    %568 = vector.multi_reduction <minsi>, %567, %cst_147 [1] : vector<8x128xi32> to vector<8xi32>
    %569 = vector.shape_cast %568 : vector<8xi32> to vector<8x1xi32>
    %570 = vector.broadcast %569 : vector<8x1xi32> to vector<8x128xi32>
    %571 = arith.cmpi eq, %563, %570 : vector<8x128xi32>
    %572 = arith.extui %571 : vector<8x128xi1> to vector<8x128xi32>
    %573 = arith.sitofp %572 : vector<8x128xi32> to vector<8x128xf32>
    %574 = arith.truncf %573 : vector<8x128xf32> to vector<8x128xbf16>
    %cst_148 = arith.constant dense<0.000000e+00> : vector<8x96xf32>
    %575 = tpu.matmul %574, %1, %cst_148 {dimension_numbers = #tpu.dot_dimension_numbers<[1], [0], [0], [1], [0, 0, 1, 1], [], []>} : vector<8x128xbf16>, vector<128x96xbf16>, vector<8x96xf32> -> vector<8x96xf32>
    %c6_i32_149 = arith.constant 6 : i32
    %576 = arith.index_cast %c6_i32_149 : i32 to index
    %577 = memref.load %arg2[%576] : memref<8xi32, #tpu.memory_space<smem>>
    %c0_i32_150 = arith.constant 0 : i32
    %578 = arith.cmpi sgt, %577, %c0_i32_150 : i32
    %579 = arith.index_cast %c6_i32_149 : i32 to index
    %c0_151 = arith.constant 0 : index
    %c0_152 = arith.constant 0 : index
    %580 = vector.load %arg17[%579, %c0_151, %c0_152] : memref<8x8x96xf32, #tpu.memory_space<vmem>>, vector<1x8x96xf32>
    %581 = vector.shape_cast %580 : vector<1x8x96xf32> to vector<8x96xf32>
    %582 = arith.select %578, %581, %575 : vector<8x96xf32>
    %583 = arith.truncf %552 : vector<8x32xf32> to vector<8x32xbf16>
    %cst_153 = arith.constant dense<0.000000e+00> : vector<8x96xf32>
    %584 = tpu.matmul %583, %3, %cst_153 {dimension_numbers = #tpu.dot_dimension_numbers<[1], [0], [0], [1], [0, 0, 1, 1], [], []>} : vector<8x32xbf16>, vector<32x96xbf16>, vector<8x96xf32> -> vector<8x96xf32>
    %585 = vector.extract_strided_slice %582 {offsets = [0, 0], sizes = [8, 64], strides = [1, 1]} : vector<8x96xf32> to vector<8x64xf32>
    %586 = vector.extract_strided_slice %584 {offsets = [0, 0], sizes = [8, 64], strides = [1, 1]} : vector<8x96xf32> to vector<8x64xf32>
    %587 = arith.addf %585, %586 : vector<8x64xf32>
    %588 = vector.broadcast %7 : vector<1x64xf32> to vector<8x64xf32>
    %589 = arith.addf %587, %588 : vector<8x64xf32>
    %590 = arith.negf %589 : vector<8x64xf32>
    %591 = math.exp %590 : vector<8x64xf32>
    %cst_154 = arith.constant 1.000000e+00 : f32
    %592 = vector.broadcast %cst_154 : f32 to vector<8x64xf32>
    %593 = arith.addf %592, %591 : vector<8x64xf32>
    %594 = arith.divf %592, %593 : vector<8x64xf32>
    %595 = vector.extract_strided_slice %594 {offsets = [0, 0], sizes = [8, 32], strides = [1, 1]} : vector<8x64xf32> to vector<8x32xf32>
    %596 = vector.extract_strided_slice %594 {offsets = [0, 32], sizes = [8, 32], strides = [1, 1]} : vector<8x64xf32> to vector<8x32xf32>
    %597 = vector.extract_strided_slice %582 {offsets = [0, 64], sizes = [8, 32], strides = [1, 1]} : vector<8x96xf32> to vector<8x32xf32>
    %598 = vector.broadcast %8 : vector<1x32xf32> to vector<8x32xf32>
    %599 = arith.addf %597, %598 : vector<8x32xf32>
    %600 = vector.extract_strided_slice %584 {offsets = [0, 64], sizes = [8, 32], strides = [1, 1]} : vector<8x96xf32> to vector<8x32xf32>
    %601 = vector.broadcast %9 : vector<1x32xf32> to vector<8x32xf32>
    %602 = arith.addf %600, %601 : vector<8x32xf32>
    %603 = arith.mulf %595, %602 : vector<8x32xf32>
    %604 = arith.addf %599, %603 : vector<8x32xf32>
    %605 = math.tanh %604 : vector<8x32xf32>
    %cst_155 = arith.constant 1.000000e+00 : f32
    %606 = vector.broadcast %cst_155 : f32 to vector<8x32xf32>
    %607 = arith.subf %606, %596 : vector<8x32xf32>
    %608 = arith.mulf %607, %605 : vector<8x32xf32>
    %609 = arith.mulf %596, %552 : vector<8x32xf32>
    %610 = arith.addf %608, %609 : vector<8x32xf32>
    %611 = arith.truncf %610 : vector<8x32xf32> to vector<8x32xbf16>
    %cst_156 = arith.constant dense<0.000000e+00> : vector<8x128xf32>
    %612 = tpu.matmul %611, %10, %cst_156 {dimension_numbers = #tpu.dot_dimension_numbers<[1], [0], [0], [1], [0, 0, 1, 1], [], []>} : vector<8x32xbf16>, vector<32x128xbf16>, vector<8x128xf32> -> vector<8x128xf32>
    %613 = vector.broadcast %11 : vector<1x128xf32> to vector<8x128xf32>
    %614 = arith.addf %612, %613 : vector<8x128xf32>
    %615 = arith.index_cast %c6_i32_149 : i32 to index
    %c0_157 = arith.constant 0 : index
    %c0_158 = arith.constant 0 : index
    %616 = vector.load %arg15[%615, %c0_157, %c0_158] : memref<8x8x128xf32, #tpu.memory_space<vmem>>, vector<1x8x128xf32>
    %617 = vector.shape_cast %616 : vector<1x8x128xf32> to vector<8x128xf32>
    %618 = vector.shape_cast %614 : vector<8x128xf32> to vector<1x8x128xf32>
    tpu.vector_store %arg15[%615, %c0_157, %c0_158], %618 {strides = array<i32>} : memref<8x8x128xf32, #tpu.memory_space<vmem>>, vector<1x8x128xf32>,
    %cst_159 = arith.constant dense<0xFF800000> : vector<8xf32>
    %619 = vector.multi_reduction <maximumf>, %614, %cst_159 [1] : vector<8x128xf32> to vector<8xf32>
    %620 = vector.shape_cast %619 : vector<8xf32> to vector<8x1xf32>
    %621 = tpu.iota {dimensions = array<i32: 1>} : vector<8x128xi32>
    %622 = vector.broadcast %620 : vector<8x1xf32> to vector<8x128xf32>
    %623 = arith.cmpf oeq, %614, %622 : vector<8x128xf32>
    %c128_i32_160 = arith.constant 128 : i32
    %624 = vector.broadcast %c128_i32_160 : i32 to vector<8x128xi32>
    %625 = arith.select %623, %621, %624 : vector<8x128xi1>, vector<8x128xi32>
    %cst_161 = arith.constant dense<2147483647> : vector<8xi32>
    %626 = vector.multi_reduction <minsi>, %625, %cst_161 [1] : vector<8x128xi32> to vector<8xi32>
    %627 = vector.shape_cast %626 : vector<8xi32> to vector<8x1xi32>
    %628 = vector.broadcast %627 : vector<8x1xi32> to vector<8x128xi32>
    %629 = arith.cmpi eq, %621, %628 : vector<8x128xi32>
    %630 = arith.extui %629 : vector<8x128xi1> to vector<8x128xi32>
    %631 = arith.sitofp %630 : vector<8x128xi32> to vector<8x128xf32>
    %632 = arith.truncf %631 : vector<8x128xf32> to vector<8x128xbf16>
    %cst_162 = arith.constant dense<0.000000e+00> : vector<8x96xf32>
    %633 = tpu.matmul %632, %1, %cst_162 {dimension_numbers = #tpu.dot_dimension_numbers<[1], [0], [0], [1], [0, 0, 1, 1], [], []>} : vector<8x128xbf16>, vector<128x96xbf16>, vector<8x96xf32> -> vector<8x96xf32>
    %c7_i32_163 = arith.constant 7 : i32
    %634 = arith.index_cast %c7_i32_163 : i32 to index
    %635 = memref.load %arg2[%634] : memref<8xi32, #tpu.memory_space<smem>>
    %c0_i32_164 = arith.constant 0 : i32
    %636 = arith.cmpi sgt, %635, %c0_i32_164 : i32
    %637 = arith.index_cast %c7_i32_163 : i32 to index
    %c0_165 = arith.constant 0 : index
    %c0_166 = arith.constant 0 : index
    %638 = vector.load %arg17[%637, %c0_165, %c0_166] : memref<8x8x96xf32, #tpu.memory_space<vmem>>, vector<1x8x96xf32>
    %639 = vector.shape_cast %638 : vector<1x8x96xf32> to vector<8x96xf32>
    %640 = arith.select %636, %639, %633 : vector<8x96xf32>
    %641 = arith.truncf %610 : vector<8x32xf32> to vector<8x32xbf16>
    %cst_167 = arith.constant dense<0.000000e+00> : vector<8x96xf32>
    %642 = tpu.matmul %641, %3, %cst_167 {dimension_numbers = #tpu.dot_dimension_numbers<[1], [0], [0], [1], [0, 0, 1, 1], [], []>} : vector<8x32xbf16>, vector<32x96xbf16>, vector<8x96xf32> -> vector<8x96xf32>
    %643 = vector.extract_strided_slice %640 {offsets = [0, 0], sizes = [8, 64], strides = [1, 1]} : vector<8x96xf32> to vector<8x64xf32>
    %644 = vector.extract_strided_slice %642 {offsets = [0, 0], sizes = [8, 64], strides = [1, 1]} : vector<8x96xf32> to vector<8x64xf32>
    %645 = arith.addf %643, %644 : vector<8x64xf32>
    %646 = vector.broadcast %7 : vector<1x64xf32> to vector<8x64xf32>
    %647 = arith.addf %645, %646 : vector<8x64xf32>
    %648 = arith.negf %647 : vector<8x64xf32>
    %649 = math.exp %648 : vector<8x64xf32>
    %cst_168 = arith.constant 1.000000e+00 : f32
    %650 = vector.broadcast %cst_168 : f32 to vector<8x64xf32>
    %651 = arith.addf %650, %649 : vector<8x64xf32>
    %652 = arith.divf %650, %651 : vector<8x64xf32>
    %653 = vector.extract_strided_slice %652 {offsets = [0, 0], sizes = [8, 32], strides = [1, 1]} : vector<8x64xf32> to vector<8x32xf32>
    %654 = vector.extract_strided_slice %652 {offsets = [0, 32], sizes = [8, 32], strides = [1, 1]} : vector<8x64xf32> to vector<8x32xf32>
    %655 = vector.extract_strided_slice %640 {offsets = [0, 64], sizes = [8, 32], strides = [1, 1]} : vector<8x96xf32> to vector<8x32xf32>
    %656 = vector.broadcast %8 : vector<1x32xf32> to vector<8x32xf32>
    %657 = arith.addf %655, %656 : vector<8x32xf32>
    %658 = vector.extract_strided_slice %642 {offsets = [0, 64], sizes = [8, 32], strides = [1, 1]} : vector<8x96xf32> to vector<8x32xf32>
    %659 = vector.broadcast %9 : vector<1x32xf32> to vector<8x32xf32>
    %660 = arith.addf %658, %659 : vector<8x32xf32>
    %661 = arith.mulf %653, %660 : vector<8x32xf32>
    %662 = arith.addf %657, %661 : vector<8x32xf32>
    %663 = math.tanh %662 : vector<8x32xf32>
    %cst_169 = arith.constant 1.000000e+00 : f32
    %664 = vector.broadcast %cst_169 : f32 to vector<8x32xf32>
    %665 = arith.subf %664, %654 : vector<8x32xf32>
    %666 = arith.mulf %665, %663 : vector<8x32xf32>
    %667 = arith.mulf %654, %610 : vector<8x32xf32>
    %668 = arith.addf %666, %667 : vector<8x32xf32>
    %669 = arith.truncf %668 : vector<8x32xf32> to vector<8x32xbf16>
    %cst_170 = arith.constant dense<0.000000e+00> : vector<8x128xf32>
    %670 = tpu.matmul %669, %10, %cst_170 {dimension_numbers = #tpu.dot_dimension_numbers<[1], [0], [0], [1], [0, 0, 1, 1], [], []>} : vector<8x32xbf16>, vector<32x128xbf16>, vector<8x128xf32> -> vector<8x128xf32>
    %671 = vector.broadcast %11 : vector<1x128xf32> to vector<8x128xf32>
    %672 = arith.addf %670, %671 : vector<8x128xf32>
    %673 = arith.index_cast %c7_i32_163 : i32 to index
    %c0_171 = arith.constant 0 : index
    %c0_172 = arith.constant 0 : index
    %674 = vector.load %arg15[%673, %c0_171, %c0_172] : memref<8x8x128xf32, #tpu.memory_space<vmem>>, vector<1x8x128xf32>
    %675 = vector.shape_cast %674 : vector<1x8x128xf32> to vector<8x128xf32>
    %676 = vector.shape_cast %672 : vector<8x128xf32> to vector<1x8x128xf32>
    tpu.vector_store %arg15[%673, %c0_171, %c0_172], %676 {strides = array<i32>} : memref<8x8x128xf32, #tpu.memory_space<vmem>>, vector<1x8x128xf32>,
    %cst_173 = arith.constant dense<0xFF800000> : vector<8xf32>
    %677 = vector.multi_reduction <maximumf>, %672, %cst_173 [1] : vector<8x128xf32> to vector<8xf32>
    %678 = vector.shape_cast %677 : vector<8xf32> to vector<8x1xf32>
    %679 = tpu.iota {dimensions = array<i32: 1>} : vector<8x128xi32>
    %680 = vector.broadcast %678 : vector<8x1xf32> to vector<8x128xf32>
    %681 = arith.cmpf oeq, %672, %680 : vector<8x128xf32>
    %c128_i32_174 = arith.constant 128 : i32
    %682 = vector.broadcast %c128_i32_174 : i32 to vector<8x128xi32>
    %683 = arith.select %681, %679, %682 : vector<8x128xi1>, vector<8x128xi32>
    %cst_175 = arith.constant dense<2147483647> : vector<8xi32>
    %684 = vector.multi_reduction <minsi>, %683, %cst_175 [1] : vector<8x128xi32> to vector<8xi32>
    %685 = vector.shape_cast %684 : vector<8xi32> to vector<8x1xi32>
    %686 = vector.broadcast %685 : vector<8x1xi32> to vector<8x128xi32>
    %687 = arith.cmpi eq, %679, %686 : vector<8x128xi32>
    %688 = arith.extui %687 : vector<8x128xi1> to vector<8x128xi32>
    %689 = arith.sitofp %688 : vector<8x128xi32> to vector<8x128xf32>
    %690 = arith.truncf %689 : vector<8x128xf32> to vector<8x128xbf16>
    %cst_176 = arith.constant dense<0.000000e+00> : vector<8x96xf32>
    %691 = tpu.matmul %690, %1, %cst_176 {dimension_numbers = #tpu.dot_dimension_numbers<[1], [0], [0], [1], [0, 0, 1, 1], [], []>} : vector<8x128xbf16>, vector<128x96xbf16>, vector<8x96xf32> -> vector<8x96xf32>
    %c7_i32_177 = arith.constant 7 : i32
    return
  }
}

</mosaic_0001>

<bundles_post_ra>
// kernel: _lambda_.1
= control target key start
LH: loop header
LB: loop body
LE: loop exit
PB: predicated region body
PF: predicated region fallthrough
CT: control target
= control target key end

     0   :  { %20 = vsyncpa [#allocation5], 0  ;;  %s4055_s0 = inlined_call_operand.vmem [shape: s32[64,1], index: 0, kind: input, shape index: {}]   ;;  %s4056_s1 = inlined_call_operand.vmem [shape: s32[64,1], index: 1, kind: input, shape index: {}]   ;;  %s4057_s2 = inlined_call_operand.vmem [shape: s32[8], index: 2, kind: input, shape index: {}]   ;;  %s4058_s3 = inlined_call_operand.vmem [shape: bf16[128,96], index: 3, kind: input, shape index: {}]   ;;  %s4059_s4 = inlined_call_operand.vmem [shape: bf16[32,96], index: 4, kind: input, shape index: {}]   ;;  %s4060_s5 = inlined_call_operand.vmem [shape: f32[1,64], index: 5, kind: input, shape index: {}]   ;;  %s4061_s6 = inlined_call_operand.vmem [shape: f32[1,32], index: 6, kind: input, shape index: {}]   ;;  %s4062_s7 = inlined_call_operand.vmem [shape: f32[1,32], index: 7, kind: input, shape index: {}]   ;;  %s4063_s8 = inlined_call_operand.vmem [shape: bf16[128,96], index: 8, kind: input, shape index: {}]   ;;  %s4064_s9 = inlined_call_operand.vmem [shape: bf16[32,96], index: 9, kind: input, shape index: {}]   ;;  %s4065_s10 = inlined_call_operand.vmem [shape: f32[1,64], index: 10, kind: input, shape index: {}]   ;;  %s4066_s11 = inlined_call_operand.vmem [shape: f32[1,32], index: 11, kind: input, shape index: {}]   ;;  %s4067_s12 = inlined_call_operand.vmem [shape: f32[1,32], index: 12, kind: input, shape index: {}]   ;;  %s4068_s13 = inlined_call_operand.vmem [shape: bf16[32,128], index: 13, kind: input, shape index: {}]   ;;  %s4069_s14 = inlined_call_operand.vmem [shape: f32[1,128], index: 14, kind: input, shape index: {}]   ;;  %s4070_s15 = inlined_call_operand.vmem [shape: f32[8,8,128], index: 15, kind: output, shape index: {}]  }
   0x1   :  { %s31_s20 = sshll.u32 %s4057_s2, 4  ;;  %s32_s20 = int_to_ptr.vmem [resolvable:$true] %s31_s20 }
   0x2   :  { %s3208_s21 = scalar_lea.vmem %s32_s20, 16  ;;  %p3213_p1 = scmp.lt.s32.totalorder %s32_s20, %s32_s20 }
   0x3   :  { %p3209_p0 = scmp.ne.s32.totalorder %s32_s20, %s3208_s21  ;;  %p3214_p2 = scmp.lt.s32.totalorder %s3208_s21, %s3208_s21 }
   0x5   :  { %p3215_p3 = por %p3214_p2, %p3213_p1 }
   0x7   :  { %p3216_p4 = pnand %p3215_p3, %p3209_p0 }
   0x9   :  { %3219 = shalt.err (!%p3216_p4)
}
   0xa   :  { %s3222_s22 = smov [#allocation4]  }
   0xb   :  { %34 = dma.vmem_to_smem %s32_s20, 16, %s3222_s22, [#allocation5]  }
   0xc   :  { %3220 = dma.done.wait [#allocation5], 16  }
   0xd   :  { %3221 = vsyncadd [#allocation5], 4294967280 }
   0xe   :  { %62 = sfence }
   0xf   :  { %v119_v0 = vld [vmem:[%s4055_s0 + $0x10] sm:$0xff]  ;;  %v117_v1 = vld [vmem:[%s4055_s0] sm:$0xff]  ;;  %v3223_v2 = vmov 0   ;;  %v120_v3 = vld [vmem:[%s4055_s0 + $0x18] sm:$0xff]  ;;  %v3224_v12 = vmov 0.0   ;;  %s3225_s24 = smov 64   ;;  %v115_v20 = vlaneseq }
  0x10   :  { %3078 = vset.pattern.permute.xlu1 %v3223_v2  ;;  %3077 = vset.pattern.permute.xlu0 %v3223_v2  ;;  %v118_v4 = vld [vmem:[%s4055_s0 + $0x8] sm:$0xff]  ;;  %v3079_v5 = vld [vmem:[%s4058_s3] sm:$0xff]   ;;  %v3081_v9 = vld [vmem:[%s4058_s3 + $0x10] sm:$0xff]   ;;  %1134 = vst [vmem:[%s4070_s15] sm:$0xff] %v3224_v12  ;;  %v3226_v27 = vmov 1.0|1.0   ;;  %vm3227_vm12 = vmmov 0  }
  0x11   :  { %132 = vperm.xlu1 %3078, %v119_v0   ;;  %126 = vperm.xlu0 %3077, %v117_v1   ;;  %v3080_v6 = vld [vmem:[%s4058_s3 + $0x8] sm:$0xff]   ;;  %v121_v8 = vld [vmem:[%s4055_s0 + $0x20] sm:$0xff]  ;;  %v124_v10 = vld [vmem:[%s4055_s0 + $0x38] sm:$0xff]  ;;  %v3375_v23 = vand.u32 127, %v115_v20  ;;  %vm290_vm13 = vcmask 785408   ;;  %s3228_s16 = smov 96  }
  0x12   :  { %2726 = vmatprep.subr.bf16.mxu0 %v3079_v5  ;;  %v122_v7 = vld [vmem:[%s4055_s0 + $0x28] sm:$0xff]  ;;  %v123_v11 = vld [vmem:[%s4055_s0 + $0x30] sm:$0xff]  ;;  %v3082_v13 = vld [vmem:[%s4058_s3 + $0x18] sm:$0xff]   ;;  %s2537_s23 = sld [smem:[#allocation4 + $0x2]]  ;;  %s2545_s0 = sld [smem:[#allocation4 + $0x3]] }
  0x13   :  { %2727 = vmatpush3.bf16.msra.mxu0 %v3079_v5  ;;  %v3083_v14 = vld [vmem:[%s4058_s3 + $0x20] sm:$0xff]   ;;  %v3084_v15 = vld [vmem:[%s4058_s3 + $0x28] sm:$0xff]   ;;  %v3085_v16 = vld [vmem:[%s4058_s3 + $0x30] sm:$0xff]   ;;  %s2561_s26 = sld [smem:[#allocation4 + $0x5]] }
  0x14   :  { %2728 = vmatprep.subr.bf16.mxu0 %v3080_v6  ;;  %v2506_v17 = vld [vmem:[%s4062_s7] ss:$0 sm:$0xff]  ;;  %v3086_v18 = vld [vmem:[%s4058_s3 + $0x38] sm:$0xff]   ;;  %v3394_v30 = vld [vmem:[%s4059_s4 + $0x8] sm:$0xff]  }
  0x15   :  { %135 = vperm.xlu1 %3078, %v120_v3   ;;  %129 = vperm.xlu0 %3077, %v118_v4   ;;  %v2505_v19 = vld [vmem:[%s4061_s6] ss:$0 sm:$0xff]  ;;  %v301_v58 = vld [vmem:[%s4056_s1 + $0x10] sm:$0xff]  ;;  %v3451_v62 = vld [vmem:[%s4063_s8 + $0x8] sm:$0xff]  }
  0x16   :  { %v3384_v26 = vld [vmem:[%s4059_s4] sm:$0xff]   ;;  %v305_v60 = vld [vmem:[%s4056_s1 + $0x30] sm:$0xff]  ;;  %v3470_v4 = vld [vmem:[%s4063_s8 + $0x18] sm:$0xff]   ;;  %s3658_s4 = sld [smem:[#allocation4 + $0x1]] }
  0x17   :  { %2729 = vmatpush3.bf16.msra.mxu0 %v3080_v6  ;;  %v3427_v49 = vld [vmem:[%s4060_s5] ss:$0 sm:$0xff]  ;;  %v3459_v63 = vld [vmem:[%s4063_s8 + $0x10] sm:$0xff]   ;;  %v3482_v6 = vld [vmem:[%s4063_s8 + $0x28] sm:$0xff]   ;;  %s2577_s5 = sld [smem:[#allocation4 + $0x7]] }
  0x18   :  { %2730 = vmatprep.subr.bf16.mxu0 %v3081_v9  ;;  %v299_v57 = vld [vmem:[%s4056_s1] sm:$0xff]  ;;  %p1383_p6 = scmp.gt.s32.totalorder %s2537_s23, 0  ;;  %p1571_p7 = scmp.gt.s32.totalorder %s2545_s0, 0 }
  0x19   :  { %141 = vperm.xlu1 %3078, %v122_v7   ;;  %138 = vperm.xlu0 %3077, %v121_v8   ;;  %v303_v59 = vld [vmem:[%s4056_s1 + $0x20] sm:$0xff]  ;;  %v3490_v7 = vld [vmem:[%s4063_s8 + $0x30] sm:$0xff]   ;;  %p1947_p9 = scmp.gt.s32.totalorder %s2561_s26, 0 }
  0x1a   :  { %v3446_v61 = vld [vmem:[%s4063_s8] sm:$0xff]   ;;  %s1386_s25 = scalar_select %p1383_p6, 1, 0 }
  0x1b   :  { %2731 = vmatpush3.bf16.msra.mxu0 %v3081_v9  ;;  %2750 = vmatprep.subr.bf16.mxu1 %v3446_v61  ;;  %v3477_v5 = vld [vmem:[%s4063_s8 + $0x20] sm:$0xff]   ;;  %v300_v9 = vld [vmem:[%s4056_s1 + $0x8] sm:$0xff]  ;;  %s1574_s19 = scalar_select %p1571_p7, 1, 0 }
  0x1c   :  { %2732 = vmatprep.subr.bf16.mxu0 %v3082_v13  ;;  %2751 = vmatpush3.bf16.msra.mxu1 %v3446_v61  ;;  %p1136_p5 = scmp.gt.s32.totalorder %s3658_s4, 0 }
  0x1d   :  { %147 = vperm.xlu1 %3078, %v124_v10   ;;  %144 = vperm.xlu0 %3077, %v123_v11   ;;  %v3502_v10 = vld [vmem:[%s4063_s8 + $0x38] sm:$0xff]   ;;  %s1950_s2 = scalar_select %p1947_p9, 1, 0 }
  0x1e   :  { %2752 = vmatprep.subr.bf16.mxu1 %v3451_v62  ;;  %v302_v11 = vld [vmem:[%s4056_s1 + $0x18] sm:$0xff]  ;;  %s3100_s29 = scalar_select %p1136_p5, 255, 0 }
  0x1f   :  { %2733 = vmatpush3.bf16.msra.mxu0 %v3082_v13  ;;  %v304_v13 = vld [vmem:[%s4056_s1 + $0x28] sm:$0xff]  ;;  %p2323_p11 = scmp.gt.s32.totalorder %s2577_s5, 0 }
  0x20   :  { %2734 = vmatprep.subr.bf16.mxu0 %v3083_v14  ;;  %2753 = vmatpush3.bf16.msra.mxu1 %v3451_v62 }
  0x21   :  { %565 = vrot.lane.b32.xlu0 %v2506_v17, %s3225_s24  ;;  %2754 = vmatprep.subr.bf16.mxu1 %v3459_v63  ;;  %s2326_s18 = scalar_select %p2323_p11, 1, 0 }
  0x23   :  { %2735 = vmatpush3.bf16.msra.mxu0 %v3083_v14  ;;  %v306_v14 = vld [vmem:[%s4056_s1 + $0x38] sm:$0xff] }
  0x24   :  { %2736 = vmatprep.subr.bf16.mxu0 %v3084_v15  ;;  %2755 = vmatpush3.bf16.msra.mxu1 %v3459_v63 }
  0x25   :  { %556 = vrot.lane.b32.xlu0 %v2505_v19, %s3225_s24  ;;  %2756 = vmatprep.subr.bf16.mxu1 %v3470_v4 }
  0x27   :  { %2737 = vmatpush3.bf16.msra.mxu0 %v3084_v15 }
  0x28   :  { %2738 = vmatprep.subr.bf16.mxu0 %v3085_v16  ;;  %2757 = vmatpush3.bf16.msra.mxu1 %v3470_v4 }
  0x29   :  { %2758 = vmatprep.subr.bf16.mxu1 %v3477_v5 }
  0x2b   :  { %2739 = vmatpush3.bf16.msra.mxu0 %v3085_v16 }
  0x2c   :  { %2740 = vmatprep.subr.bf16.mxu0 %v3086_v18  ;;  %2759 = vmatpush3.bf16.msra.mxu1 %v3477_v5 }
  0x2d   :  { %2760 = vmatprep.subr.bf16.mxu1 %v3482_v6 }
  0x2f   :  { %2741 = vmatpush3.bf16.msra.mxu0 %v3086_v18 }
  0x30   :  { %2774 = vmatprep.subr.bf16.mxu0 %v3224_v12  ;;  %2761 = vmatpush3.bf16.msra.mxu1 %v3482_v6 }
  0x31   :  { %2762 = vmatprep.subr.bf16.mxu1 %v3490_v7 }
  0x34   :  { %2763 = vmatpush3.bf16.msra.mxu1 %v3490_v7 }
  0x35   :  { %2764 = vmatprep.subr.bf16.mxu1 %v3502_v10 }
  0x38   :  { %2765 = vmatpush3.bf16.msra.mxu1 %v3502_v10 }
  0x39   :  { %2782 = vmatprep.subr.bf16.mxu1 %v3224_v12 }
  0x90   :  { %v133_v21 = vpop.permute.xlu1 %132  ;;  %v127_v22 = vpop.permute.xlu0 %126 }
  0x91   :  { %vm151_vm0 = vcmp.eq.s32.totalorder %v3375_v23, %v133_v21  ;;  %vm149_vm3 = vcmp.eq.s32.totalorder %v3375_v23, %v127_v22 }
  0x94   :  { %v136_v24 = vpop.permute.xlu1 %135  ;;  %v130_v25 = vpop.permute.xlu0 %129 }
  0x95   :  { %vm152_vm1 = vcmp.eq.s32.totalorder %v3375_v23, %v136_v24  ;;  %vm150_vm2 = vcmp.eq.s32.totalorder %v3375_v23, %v130_v25 }
  0x96   :  { %vm2471_vm4 = vmpackc.low %vm152_vm1, %vm151_vm0 }
  0x97   :  { %vm2469_vm5 = vmpackc.low %vm150_vm2, %vm149_vm3 }
  0x98   :  { %2742 = vmatprep.mubr.msk.bf16.mxu0 %vm2469_vm5, %v3226_v27  ;;  %v142_v28 = vpop.permute.xlu1 %141  ;;  %v139_v29 = vpop.permute.xlu0 %138 }
  0x99   :  { %vm154_vm6 = vcmp.eq.s32.totalorder %v3375_v23, %v142_v28  ;;  %vm153_vm7 = vcmp.eq.s32.totalorder %v3375_v23, %v139_v29  ;;  %2743 = vmatmul.mubr.msk.bf16.vlgmr.msra.gmra.mrb[0].mxu0 %vm2471_vm4, %v3226_v27 }
  0x9a   :  { %vm2473_vm8 = vmpackc.low %vm154_vm6, %vm153_vm7  ;;  %2775 = vmatpush3.bf16.msra.mxu0 %v3384_v26 }
  0x9b   :  { %2746 = vmatprep.mubr.msk.bf16.mxu0 %vm2473_vm8, %v3226_v27  ;;  %2776 = vmatprep.subr.bf16.mxu0 %v3224_v12 }
  0x9c   :  { %v148_v31 = vpop.permute.xlu1 %147  ;;  %v145_v32 = vpop.permute.xlu0 %144 }
  0x9d   :  { %vm156_vm9 = vcmp.eq.s32.totalorder %v3375_v23, %v148_v31  ;;  %vm155_vm10 = vcmp.eq.s32.totalorder %v3375_v23, %v145_v32 }
  0x9e   :  { %vm2475_vm11 = vmpackc.low %vm156_vm9, %vm155_vm10  ;;  %2777 = vmatpush3.bf16.msra.mxu0 %v3394_v30  ;;  %vm493_vm10 = vcmask 261120  }
  0x9f   :  { %2790 = vmatprep.subr.bf16.mxu0 %v3224_v12 }
  0xa0   :  { %v3420_v41 = vpop.permute.xlu0 %565 }
  0xa1   :  { %2747 = vmatmul.mubr.msk.bf16.gmra.mrb[4].mxu0 %vm2475_vm11, %v3226_v27 }
  0xa2   :  { %2778 = vmatprep.mubr.msk.bf16.mxu0 %vm3227_vm12, %v3224_v12 }
  0xa4   :  { %v3464_v0 = vpop.permute.xlu0 %556 }
  0xa9   :  { %2779 = vmatmul.mubr.bf16.vlgmr.msra.gmra.mrb[8].mxu0 %v3223_v2 }
  0xaa   :  { %2791 = vmatpush3.bf16.msra.mxu0 %v3384_v26  ;;  %2794 = vmatprep.mubr.msk.bf16.mxu0 %vm3227_vm12, %v3224_v12 }
  0xab   :  { %2792 = vmatprep.subr.bf16.mxu0 %v3224_v12 }
  0xae   :  { %2793 = vmatpush3.bf16.msra.mxu0 %v3394_v30 }
  0xaf   :  { %2806 = vmatprep.subr.bf16.mxu0 %v3224_v12 }
 0x16c   :  { %v2744_v33 = vpop.f32.mrb[0].mxu0 }
 0x16d   :  { %293 = vst.msk [vmem:[#allocation2 + $0x10] sm:$0xff] %vm290_vm13, %v2744_v33  ;;  %v259_v34 = vpop.f32.mrb[1].mxu0 }
 0x16e   :  { %291 = vst.msk [vmem:[#allocation2] sm:$0xff] %vm290_vm13, %v259_v34  ;;  %v2745_v35 = vpop.f32.mrb[2].mxu0 }
 0x16f   :  { %294 = vst.msk [vmem:[#allocation2 + $0x18] sm:$0xff] %vm290_vm13, %v2745_v35  ;;  %v262_v36 = vpop.f32.mrb[3].mxu0 }
 0x170   :  { %292 = vst.msk [vmem:[#allocation2 + $0x8] sm:$0xff] %vm290_vm13, %v262_v36 }
 0x174   :  { %v2748_v37 = vpop.f32.mrb[4].mxu0 }
 0x175   :  { %297 = vst.msk [vmem:[#allocation2 + $0x30] sm:$0xff] %vm290_vm13, %v2748_v37  ;;  %v275_v38 = vpop.f32.mrb[5].mxu0  ;;  %v480_v47 = vld [vmem:[#allocation2] sm:$0xff] }
 0x176   :  { %295 = vst.msk [vmem:[#allocation2 + $0x20] sm:$0xff] %vm290_vm13, %v275_v38  ;;  %v2749_v39 = vpop.f32.mrb[6].mxu0  ;;  %v559_v1 = vadd.f32 %v3464_v0, %v480_v47 }
 0x177   :  { %298 = vst.msk [vmem:[#allocation2 + $0x38] sm:$0xff] %vm290_vm13, %v2749_v39  ;;  %v278_v40 = vpop.f32.mrb[7].mxu0 }
 0x178   :  { %296 = vst.msk [vmem:[#allocation2 + $0x28] sm:$0xff] %vm290_vm13, %v278_v40 }
 0x17c   :  { %v531_v42 = vpop.f32.mrb[8].mxu0 }
 0x17d   :  { %v568_v43 = vadd.f32 %v3420_v41, %v531_v42  ;;  %v2780_v44 = vpop.f32.mrb[9].mxu0  ;;  %v537_v48 = vadd.f32 %v531_v42, %v480_v47 }
 0x17e   :  { %v534_v45 = vpop.f32.mrb[10].mxu0 }
 0x17f   :  { %570 = vrot.lane.b32.xlu1 %v568_v43, %s3225_s24  ;;  %v2781_v46 = vpop.f32.mrb[11].mxu0  ;;  %v544_v50 = vadd.f32 %v3427_v49, %v537_v48  ;;  %v589_v48 = vld [vmem:[#allocation2 + $0x8] sm:$0xff] }
 0x181   :  { %v2504_v51 = vmul.f32 -1.442695, %v544_v50 }
 0x183   :  { %3104 = vpow2.f32 %v2504_v51 }
 0x18d   :  { %v3105_v52 = vpop.eup %3104 }
 0x18e   :  { %v548_v53 = vadd.f32 1.0, %v3105_v52 }
 0x190   :  { %3106 = vrcp.f32 %v548_v53 }
 0x19a   :  { %v3107_v54 = vpop.eup %3106 }
 0x19b   :  { %v580_v15 = vsub.f32 1.0, %v3107_v54  ;;  %v586_v17 = vmul.f32 0.0, %v3107_v54 }
 0x1f1   :  { %v571_v55 = vpop.permute.xlu1 %570 }
 0x1f2   :  { %v573_v56 = vmul.f32 %v3107_v54, %v571_v55 }
 0x1f4   :  { %575 = vrot.lane.b32.xlu1 %v573_v56, %s3225_s24 }
 0x1f8   :  { %308 = vperm.xlu1 %3078, %v299_v57  }
 0x1fc   :  { %314 = vperm.xlu1 %3078, %v301_v58   ;;  %v645_v58 = vadd.f32 %v589_v48, %v3464_v0 }
 0x200   :  { %320 = vperm.xlu1 %3078, %v303_v59  }
 0x204   :  { %326 = vperm.xlu1 %3078, %v305_v60  }
 0x266   :  { %v576_v2 = vpop.permute.xlu1 %575 }
 0x267   :  { %v578_v3 = vadd.f32 %v576_v2, %v559_v1 }
 0x269   :  { %3108 = vtanh.f32 %v578_v3 }
 0x273   :  { %v3109_v8 = vpop.eup %3108 }
 0x274   :  { %582 = vrot.lane.b32.xlu0 %v3109_v8, %s3228_s16 }
 0x277   :  { %v309_v21 = vpop.permute.xlu1 %308 }
 0x278   :  { %311 = vperm.xlu0 %3077, %v300_v9   ;;  %vm331_vm14 = vcmp.eq.s32.totalorder %v3375_v23, %v309_v21 }
 0x27b   :  { %v315_v22 = vpop.permute.xlu1 %314 }
 0x27c   :  { %317 = vperm.xlu0 %3077, %v302_v11   ;;  %vm333_vm1 = vcmp.eq.s32.totalorder %v3375_v23, %v315_v22 }
 0x27f   :  { %v321_v25 = vpop.permute.xlu1 %320 }
 0x280   :  { %323 = vperm.xlu0 %3077, %v304_v13   ;;  %vm335_vm4 = vcmp.eq.s32.totalorder %v3375_v23, %v321_v25 }
 0x283   :  { %v327_v31 = vpop.permute.xlu1 %326 }
 0x284   :  { %329 = vperm.xlu0 %3077, %v306_v14   ;;  %vm337_vm7 = vcmp.eq.s32.totalorder %v3375_v23, %v327_v31 }
 0x2e6   :  { %v583_v16 = vpop.permute.xlu0 %582 }
 0x2e7   :  { %v585_v18 = vmul.f32 %v583_v16, %v580_v15 }
 0x2e9   :  { %v3516_v19 = vadd.f32 %v586_v17, %v585_v18 }
 0x2eb   :  { %v590_v20 = vpack.c.bf16 %v3516_v19, %v3516_v19 }
 0x2ed   :  { %592 = vrot.lane.b32.xlu1 %v590_v20, %s3228_s16  ;;  %v667_v20 = vld [vmem:[#allocation2 + $0x10] sm:$0xff] }
 0x2f7   :  { %v312_v24 = vpop.permute.xlu0 %311 }
 0x2f8   :  { %vm332_vm15 = vcmp.eq.s32.totalorder %v3375_v23, %v312_v24 }
 0x2f9   :  { %vm2493_vm0 = vmpackc.low %vm332_vm15, %vm331_vm14 }
 0x2fa   :  { %2766 = vmatprep.mubr.msk.bf16.mxu1 %vm2493_vm0, %v3226_v27 }
 0x2fb   :  { %v318_v28 = vpop.permute.xlu0 %317 }
 0x2fc   :  { %vm334_vm2 = vcmp.eq.s32.totalorder %v3375_v23, %v318_v28 }
 0x2fd   :  { %vm2495_vm3 = vmpackc.low %vm334_vm2, %vm333_vm1 }
 0x2fe   :  { %2767 = vmatmul.mubr.msk.bf16.vlgmr.msra.gmra.mrb[0].mxu1 %vm2495_vm3, %v3226_v27 }
 0x2ff   :  { %v324_v29 = vpop.permute.xlu0 %323  ;;  %2783 = vmatpush3.bf16.msra.mxu1 %v3384_v26 }
 0x300   :  { %vm336_vm5 = vcmp.eq.s32.totalorder %v3375_v23, %v324_v29  ;;  %2784 = vmatprep.subr.bf16.mxu1 %v3224_v12 }
 0x301   :  { %vm2497_vm6 = vmpackc.low %vm336_vm5, %vm335_vm4 }
 0x302   :  { %2770 = vmatprep.mubr.msk.bf16.mxu1 %vm2497_vm6, %v3226_v27 }
 0x303   :  { %v330_v32 = vpop.permute.xlu0 %329  ;;  %2785 = vmatpush3.bf16.msra.mxu1 %v3394_v30 }
 0x304   :  { %vm338_vm8 = vcmp.eq.s32.totalorder %v3375_v23, %v330_v32  ;;  %2798 = vmatprep.subr.bf16.mxu1 %v3224_v12 }
 0x305   :  { %vm2499_vm9 = vmpackc.low %vm338_vm8, %vm337_vm7 }
 0x306   :  { %2771 = vmatmul.mubr.msk.bf16.gmra.mrb[4].mxu1 %vm2499_vm9, %v3226_v27 }
 0x307   :  { %2786 = vmatprep.mubr.msk.bf16.mxu1 %vm3227_vm12, %v3224_v12 }
 0x35f   :  { %v593_v33 = vpop.permute.xlu1 %592 }
 0x360   :  { %2787 = vmatmul.mubr.msk.bf16.vlgmr.msra.gmra.mrb[8].mxu1 %vm493_vm10, %v593_v33  ;;  %v723_v33 = vadd.f32 %v667_v20, %v3464_v0 }
 0x361   :  { %2799 = vmatpush3.bf16.msra.mxu1 %v3384_v26  ;;  %2802 = vmatprep.mubr.msk.bf16.mxu1 %vm3227_vm12, %v3224_v12 }
 0x362   :  { %2800 = vmatprep.subr.bf16.mxu1 %v3224_v12 }
 0x365   :  { %2801 = vmatpush3.bf16.msra.mxu1 %v3394_v30 }
 0x366   :  { %2814 = vmatprep.subr.bf16.mxu1 %v3224_v12 }
 0x3d1   :  { %v2768_v34 = vpop.f32.mrb[0].mxu1 }
 0x3d2   :  { %474 = vst.msk [vmem:[#allocation3 + $0x10] sm:$0xff] %vm290_vm13, %v2768_v34  ;;  %v441_v35 = vpop.f32.mrb[1].mxu1 }
 0x3d3   :  { %v2769_v36 = vpop.f32.mrb[2].mxu1 }
 0x3d4   :  { %475 = vst.msk [vmem:[#allocation3 + $0x18] sm:$0xff] %vm290_vm13, %v2769_v36  ;;  %v444_v37 = vpop.f32.mrb[3].mxu1 }
 0x3d5   :  { %473 = vst.msk [vmem:[#allocation3 + $0x8] sm:$0xff] %vm290_vm13, %v444_v37 }
 0x3d9   :  { %v2772_v38 = vpop.f32.mrb[4].mxu1 }
 0x3da   :  { %478 = vst.msk [vmem:[#allocation3 + $0x30] sm:$0xff] %vm290_vm13, %v2772_v38  ;;  %v457_v39 = vpop.f32.mrb[5].mxu1 }
 0x3db   :  { %476 = vst.msk [vmem:[#allocation3 + $0x20] sm:$0xff] %vm290_vm13, %v457_v39  ;;  %v2773_v40 = vpop.f32.mrb[6].mxu1 }
 0x3dc   :  { %479 = vst.msk [vmem:[#allocation3 + $0x38] sm:$0xff] %vm290_vm13, %v2773_v40  ;;  %v460_v42 = vpop.f32.mrb[7].mxu1 }
 0x3dd   :  { %477 = vst.msk [vmem:[#allocation3 + $0x28] sm:$0xff] %vm290_vm13, %v460_v42 }
 0x433   :  { %v631_v43 = vpop.f32.mrb[8].mxu1 }
 0x434   :  { %v646_v44 = vadd.f32 %v631_v43, %v3420_v41  ;;  %v2788_v45 = vpop.f32.mrb[9].mxu1  ;;  %v637_v50 = vadd.f32 %v631_v43, %v589_v48 }
 0x435   :  { %v634_v46 = vpop.f32.mrb[10].mxu1 }
 0x436   :  { %648 = vrot.lane.b32.xlu0 %v646_v44, %s3225_s24  ;;  %v2789_v47 = vpop.f32.mrb[11].mxu1  ;;  %v638_v51 = vadd.f32 %v3427_v49, %v637_v50 }
 0x438   :  { %v2508_v52 = vmul.f32 -1.442695, %v638_v51  ;;  %v745_v51 = vld [vmem:[#allocation2 + $0x18] sm:$0xff] }
 0x43a   :  { %3110 = vpow2.f32 %v2508_v52 }
 0x444   :  { %v3111_v53 = vpop.eup %3110 }
 0x445   :  { %v642_v54 = vadd.f32 1.0, %v3111_v53 }
 0x447   :  { %3112 = vrcp.f32 %v642_v54 }
 0x451   :  { %v3113_v55 = vpop.eup %3112 }
 0x452   :  { %v658_v2 = vsub.f32 1.0, %v3113_v55  ;;  %v664_v8 = vmul.f32 %v3113_v55, %v3516_v19 }
 0x4a8   :  { %v649_v56 = vpop.permute.xlu0 %648 }
 0x4a9   :  { %v651_v57 = vmul.f32 %v3113_v55, %v649_v56 }
 0x4ab   :  { %653 = vrot.lane.b32.xlu1 %v651_v57, %s3225_s24 }
 0x51d   :  { %v654_v59 = vpop.permute.xlu1 %653 }
 0x51e   :  { %v656_v60 = vadd.f32 %v654_v59, %v645_v58 }
 0x520   :  { %3114 = vtanh.f32 %v656_v60  ;;  %v801_v60 = vadd.f32 %v745_v51, %v3464_v0 }
 0x52a   :  { %v3115_v1 = vpop.eup %3114 }
 0x52b   :  { %660 = vrot.lane.b32.xlu0 %v3115_v1, %s3228_s16 }
 0x59d   :  { %v661_v3 = vpop.permute.xlu0 %660 }
 0x59e   :  { %v663_v9 = vmul.f32 %v661_v3, %v658_v2 }
 0x5a0   :  { %v665_v11 = vadd.f32 %v664_v8, %v663_v9 }
 0x5a2   :  { %v668_v13 = vpack.c.bf16 %v665_v11, %v665_v11 }
 0x5a4   :  { %670 = vrot.lane.b32.xlu1 %v668_v13, %s3228_s16 }
 0x616   :  { %v671_v14 = vpop.permute.xlu1 %670 }
 0x617   :  { %2795 = vmatmul.mubr.msk.bf16.vlgmr.msra.gmra.mrb[12].mxu0 %vm493_vm10, %v671_v14 }
 0x618   :  { %2807 = vmatpush3.bf16.msra.mxu0 %v3384_v26  ;;  %2810 = vmatprep.mubr.msk.bf16.mxu0 %vm3227_vm12, %v3224_v12 }
 0x619   :  { %2808 = vmatprep.subr.bf16.mxu0 %v3224_v12 }
 0x61c   :  { %2809 = vmatpush3.bf16.msra.mxu0 %v3394_v30 }
 0x61d   :  { %2822 = vmatprep.subr.bf16.mxu0 %v3224_v12 }
 0x6ea   :  { %v709_v15 = vpop.f32.mrb[12].mxu0 }
 0x6eb   :  { %v724_v16 = vadd.f32 %v709_v15, %v3420_v41  ;;  %v2796_v17 = vpop.f32.mrb[13].mxu0  ;;  %v715_v21 = vadd.f32 %v709_v15, %v667_v20 }
 0x6ec   :  { %v712_v18 = vpop.f32.mrb[14].mxu0 }
 0x6ed   :  { %726 = vrot.lane.b32.xlu0 %v724_v16, %s3225_s24  ;;  %v2797_v19 = vpop.f32.mrb[15].mxu0  ;;  %v716_v22 = vadd.f32 %v3427_v49, %v715_v21 }
 0x6ef   :  { %v2510_v24 = vmul.f32 -1.442695, %v716_v22  ;;  %v823_v22 = vld [vmem:[#allocation2 + $0x20] sm:$0xff] }
 0x6f1   :  { %3116 = vpow2.f32 %v2510_v24 }
 0x6fb   :  { %v3117_v25 = vpop.eup %3116 }
 0x6fc   :  { %v720_v28 = vadd.f32 1.0, %v3117_v25 }
 0x6fe   :  { %3118 = vrcp.f32 %v720_v28 }
 0x708   :  { %v3119_v29 = vpop.eup %3118 }
 0x709   :  { %v736_v37 = vsub.f32 1.0, %v3119_v29  ;;  %v742_v39 = vmul.f32 %v3119_v29, %v665_v11 }
 0x75f   :  { %v727_v31 = vpop.permute.xlu0 %726 }
 0x760   :  { %v729_v32 = vmul.f32 %v3119_v29, %v727_v31 }
 0x762   :  { %731 = vrot.lane.b32.xlu1 %v729_v32, %s3225_s24 }
 0x7d4   :  { %v732_v34 = vpop.permute.xlu1 %731 }
 0x7d5   :  { %v734_v35 = vadd.f32 %v732_v34, %v723_v33 }
 0x7d7   :  { %3120 = vtanh.f32 %v734_v35  ;;  %v879_v35 = vadd.f32 %v823_v22, %v3464_v0 }
 0x7e1   :  { %v3121_v36 = vpop.eup %3120 }
 0x7e2   :  { %738 = vrot.lane.b32.xlu0 %v3121_v36, %s3228_s16 }
 0x854   :  { %v739_v38 = vpop.permute.xlu0 %738 }
 0x855   :  { %v741_v40 = vmul.f32 %v739_v38, %v736_v37 }
 0x857   :  { %v743_v42 = vadd.f32 %v742_v39, %v741_v40 }
 0x859   :  { %v746_v43 = vpack.c.bf16 %v743_v42, %v743_v42 }
 0x85b   :  { %748 = vrot.lane.b32.xlu1 %v746_v43, %s3228_s16 }
 0x8cd   :  { %v749_v44 = vpop.permute.xlu1 %748 }
 0x8ce   :  { %2803 = vmatmul.mubr.msk.bf16.vlgmr.msra.gmra.mrb[12].mxu1 %vm493_vm10, %v749_v44 }
 0x8cf   :  { %2815 = vmatpush3.bf16.msra.mxu1 %v3384_v26  ;;  %2818 = vmatprep.mubr.msk.bf16.mxu1 %vm3227_vm12, %v3224_v12 }
 0x8d0   :  { %2816 = vmatprep.subr.bf16.mxu1 %v3224_v12 }
 0x8d3   :  { %2817 = vmatpush3.bf16.msra.mxu1 %v3394_v30 }
 0x8d4   :  { %2830 = vmatprep.subr.bf16.mxu1 %v3224_v12 }
 0x9a1   :  { %v787_v45 = vpop.f32.mrb[12].mxu1 }
 0x9a2   :  { %v802_v46 = vadd.f32 %v787_v45, %v3420_v41  ;;  %v2804_v47 = vpop.f32.mrb[13].mxu1  ;;  %v793_v52 = vadd.f32 %v787_v45, %v745_v51 }
 0x9a3   :  { %v790_v48 = vpop.f32.mrb[14].mxu1 }
 0x9a4   :  { %804 = vrot.lane.b32.xlu0 %v802_v46, %s3225_s24  ;;  %v2805_v50 = vpop.f32.mrb[15].mxu1  ;;  %v794_v53 = vadd.f32 %v3427_v49, %v793_v52 }
 0x9a6   :  { %v2512_v54 = vmul.f32 -1.442695, %v794_v53  ;;  %v901_v53 = vld [vmem:[#allocation2 + $0x28] sm:$0xff] }
 0x9a8   :  { %3122 = vpow2.f32 %v2512_v54 }
 0x9b2   :  { %v3123_v55 = vpop.eup %3122 }
 0x9b3   :  { %v798_v56 = vadd.f32 1.0, %v3123_v55 }
 0x9b5   :  { %3124 = vrcp.f32 %v798_v56 }
 0x9bf   :  { %v3125_v57 = vpop.eup %3124 }
 0x9c0   :  { %v814_v8 = vsub.f32 1.0, %v3125_v57  ;;  %v820_v11 = vmul.f32 %v3125_v57, %v743_v42 }
 0xa16   :  { %v805_v58 = vpop.permute.xlu0 %804 }
 0xa17   :  { %v807_v59 = vmul.f32 %v3125_v57, %v805_v58 }
 0xa19   :  { %809 = vrot.lane.b32.xlu1 %v807_v59, %s3225_s24 }
 0xa8b   :  { %v810_v1 = vpop.permute.xlu1 %809 }
 0xa8c   :  { %v812_v2 = vadd.f32 %v810_v1, %v801_v60  ;;  %v957_v60 = vadd.f32 %v901_v53, %v3464_v0 }
 0xa8e   :  { %3126 = vtanh.f32 %v812_v2 }
 0xa98   :  { %v3127_v3 = vpop.eup %3126 }
 0xa99   :  { %816 = vrot.lane.b32.xlu0 %v3127_v3, %s3228_s16 }
 0xb0b   :  { %v817_v9 = vpop.permute.xlu0 %816 }
 0xb0c   :  { %v819_v13 = vmul.f32 %v817_v9, %v814_v8 }
 0xb0e   :  { %v821_v14 = vadd.f32 %v820_v11, %v819_v13 }
 0xb10   :  { %v824_v15 = vpack.c.bf16 %v821_v14, %v821_v14 }
 0xb12   :  { %826 = vrot.lane.b32.xlu1 %v824_v15, %s3228_s16 }
 0xb84   :  { %v827_v16 = vpop.permute.xlu1 %826 }
 0xb85   :  { %2811 = vmatmul.mubr.msk.bf16.vlgmr.msra.gmra.mrb[16].mxu0 %vm493_vm10, %v827_v16 }
 0xb86   :  { %2823 = vmatpush3.bf16.msra.mxu0 %v3384_v26  ;;  %2826 = vmatprep.mubr.msk.bf16.mxu0 %vm3227_vm12, %v3224_v12 }
 0xb87   :  { %2824 = vmatprep.subr.bf16.mxu0 %v3224_v12 }
 0xb8a   :  { %2825 = vmatpush3.bf16.msra.mxu0 %v3394_v30 }
 0xb8b   :  { %2838 = vmatprep.subr.bf16.mxu0 %v3224_v12 }
 0xc58   :  { %v865_v17 = vpop.f32.mrb[16].mxu0 }
 0xc59   :  { %v880_v18 = vadd.f32 %v865_v17, %v3420_v41  ;;  %v2812_v19 = vpop.f32.mrb[17].mxu0  ;;  %v871_v24 = vadd.f32 %v865_v17, %v823_v22  ;;  %v979_v22 = vld [vmem:[#allocation2 + $0x30] sm:$0xff] }
 0xc5a   :  { %v868_v20 = vpop.f32.mrb[18].mxu0 }
 0xc5b   :  { %882 = vrot.lane.b32.xlu0 %v880_v18, %s3225_s24  ;;  %v2813_v21 = vpop.f32.mrb[19].mxu0  ;;  %v872_v25 = vadd.f32 %v3427_v49, %v871_v24 }
 0xc5d   :  { %v2514_v28 = vmul.f32 -1.442695, %v872_v25 }
 0xc5f   :  { %3128 = vpow2.f32 %v2514_v28 }
 0xc69   :  { %v3129_v29 = vpop.eup %3128 }
 0xc6a   :  { %v876_v31 = vadd.f32 1.0, %v3129_v29 }
 0xc6c   :  { %3130 = vrcp.f32 %v876_v31 }
 0xc76   :  { %v3131_v32 = vpop.eup %3130 }
 0xc77   :  { %v892_v39 = vsub.f32 1.0, %v3131_v32  ;;  %v898_v42 = vmul.f32 %v3131_v32, %v821_v14 }
 0xccd   :  { %v883_v33 = vpop.permute.xlu0 %882 }
 0xcce   :  { %v885_v34 = vmul.f32 %v3131_v32, %v883_v33 }
 0xcd0   :  { %887 = vrot.lane.b32.xlu1 %v885_v34, %s3225_s24 }
 0xd42   :  { %v888_v36 = vpop.permute.xlu1 %887 }
 0xd43   :  { %v890_v37 = vadd.f32 %v888_v36, %v879_v35  ;;  %v1035_v35 = vadd.f32 %v979_v22, %v3464_v0 }
 0xd45   :  { %3132 = vtanh.f32 %v890_v37 }
 0xd4f   :  { %v3133_v38 = vpop.eup %3132 }
 0xd50   :  { %894 = vrot.lane.b32.xlu0 %v3133_v38, %s3228_s16 }
 0xdc2   :  { %v895_v40 = vpop.permute.xlu0 %894 }
 0xdc3   :  { %v897_v43 = vmul.f32 %v895_v40, %v892_v39 }
 0xdc5   :  { %v899_v44 = vadd.f32 %v898_v42, %v897_v43 }
 0xdc7   :  { %v902_v45 = vpack.c.bf16 %v899_v44, %v899_v44 }
 0xdc9   :  { %904 = vrot.lane.b32.xlu1 %v902_v45, %s3228_s16 }
 0xe3b   :  { %v905_v46 = vpop.permute.xlu1 %904 }
 0xe3c   :  { %2819 = vmatmul.mubr.msk.bf16.vlgmr.msra.gmra.mrb[16].mxu1 %vm493_vm10, %v905_v46 }
 0xe3d   :  { %2831 = vmatpush3.bf16.msra.mxu1 %v3384_v26  ;;  %2834 = vmatprep.mubr.msk.bf16.mxu1 %vm3227_vm12, %v3224_v12 }
 0xe3e   :  { %2832 = vmatprep.subr.bf16.mxu1 %v3224_v12 }
 0xe41   :  { %2833 = vmatpush3.bf16.msra.mxu1 %v3394_v30 }
 0xe42   :  { %2846 = vmatprep.subr.bf16.mxu1 %v3224_v12 }
 0xf0f   :  { %v943_v47 = vpop.f32.mrb[16].mxu1 }
 0xf10   :  { %v958_v48 = vadd.f32 %v943_v47, %v3420_v41  ;;  %v2820_v50 = vpop.f32.mrb[17].mxu1  ;;  %v949_v54 = vadd.f32 %v943_v47, %v901_v53  ;;  %v1057_v53 = vld [vmem:[#allocation2 + $0x38] sm:$0xff] }
 0xf11   :  { %v946_v51 = vpop.f32.mrb[18].mxu1 }
 0xf12   :  { %960 = vrot.lane.b32.xlu0 %v958_v48, %s3225_s24  ;;  %v2821_v52 = vpop.f32.mrb[19].mxu1  ;;  %v950_v26 = vadd.f32 %v3427_v49, %v949_v54 }
 0xf14   :  { %v2516_v55 = vmul.f32 -1.442695, %v950_v26 }
 0xf16   :  { %3134 = vpow2.f32 %v2516_v55 }
 0xf20   :  { %v3135_v56 = vpop.eup %3134 }
 0xf21   :  { %v954_v57 = vadd.f32 1.0, %v3135_v56 }
 0xf23   :  { %3136 = vrcp.f32 %v954_v57 }
 0xf2d   :  { %v3137_v30 = vpop.eup %3136 }
 0xf2e   :  { %v970_v8 = vsub.f32 1.0, %v3137_v30  ;;  %v976_v11 = vmul.f32 %v3137_v30, %v899_v44 }
 0xf84   :  { %v961_v58 = vpop.permute.xlu0 %960 }
 0xf85   :  { %v963_v59 = vmul.f32 %v3137_v30, %v961_v58 }
 0xf87   :  { %965 = vrot.lane.b32.xlu1 %v963_v59, %s3225_s24 }
 0xff9   :  { %v966_v1 = vpop.permute.xlu1 %965 }
 0xffa   :  { %v968_v2 = vadd.f32 %v966_v1, %v957_v60 }
 0xffc   :  { %3138 = vtanh.f32 %v968_v2  ;;  %v3638_v2 = vld [vmem:[%s4064_s9] sm:$0xff]  }
0x1006   :  { %v3139_v3 = vpop.eup %3138 }
0x1007   :  { %972 = vrot.lane.b32.xlu0 %v3139_v3, %s3228_s16 }
0x1079   :  { %v973_v9 = vpop.permute.xlu0 %972 }
0x107a   :  { %v975_v13 = vmul.f32 %v973_v9, %v970_v8  ;;  %v2527_v8 = vld [vmem:[%s4066_s11] ss:$0 sm:$0xff]  ;;  %s2569_s11 = sld [smem:[#allocation4 + $0x6]] }
0x107c   :  { %v977_v14 = vadd.f32 %v976_v11, %v975_v13 }
0x107e   :  { %v980_v15 = vpack.c.bf16 %v977_v14, %v977_v14 }
0x1080   :  { %982 = vrot.lane.b32.xlu1 %v980_v15, %s3228_s16  ;;  %p2135_p10 = scmp.gt.s32.totalorder %s2569_s11, 0 }
0x10f2   :  { %v983_v16 = vpop.permute.xlu1 %982 }
0x10f3   :  { %2827 = vmatmul.mubr.msk.bf16.vlgmr.msra.gmra.mrb[20].mxu0 %vm493_vm10, %v983_v16 }
0x10f4   :  { %2842 = vmatprep.mubr.msk.bf16.mxu0 %vm3227_vm12, %v3224_v12  ;;  %2839 = vmatpush3.bf16.msra.mxu0 %v3638_v2 }
0x10f5   :  { %2840 = vmatprep.subr.bf16.mxu0 %v3224_v12 }
0x11c6   :  { %v1021_v17 = vpop.f32.mrb[20].mxu0 }
0x11c7   :  { %v1036_v18 = vadd.f32 %v1021_v17, %v3420_v41  ;;  %v2828_v19 = vpop.f32.mrb[21].mxu0  ;;  %v1027_v24 = vadd.f32 %v1021_v17, %v979_v22 }
0x11c8   :  { %v1024_v20 = vpop.f32.mrb[22].mxu0  ;;  %v3695_v19 = vld [vmem:[%s4065_s10] ss:$0 sm:$0xff] }
0x11c9   :  { %1038 = vrot.lane.b32.xlu0 %v1036_v18, %s3225_s24  ;;  %v2829_v21 = vpop.f32.mrb[23].mxu0  ;;  %v1028_v25 = vadd.f32 %v3427_v49, %v1027_v24  ;;  %v3669_v18 = vld [vmem:[%s4070_s15] sm:$0xff] }
0x11cb   :  { %v2518_v28 = vmul.f32 -1.442695, %v1028_v25 }
0x11cd   :  { %3140 = vpow2.f32 %v2518_v28 }
0x11d7   :  { %v3141_v29 = vpop.eup %3140 }
0x11d8   :  { %v1032_v31 = vadd.f32 1.0, %v3141_v29 }
0x11da   :  { %3142 = vrcp.f32 %v1032_v31 }
0x11e4   :  { %v3143_v32 = vpop.eup %3142 }
0x11e5   :  { %v1048_v39 = vsub.f32 1.0, %v3143_v32  ;;  %v1054_v42 = vmul.f32 %v3143_v32, %v977_v14 }
0x123b   :  { %v1039_v33 = vpop.permute.xlu0 %1038 }
0x123c   :  { %v1041_v34 = vmul.f32 %v3143_v32, %v1039_v33 }
0x123e   :  { %1043 = vrot.lane.b32.xlu1 %v1041_v34, %s3225_s24 }
0x12b0   :  { %v1044_v36 = vpop.permute.xlu1 %1043 }
0x12b1   :  { %v1046_v37 = vadd.f32 %v1044_v36, %v1035_v35  ;;  %v3705_v35 = vld [vmem:[%s4068_s13] sm:$0xff]   ;;  %v3711_v36 = vld [vmem:[%s4068_s13 + $0x8] sm:$0xff]  }
0x12b3   :  { %3144 = vtanh.f32 %v1046_v37 }
0x12bd   :  { %v3145_v38 = vpop.eup %3144 }
0x12be   :  { %1050 = vrot.lane.b32.xlu0 %v3145_v38, %s3228_s16 }
0x1330   :  { %v1051_v40 = vpop.permute.xlu0 %1050 }
0x1331   :  { %v1053_v43 = vmul.f32 %v1051_v40, %v1048_v39 }
0x1333   :  { %v1055_v44 = vadd.f32 %v1054_v42, %v1053_v43 }
0x1335   :  { %v1058_v45 = vpack.c.bf16 %v1055_v44, %v1055_v44 }
0x1337   :  { %1060 = vrot.lane.b32.xlu1 %v1058_v45, %s3228_s16 }
0x13a9   :  { %v1061_v46 = vpop.permute.xlu1 %1060 }
0x13aa   :  { %2835 = vmatmul.mubr.msk.bf16.vlgmr.msra.gmra.mrb[20].mxu1 %vm493_vm10, %v1061_v46  ;;  %v3739_v46 = vld [vmem:[%s4069_s14] ss:$0 sm:$0xff] }
0x13ab   :  { %2850 = vmatprep.mubr.msk.bf16.mxu1 %vm3227_vm12, %v3224_v12  ;;  %2847 = vmatpush3.bf16.msra.mxu1 %v3705_v35 }
0x13ac   :  { %2848 = vmatprep.subr.bf16.mxu1 %v3669_v18 }
0x13af   :  { %2849 = vmatpush3.bf16.msra.mxu1 %v3711_v36 }
0x13b0   :  { %2874 = vmatprep.subr.bf16.mxu1 %v3669_v18 }
0x147d   :  { %v1099_v47 = vpop.f32.mrb[20].mxu1 }
0x147e   :  { %v1114_v48 = vadd.f32 %v1099_v47, %v3420_v41  ;;  %v2836_v50 = vpop.f32.mrb[21].mxu1  ;;  %v1105_v54 = vadd.f32 %v1099_v47, %v1057_v53  ;;  %v1113_v41 = vadd.f32 %v1057_v53, %v3464_v0  ;;  %v2528_v0 = vld [vmem:[%s4067_s12] ss:$0 sm:$0xff]  ;;  %s2138_s12 = scalar_select %p2135_p10, 1, 0 }
0x147f   :  { %v1102_v51 = vpop.f32.mrb[22].mxu1 }
0x1480   :  { %1116 = vrot.lane.b32.xlu0 %v1114_v48, %s3225_s24  ;;  %v2837_v52 = vpop.f32.mrb[23].mxu1  ;;  %v1106_v26 = vadd.f32 %v3427_v49, %v1105_v54  ;;  %v3644_v49 = vld [vmem:[%s4064_s9 + $0x8] sm:$0xff]  }
0x1481   :  { %2841 = vmatpush3.bf16.msra.mxu0 %v3644_v49 }
0x1482   :  { %v2520_v55 = vmul.f32 -1.442695, %v1106_v26  ;;  %2854 = vmatprep.subr.bf16.mxu0 %v3224_v12 }
0x1484   :  { %3146 = vpow2.f32 %v2520_v55 }
0x148e   :  { %v3147_v56 = vpop.eup %3146 }
0x148f   :  { %v1110_v57 = vadd.f32 1.0, %v3147_v56 }
0x1491   :  { %3148 = vrcp.f32 %v1110_v57 }
0x149b   :  { %v3149_v30 = vpop.eup %3148 }
0x149c   :  { %v1126_v9 = vsub.f32 1.0, %v3149_v30  ;;  %v1132_v13 = vmul.f32 %v3149_v30, %v1055_v44 }
0x14f2   :  { %v1117_v58 = vpop.permute.xlu0 %1116 }
0x14f3   :  { %v1119_v59 = vmul.f32 %v3149_v30, %v1117_v58 }
0x14f5   :  { %1121 = vrot.lane.b32.xlu1 %v1119_v59, %s3225_s24 }
0x1567   :  { %v1122_v60 = vpop.permute.xlu1 %1121 }
0x1568   :  { %v1124_v1 = vadd.f32 %v1122_v60, %v1113_v41 }
0x156a   :  { %3150 = vtanh.f32 %v1124_v1 }
0x1574   :  { %v3151_v3 = vpop.eup %3150 }
0x1575   :  { %1128 = vrot.lane.b32.xlu0 %v3151_v3, %s3228_s16 }
0x1579   :  { %1230 = vrot.lane.b32.xlu0 %v2528_v0, %s3225_s24 }
0x157d   :  { %1221 = vrot.lane.b32.xlu0 %v2527_v8, %s3225_s24 }
0x15e7   :  { %v1129_v11 = vpop.permute.xlu0 %1128 }
0x15e8   :  { %v1131_v14 = vmul.f32 %v1129_v11, %v1126_v9 }
0x15ea   :  { %v1133_v15 = vadd.f32 %v1132_v13, %v1131_v14  ;;  %v1387_v14 = vstv %s1386_s25 }
0x15eb   :  { %vm1388_vm0 = vcmp.eq.s32.totalorder %v1387_v14, 1 }
0x15ec   :  { %v1143_v16 = vpack.c.bf16 %v1133_v15, %v1133_v15 }
0x15ee   :  { %1145 = vrot.lane.b32.xlu1 %v1143_v16, %s3228_s16  ;;  %v1385_v16 = vld [vmem:[#allocation3 + $0x10] sm:$0xff] }
0x1660   :  { %v1146_v17 = vpop.permute.xlu1 %1145 }
0x1661   :  { %2843 = vmatmul.mubr.msk.bf16.vlgmr.msra.gmra.mrb[24].mxu0 %vm493_vm10, %v1146_v17 }
0x1662   :  { %2855 = vmatpush3.bf16.msra.mxu0 %v3446_v61  ;;  %2870 = vmatprep.mubr.msk.bf16.mxu0 %vm3227_vm12, %v3224_v12  ;;  %v3686_v12 = vpop.permute.xlu0 %1230 }
0x1663   :  { %2856 = vmatprep.subr.bf16.mxu0 %v3669_v18 }
0x1666   :  { %2857 = vmatpush3.bf16.msra.mxu0 %v3451_v62  ;;  %v3699_v31 = vpop.permute.xlu0 %1221 }
0x1667   :  { %2858 = vmatprep.subr.bf16.mxu0 %v3669_v18 }
0x166a   :  { %2859 = vmatpush3.bf16.msra.mxu0 %v3459_v63 }
0x166b   :  { %2860 = vmatprep.subr.bf16.mxu0 %v3669_v18 }
0x166e   :  { %2861 = vmatpush3.bf16.msra.mxu0 %v3470_v4 }
0x166f   :  { %2862 = vmatprep.subr.bf16.mxu0 %v3669_v18 }
0x1672   :  { %2863 = vmatpush3.bf16.msra.mxu0 %v3477_v5 }
0x1673   :  { %2864 = vmatprep.subr.bf16.mxu0 %v3669_v18 }
0x1676   :  { %2865 = vmatpush3.bf16.msra.mxu0 %v3482_v6  ;;  %v3101_v6 = vld [vmem:[#allocation3 + $0x8] sm:%s3100_s29] }
0x1677   :  { %2866 = vmatprep.subr.bf16.mxu0 %v3669_v18  ;;  %v1224_v32 = vadd.f32 %v3101_v6, %v3699_v31 }
0x167a   :  { %2867 = vmatpush3.bf16.msra.mxu0 %v3490_v7 }
0x167b   :  { %2868 = vmatprep.subr.bf16.mxu0 %v3669_v18 }
0x167e   :  { %2869 = vmatpush3.bf16.msra.mxu0 %v3502_v10 }
0x167f   :  { %2910 = vmatprep.subr.bf16.mxu0 %v3669_v18 }
0x1734   :  { %v1196_v61 = vpop.f32.mrb[24].mxu0 }
0x1735   :  { %v1233_v62 = vadd.f32 %v3686_v12, %v1196_v61  ;;  %v2844_v63 = vpop.f32.mrb[25].mxu0  ;;  %v1202_v7 = vadd.f32 %v3101_v6, %v1196_v61 }
0x1736   :  { %v1199_v4 = vpop.f32.mrb[26].mxu0 }
0x1737   :  { %1235 = vrot.lane.b32.xlu1 %v1233_v62, %s3225_s24  ;;  %v2845_v5 = vpop.f32.mrb[27].mxu0  ;;  %v1209_v20 = vadd.f32 %v3695_v19, %v1202_v7 }
0x1739   :  { %v2526_v21 = vmul.f32 -1.442695, %v1209_v20 }
0x173b   :  { %3152 = vpow2.f32 %v2526_v21 }
0x1745   :  { %v3153_v22 = vpop.eup %3152 }
0x1746   :  { %v1213_v24 = vadd.f32 1.0, %v3153_v22 }
0x1748   :  { %3154 = vrcp.f32 %v1213_v24 }
0x1752   :  { %v3155_v25 = vpop.eup %3154 }
0x1753   :  { %v1245_v38 = vsub.f32 1.0, %v3155_v25  ;;  %v1251_v40 = vmul.f32 %v3155_v25, %v1133_v15 }
0x17a9   :  { %v1236_v28 = vpop.permute.xlu1 %1235 }
0x17aa   :  { %v1238_v29 = vmul.f32 %v3155_v25, %v1236_v28 }
0x17ac   :  { %1240 = vrot.lane.b32.xlu1 %v1238_v29, %s3225_s24 }
0x181e   :  { %v1241_v33 = vpop.permute.xlu1 %1240 }
0x181f   :  { %v1243_v34 = vadd.f32 %v1241_v33, %v1224_v32 }
0x1821   :  { %3156 = vtanh.f32 %v1243_v34 }
0x182b   :  { %v3157_v37 = vpop.eup %3156 }
0x182c   :  { %1247 = vrot.lane.b32.xlu0 %v3157_v37, %s3228_s16 }
0x189e   :  { %v1248_v39 = vpop.permute.xlu0 %1247 }
0x189f   :  { %v1250_v42 = vmul.f32 %v1248_v39, %v1245_v38 }
0x18a1   :  { %v3717_v43 = vadd.f32 %v1251_v40, %v1250_v42 }
0x18a3   :  { %v1253_v44 = vpack.c.bf16 %v3717_v43, %v3717_v43 }
0x18a5   :  { %1261 = vrot.lane.b32.xlu1 %v1253_v44, %s3228_s16  ;;  %v3771_v44 = vld [vmem:[%s4063_s8] sm:$0xff]  }
0x1917   :  { %v1262_v45 = vpop.permute.xlu1 %1261 }
0x1918   :  { %2851 = vmatmul.mubr.msk.bf16.vlgmr.msra.gmra.mrb[24].mxu1 %vm493_vm10, %v1262_v45 }
0x1919   :  { %2875 = vmatpush3.bf16.msra.mxu1 %v3638_v2  ;;  %2878 = vmatprep.mubr.msk.bf16.mxu1 %vm3227_vm12, %v3669_v18 }
0x191a   :  { %2876 = vmatprep.subr.bf16.mxu1 %v3669_v18 }
0x191d   :  { %2877 = vmatpush3.bf16.msra.mxu1 %v3644_v49 }
0x191e   :  { %2882 = vmatprep.subr.bf16.mxu1 %v3669_v18 }
0x1920   :  { %2879 = vmatmul.mubr.msk.bf16.vlgmr.msra.gmra.mrb[28].mxu1 %vm493_vm10, %v1262_v45  ;;  %v3793_v45 = vld [vmem:[%s4063_s8 + $0x10] sm:$0xff]  }
0x1921   :  { %2883 = vmatpush3.bf16.msra.mxu1 %v3705_v35  ;;  %2886 = vmatprep.mubr.msk.bf16.mxu1 %vm3227_vm12, %v3669_v18 }
0x1922   :  { %2884 = vmatprep.subr.bf16.mxu1 %v3669_v18 }
0x1925   :  { %2885 = vmatpush3.bf16.msra.mxu1 %v3711_v36 }
0x1926   :  { %2890 = vmatprep.subr.bf16.mxu1 %v3669_v18 }
0x19eb   :  { %v1312_v47 = vpop.f32.mrb[24].mxu1 }
0x19ec   :  { %v1313_v48 = vadd.f32 %v3739_v46, %v1312_v47  ;;  %v2852_v50 = vpop.f32.mrb[25].mxu1  ;;  %v3800_v47 = vld [vmem:[%s4063_s8 + $0x18] sm:$0xff]  }
0x19ed   :  { %v1315_v51 = vpop.f32.mrb[26].mxu1  ;;  %v3814_v50 = vld [vmem:[%s4063_s8 + $0x28] sm:$0xff]  }
0x19ee   :  { %2533 = vst [vmem:[%s4070_s15 + $0x8] sm:$0xff] %v1313_v48  ;;  %1320 = vmax.xlane.f32.xlu0 %v1313_v48  ;;  %v2853_v52 = vpop.f32.mrb[27].mxu1  ;;  %v3821_v51 = vld [vmem:[%s4063_s8 + $0x30] sm:$0xff]  }
0x19f3   :  { %v1424_v53 = vpop.f32.mrb[28].mxu1 }
0x19f4   :  { %v2880_v54 = vpop.f32.mrb[29].mxu1  ;;  %v1439_v3 = vadd.f32 %v1424_v53, %v3686_v12 }
0x19f5   :  { %v1427_v26 = vpop.f32.mrb[30].mxu1 }
0x19f6   :  { %v2881_v55 = vpop.f32.mrb[31].mxu1 }
0x1a7b   :  { %v1321_v56 = vpop.xlane.xlu0 %1320 }
0x1a7c   :  { %vm1322_vm11 = vcmp.eq.f32.partialorder %v1313_v48, %v1321_v56  ;;  %v3807_v48 = vld [vmem:[%s4063_s8 + $0x20] sm:$0xff]  }
0x1a7d   :  { %v1323_v57 = vsel %vm1322_vm11, %v3375_v23, 128 }
0x1a7e   :  { %v1325_v30 = vshra.s32 %v1323_v57, 16  ;;  %v1324_v59 = vand.u32 65535, %v1323_v57 }
0x1a80   :  { %v1327_v58 = vcvt.s32.f32 %v1325_v30  ;;  %v1326_v60 = vcvt.s32.f32 %v1324_v59 }
0x1a82   :  { %1328 = vmin.xlane.f32.xlu1 %v1327_v58 }
0x1b0f   :  { %v1329_v41 = vpop.xlane.xlu1 %1328 }
0x1b10   :  { %vm1330_vm13 = vcmp.eq.f32.partialorder %v1327_v58, %v1329_v41  ;;  %v1335_v0 = vcvt.f32.s32 %v1329_v41 }
0x1b11   :  { %v1331_v1 = vsel %vm1330_vm13, %v1326_v60, inf }
0x1b12   :  { %1332 = vmin.xlane.f32.xlu0 %v1331_v1  ;;  %v1336_v9 = vshll.u32 %v1335_v0, 16 }
0x1b28   :  { %1441 = vrot.lane.b32.xlu0 %v1439_v3, %s3225_s24 }
0x1b9f   :  { %v1333_v8 = vpop.xlane.xlu0 %1332 }
0x1ba0   :  { %v1334_v11 = vcvt.f32.s32 %v1333_v8 }
0x1ba2   :  { %v1337_v13 = vadd.s32 %v1336_v9, %v1334_v11 }
0x1ba3   :  { %v1442_v22 = vpop.permute.xlu0 %1441 }
0x1ba4   :  { %vm1338_vm14 = vcmp.eq.s32.totalorder %v3375_v23, %v1337_v13 }
0x1ba5   :  { %vm2535_vm15 = vmpackc.low %vm1338_vm14, %vm1338_vm14 }
0x1ba6   :  { %2871 = vmatmul.mubr.msk.bf16.vlgmr.msra.gmra.mrb[28].mxu0 %vm2535_vm15, %v3226_v27 }
0x1ba7   :  { %2911 = vmatpush3.bf16.msra.mxu0 %v3638_v2  ;;  %2914 = vmatprep.mubr.msk.bf16.mxu0 %vm3227_vm12, %v3669_v18 }
0x1ba8   :  { %2912 = vmatprep.subr.bf16.mxu0 %v3669_v18 }
0x1bab   :  { %2913 = vmatpush3.bf16.msra.mxu0 %v3644_v49 }
0x1bac   :  { %2918 = vmatprep.subr.bf16.mxu0 %v3669_v18 }
0x1c79   :  { %v1376_v15 = vpop.f32.mrb[28].mxu0 }
0x1c7a   :  { %v1389_v17 = vsel %vm1388_vm0, %v1385_v16, %v1376_v15  ;;  %v2872_v61 = vpop.f32.mrb[29].mxu0 }
0x1c7b   :  { %v1430_v62 = vadd.f32 %v1424_v53, %v1389_v17  ;;  %v1379_v63 = vpop.f32.mrb[30].mxu0  ;;  %v1438_v25 = vadd.f32 %v1389_v17, %v3699_v31  ;;  %v1575_v17 = vstv %s1574_s19 }
0x1c7c   :  { %v2873_v4 = vpop.f32.mrb[31].mxu0  ;;  %vm1576_vm5 = vcmp.eq.s32.totalorder %v1575_v17, 1 }
0x1c7d   :  { %v1431_v5 = vadd.f32 %v3695_v19, %v1430_v62  ;;  %v1573_v62 = vld [vmem:[#allocation3 + $0x18] sm:$0xff] }
0x1c7f   :  { %v2539_v6 = vmul.f32 -1.442695, %v1431_v5 }
0x1c81   :  { %3158 = vpow2.f32 %v2539_v6 }
0x1c8b   :  { %v3159_v7 = vpop.eup %3158 }
0x1c8c   :  { %v1435_v20 = vadd.f32 1.0, %v3159_v7 }
0x1c8e   :  { %3160 = vrcp.f32 %v1435_v20 }
0x1c98   :  { %v3161_v21 = vpop.eup %3160 }
0x1c99   :  { %v1444_v24 = vmul.f32 %v3161_v21, %v1442_v22  ;;  %v1451_v33 = vsub.f32 1.0, %v3161_v21  ;;  %v1457_v37 = vmul.f32 %v3161_v21, %v3717_v43  ;;  %v3784_v43 = vld [vmem:[%s4063_s8 + $0x8] sm:$0xff]  }
0x1c9b   :  { %1446 = vrot.lane.b32.xlu1 %v1444_v24, %s3225_s24 }
0x1d0d   :  { %v1447_v28 = vpop.permute.xlu1 %1446 }
0x1d0e   :  { %v1449_v29 = vadd.f32 %v1447_v28, %v1438_v25 }
0x1d10   :  { %3162 = vtanh.f32 %v1449_v29 }
0x1d1a   :  { %v3163_v32 = vpop.eup %3162 }
0x1d1b   :  { %1453 = vrot.lane.b32.xlu1 %v3163_v32, %s3228_s16 }
0x1d8d   :  { %v1454_v34 = vpop.permute.xlu1 %1453 }
0x1d8e   :  { %v1456_v38 = vmul.f32 %v1454_v34, %v1451_v33 }
0x1d90   :  { %v3761_v39 = vadd.f32 %v1457_v37, %v1456_v38 }
0x1d92   :  { %v1459_v40 = vpack.c.bf16 %v3761_v39, %v3761_v39 }
0x1d94   :  { %1461 = vrot.lane.b32.xlu0 %v1459_v40, %s3228_s16 }
0x1e06   :  { %v1462_v42 = vpop.permute.xlu0 %1461 }
0x1e07   :  { %2887 = vmatmul.mubr.msk.bf16.vlgmr.msra.gmra.mrb[32].mxu1 %vm493_vm10, %v1462_v42  ;;  %2915 = vmatmul.mubr.msk.bf16.vlgmr.msra.gmra.mrb[32].mxu0 %vm493_vm10, %v1462_v42 }
0x1e08   :  { %2891 = vmatpush3.bf16.msra.mxu1 %v3771_v44  ;;  %2906 = vmatprep.mubr.msk.bf16.mxu1 %vm3227_vm12, %v3669_v18 }
0x1e09   :  { %2892 = vmatprep.subr.bf16.mxu1 %v3669_v18  ;;  %2919 = vmatpush3.bf16.msra.mxu0 %v3705_v35 }
0x1e0a   :  { %2920 = vmatprep.subr.bf16.mxu0 %v3669_v18  ;;  %2922 = vmatprep.mubr.msk.bf16.mxu0 %vm3227_vm12, %v3669_v18 }
0x1e0c   :  { %2893 = vmatpush3.bf16.msra.mxu1 %v3784_v43 }
0x1e0d   :  { %2894 = vmatprep.subr.bf16.mxu1 %v3669_v18  ;;  %2921 = vmatpush3.bf16.msra.mxu0 %v3711_v36 }
0x1e0e   :  { %2926 = vmatprep.subr.bf16.mxu0 %v3669_v18 }
0x1e10   :  { %2895 = vmatpush3.bf16.msra.mxu1 %v3793_v45 }
0x1e11   :  { %2896 = vmatprep.subr.bf16.mxu1 %v3669_v18 }
0x1e14   :  { %2897 = vmatpush3.bf16.msra.mxu1 %v3800_v47 }
0x1e15   :  { %2898 = vmatprep.subr.bf16.mxu1 %v3669_v18 }
0x1e18   :  { %2899 = vmatpush3.bf16.msra.mxu1 %v3807_v48 }
0x1e19   :  { %2900 = vmatprep.subr.bf16.mxu1 %v3669_v18 }
0x1e1c   :  { %2901 = vmatpush3.bf16.msra.mxu1 %v3814_v50 }
0x1e1d   :  { %2902 = vmatprep.subr.bf16.mxu1 %v3669_v18 }
0x1e20   :  { %2903 = vmatpush3.bf16.msra.mxu1 %v3821_v51 }
0x1e21   :  { %2904 = vmatprep.subr.bf16.mxu1 %v3669_v18 }
0x1e24   :  { %2905 = vmatpush3.bf16.msra.mxu1 %v3502_v10 }
0x1e25   :  { %2946 = vmatprep.subr.bf16.mxu1 %v3669_v18 }
0x1eda   :  { %v1500_v52 = vpop.f32.mrb[32].mxu1  ;;  %v1612_v53 = vpop.f32.mrb[32].mxu0 }
0x1edb   :  { %v1501_v54 = vadd.f32 %v3739_v46, %v1500_v52  ;;  %v2888_v26 = vpop.f32.mrb[33].mxu1  ;;  %v2916_v55 = vpop.f32.mrb[33].mxu0  ;;  %v1627_v59 = vadd.f32 %v1612_v53, %v3686_v12 }
0x1edc   :  { %v1503_v56 = vpop.f32.mrb[34].mxu1  ;;  %v1615_v57 = vpop.f32.mrb[34].mxu0 }
0x1edd   :  { %2541 = vst [vmem:[%s4070_s15 + $0x10] sm:$0xff] %v1501_v54  ;;  %1508 = vmax.xlane.f32.xlu1 %v1501_v54  ;;  %v2889_v30 = vpop.f32.mrb[35].mxu1  ;;  %v2917_v58 = vpop.f32.mrb[35].mxu0 }
0x1eee   :  { %1629 = vrot.lane.b32.xlu1 %v1627_v59, %s3225_s24 }
0x1f6a   :  { %v1509_v10 = vpop.xlane.xlu1 %1508 }
0x1f6b   :  { %vm1510_vm1 = vcmp.eq.f32.partialorder %v1501_v54, %v1509_v10 }
0x1f6c   :  { %v1511_v41 = vsel %vm1510_vm1, %v3375_v23, 128 }
0x1f6d   :  { %v1513_v60 = vshra.s32 %v1511_v41, 16  ;;  %v1512_v3 = vand.u32 65535, %v1511_v41 }
0x1f6e   :  { %v1630_v28 = vpop.permute.xlu1 %1629 }
0x1f6f   :  { %v1515_v1 = vcvt.s32.f32 %v1513_v60  ;;  %v1514_v8 = vcvt.s32.f32 %v1512_v3 }
0x1f71   :  { %1516 = vmin.xlane.f32.xlu0 %v1515_v1 }
0x1ffe   :  { %v1517_v0 = vpop.xlane.xlu0 %1516 }
0x1fff   :  { %vm1518_vm2 = vcmp.eq.f32.partialorder %v1515_v1, %v1517_v0  ;;  %v1523_v11 = vcvt.f32.s32 %v1517_v0 }
0x2000   :  { %v1519_v9 = vsel %vm1518_vm2, %v1514_v8, inf }
0x2001   :  { %1520 = vmin.xlane.f32.xlu0 %v1519_v9  ;;  %v1524_v14 = vshll.u32 %v1523_v11, 16 }
0x208e   :  { %v1521_v13 = vpop.xlane.xlu0 %1520 }
0x208f   :  { %v1522_v15 = vcvt.f32.s32 %v1521_v13 }
0x2091   :  { %v1525_v16 = vadd.s32 %v1524_v14, %v1522_v15 }
0x2093   :  { %vm1526_vm3 = vcmp.eq.s32.totalorder %v3375_v23, %v1525_v16 }
0x2094   :  { %vm2543_vm4 = vmpackc.low %vm1526_vm3, %vm1526_vm3 }
0x2095   :  { %2907 = vmatmul.mubr.msk.bf16.vlgmr.msra.gmra.mrb[36].mxu1 %vm2543_vm4, %v3226_v27 }
0x2096   :  { %2947 = vmatpush3.bf16.msra.mxu1 %v3638_v2  ;;  %2950 = vmatprep.mubr.msk.bf16.mxu1 %vm3227_vm12, %v3669_v18 }
0x2097   :  { %2948 = vmatprep.subr.bf16.mxu1 %v3669_v18 }
0x209a   :  { %2949 = vmatpush3.bf16.msra.mxu1 %v3644_v49 }
0x209b   :  { %2954 = vmatprep.subr.bf16.mxu1 %v3669_v18 }
0x2168   :  { %v1564_v61 = vpop.f32.mrb[36].mxu1 }
0x2169   :  { %v1577_v63 = vsel %vm1576_vm5, %v1573_v62, %v1564_v61  ;;  %v2908_v4 = vpop.f32.mrb[37].mxu1 }
0x216a   :  { %v1618_v5 = vadd.f32 %v1612_v53, %v1577_v63  ;;  %v1567_v6 = vpop.f32.mrb[38].mxu1  ;;  %v1626_v32 = vadd.f32 %v1577_v63, %v3699_v31 }
0x216b   :  { %v2909_v7 = vpop.f32.mrb[39].mxu1  ;;  %v1761_v6 = vld [vmem:[#allocation3 + $0x20] sm:$0xff] }
0x216c   :  { %v1619_v20 = vadd.f32 %v3695_v19, %v1618_v5 }
0x216e   :  { %v2547_v21 = vmul.f32 -1.442695, %v1619_v20 }
0x2170   :  { %3164 = vpow2.f32 %v2547_v21 }
0x217a   :  { %v3165_v22 = vpop.eup %3164 }
0x217b   :  { %v1623_v24 = vadd.f32 1.0, %v3165_v22 }
0x217d   :  { %3166 = vrcp.f32 %v1623_v24 }
0x2187   :  { %v3167_v25 = vpop.eup %3166 }
0x2188   :  { %v1632_v29 = vmul.f32 %v3167_v25, %v1630_v28  ;;  %v1639_v38 = vsub.f32 1.0, %v3167_v25  ;;  %v1645_v42 = vmul.f32 %v3167_v25, %v3761_v39  ;;  %v3879_v39 = vld [vmem:[%s4063_s8 + $0x38] sm:$0xff]   ;;  %s2553_s8 = sld [smem:[#allocation4 + $0x4]] }
0x218a   :  { %1634 = vrot.lane.b32.xlu0 %v1632_v29, %s3225_s24 }
0x218e   :  { %p1759_p8 = scmp.gt.s32.totalorder %s2553_s8, 0 }
0x2190   :  { %s1762_s23 = scalar_select %p1759_p8, 1, 0 }
0x2192   :  { %v1763_v4 = vstv %s1762_s23 }
0x2193   :  { %vm1764_vm11 = vcmp.eq.s32.totalorder %v1763_v4, 1 }
0x21fc   :  { %v1635_v33 = vpop.permute.xlu0 %1634 }
0x21fd   :  { %v1637_v34 = vadd.f32 %v1635_v33, %v1626_v32 }
0x21ff   :  { %3168 = vtanh.f32 %v1637_v34 }
0x2209   :  { %v3169_v37 = vpop.eup %3168 }
0x220a   :  { %1641 = vrot.lane.b32.xlu1 %v3169_v37, %s3228_s16 }
0x227c   :  { %v1642_v40 = vpop.permute.xlu1 %1641 }
0x227d   :  { %v1644_v52 = vmul.f32 %v1642_v40, %v1639_v38 }
0x227f   :  { %v3847_v53 = vadd.f32 %v1645_v42, %v1644_v52 }
0x2281   :  { %v1647_v54 = vpack.c.bf16 %v3847_v53, %v3847_v53 }
0x2283   :  { %1649 = vrot.lane.b32.xlu1 %v1647_v54, %s3228_s16 }
0x22f5   :  { %v1650_v26 = vpop.permute.xlu1 %1649 }
0x22f6   :  { %2923 = vmatmul.mubr.msk.bf16.vlgmr.msra.gmra.mrb[36].mxu0 %vm493_vm10, %v1650_v26  ;;  %2951 = vmatmul.mubr.msk.bf16.vlgmr.msra.gmra.mrb[40].mxu1 %vm493_vm10, %v1650_v26 }
0x22f7   :  { %2927 = vmatpush3.bf16.msra.mxu0 %v3771_v44  ;;  %2942 = vmatprep.mubr.msk.bf16.mxu0 %vm3227_vm12, %v3669_v18 }
0x22f8   :  { %2928 = vmatprep.subr.bf16.mxu0 %v3669_v18  ;;  %2955 = vmatpush3.bf16.msra.mxu1 %v3705_v35 }
0x22f9   :  { %2956 = vmatprep.subr.bf16.mxu1 %v3669_v18  ;;  %2958 = vmatprep.mubr.msk.bf16.mxu1 %vm3227_vm12, %v3669_v18 }
0x22fb   :  { %2929 = vmatpush3.bf16.msra.mxu0 %v3784_v43 }
0x22fc   :  { %2930 = vmatprep.subr.bf16.mxu0 %v3669_v18  ;;  %2957 = vmatpush3.bf16.msra.mxu1 %v3711_v36 }
0x22fd   :  { %2962 = vmatprep.subr.bf16.mxu1 %v3669_v18 }
0x22ff   :  { %2931 = vmatpush3.bf16.msra.mxu0 %v3793_v45 }
0x2300   :  { %2932 = vmatprep.subr.bf16.mxu0 %v3669_v18 }
0x2303   :  { %2933 = vmatpush3.bf16.msra.mxu0 %v3800_v47 }
0x2304   :  { %2934 = vmatprep.subr.bf16.mxu0 %v3669_v18 }
0x2307   :  { %2935 = vmatpush3.bf16.msra.mxu0 %v3807_v48 }
0x2308   :  { %2936 = vmatprep.subr.bf16.mxu0 %v3669_v18 }
0x230b   :  { %2937 = vmatpush3.bf16.msra.mxu0 %v3814_v50 }
0x230c   :  { %2938 = vmatprep.subr.bf16.mxu0 %v3669_v18 }
0x230f   :  { %2939 = vmatpush3.bf16.msra.mxu0 %v3821_v51 }
0x2310   :  { %2940 = vmatprep.subr.bf16.mxu0 %v3669_v18 }
0x2313   :  { %2941 = vmatpush3.bf16.msra.mxu0 %v3879_v39 }
0x2314   :  { %2982 = vmatprep.subr.bf16.mxu0 %v3669_v18 }
0x23c9   :  { %v1688_v55 = vpop.f32.mrb[36].mxu0  ;;  %v1800_v56 = vpop.f32.mrb[40].mxu1 }
0x23ca   :  { %v1689_v57 = vadd.f32 %v3739_v46, %v1688_v55  ;;  %v2924_v30 = vpop.f32.mrb[37].mxu0  ;;  %v2952_v58 = vpop.f32.mrb[41].mxu1  ;;  %v1815_v15 = vadd.f32 %v1800_v56, %v3686_v12 }
0x23cb   :  { %v1691_v59 = vpop.f32.mrb[38].mxu0  ;;  %v1803_v10 = vpop.f32.mrb[42].mxu1 }
0x23cc   :  { %2549 = vst [vmem:[%s4070_s15 + $0x18] sm:$0xff] %v1689_v57  ;;  %v2953_v41 = vpop.f32.mrb[43].mxu1  ;;  %1696 = vmax.xlane.f32.xlu0 %v1689_v57  ;;  %v2925_v60 = vpop.f32.mrb[39].mxu0 }
0x2459   :  { %v1697_v1 = vpop.xlane.xlu0 %1696 }
0x245a   :  { %vm1698_vm6 = vcmp.eq.f32.partialorder %v1689_v57, %v1697_v1 }
0x245b   :  { %v1699_v3 = vsel %vm1698_vm6, %v3375_v23, 128 }
0x245c   :  { %v1701_v0 = vshra.s32 %v1699_v3, 16  ;;  %v1700_v9 = vand.u32 65535, %v1699_v3 }
0x245e   :  { %v1703_v8 = vcvt.s32.f32 %v1701_v0  ;;  %v1702_v13 = vcvt.s32.f32 %v1700_v9 }
0x2460   :  { %1704 = vmin.xlane.f32.xlu1 %v1703_v8 }
0x24ed   :  { %v1705_v11 = vpop.xlane.xlu1 %1704 }
0x24ee   :  { %vm1706_vm7 = vcmp.eq.f32.partialorder %v1703_v8, %v1705_v11  ;;  %v1711_v16 = vcvt.f32.s32 %v1705_v11 }
0x24ef   :  { %v1707_v14 = vsel %vm1706_vm7, %v1702_v13, inf }
0x24f0   :  { %1708 = vmin.xlane.f32.xlu0 %v1707_v14  ;;  %v1712_v61 = vshll.u32 %v1711_v16, 16 }
0x2506   :  { %1817 = vrot.lane.b32.xlu0 %v1815_v15, %s3225_s24 }
0x257d   :  { %v1709_v17 = vpop.xlane.xlu0 %1708 }
0x257e   :  { %v1710_v62 = vcvt.f32.s32 %v1709_v17 }
0x2580   :  { %v1713_v63 = vadd.s32 %v1712_v61, %v1710_v62 }
0x2581   :  { %v1818_v34 = vpop.permute.xlu0 %1817 }
0x2582   :  { %vm1714_vm8 = vcmp.eq.s32.totalorder %v3375_v23, %v1713_v63 }
0x2583   :  { %vm2551_vm9 = vmpackc.low %vm1714_vm8, %vm1714_vm8 }
0x2584   :  { %2943 = vmatmul.mubr.msk.bf16.vlgmr.msra.gmra.mrb[40].mxu0 %vm2551_vm9, %v3226_v27 }
0x2585   :  { %2983 = vmatpush3.bf16.msra.mxu0 %v3638_v2  ;;  %2986 = vmatprep.mubr.msk.bf16.mxu0 %vm3227_vm12, %v3669_v18 }
0x2586   :  { %2984 = vmatprep.subr.bf16.mxu0 %v3669_v18 }
0x2589   :  { %2985 = vmatpush3.bf16.msra.mxu0 %v3644_v49 }
0x258a   :  { %2990 = vmatprep.subr.bf16.mxu0 %v3669_v18 }
0x2657   :  { %v1752_v5 = vpop.f32.mrb[40].mxu0 }
0x2658   :  { %v1765_v7 = vsel %vm1764_vm11, %v1761_v6, %v1752_v5  ;;  %v2944_v20 = vpop.f32.mrb[41].mxu0 }
0x2659   :  { %v1806_v21 = vadd.f32 %v1800_v56, %v1765_v7  ;;  %v1755_v22 = vpop.f32.mrb[42].mxu0  ;;  %v1814_v38 = vadd.f32 %v1765_v7, %v3699_v31  ;;  %v1951_v20 = vstv %s1950_s2 }
0x265a   :  { %v2945_v24 = vpop.f32.mrb[43].mxu0  ;;  %vm1952_vm1 = vcmp.eq.s32.totalorder %v1951_v20, 1  ;;  %v1949_v22 = vld [vmem:[#allocation3 + $0x28] sm:$0xff] }
0x265b   :  { %v1807_v25 = vadd.f32 %v3695_v19, %v1806_v21 }
0x265d   :  { %v2555_v28 = vmul.f32 -1.442695, %v1807_v25 }
0x265f   :  { %3170 = vpow2.f32 %v2555_v28 }
0x2669   :  { %v3171_v29 = vpop.eup %3170 }
0x266a   :  { %v1811_v32 = vadd.f32 1.0, %v3171_v29 }
0x266c   :  { %3172 = vrcp.f32 %v1811_v32 }
0x2676   :  { %v3173_v33 = vpop.eup %3172 }
0x2677   :  { %v1820_v37 = vmul.f32 %v3173_v33, %v1818_v34  ;;  %v1827_v54 = vsub.f32 1.0, %v3173_v33  ;;  %v1833_v55 = vmul.f32 %v3173_v33, %v3847_v53 }
0x2679   :  { %1822 = vrot.lane.b32.xlu1 %v1820_v37, %s3225_s24 }
0x26eb   :  { %v1823_v40 = vpop.permute.xlu1 %1822 }
0x26ec   :  { %v1825_v42 = vadd.f32 %v1823_v40, %v1814_v38 }
0x26ee   :  { %3174 = vtanh.f32 %v1825_v42 }
0x26f8   :  { %v3175_v52 = vpop.eup %3174 }
0x26f9   :  { %1829 = vrot.lane.b32.xlu1 %v3175_v52, %s3228_s16 }
0x276b   :  { %v1830_v26 = vpop.permute.xlu1 %1829 }
0x276c   :  { %v1832_v56 = vmul.f32 %v1830_v26, %v1827_v54 }
0x276e   :  { %v3903_v57 = vadd.f32 %v1833_v55, %v1832_v56 }
0x2770   :  { %v1835_v30 = vpack.c.bf16 %v3903_v57, %v3903_v57 }
0x2772   :  { %1837 = vrot.lane.b32.xlu0 %v1835_v30, %s3228_s16 }
0x27e4   :  { %v1838_v58 = vpop.permute.xlu0 %1837 }
0x27e5   :  { %2959 = vmatmul.mubr.msk.bf16.vlgmr.msra.gmra.mrb[44].mxu1 %vm493_vm10, %v1838_v58  ;;  %2987 = vmatmul.mubr.msk.bf16.vlgmr.msra.gmra.mrb[44].mxu0 %vm493_vm10, %v1838_v58 }
0x27e6   :  { %2963 = vmatpush3.bf16.msra.mxu1 %v3771_v44  ;;  %2978 = vmatprep.mubr.msk.bf16.mxu1 %vm3227_vm12, %v3669_v18 }
0x27e7   :  { %2964 = vmatprep.subr.bf16.mxu1 %v3669_v18  ;;  %2991 = vmatpush3.bf16.msra.mxu0 %v3705_v35 }
0x27e8   :  { %2992 = vmatprep.subr.bf16.mxu0 %v3669_v18  ;;  %2994 = vmatprep.mubr.msk.bf16.mxu0 %vm3227_vm12, %v3669_v18 }
0x27ea   :  { %2965 = vmatpush3.bf16.msra.mxu1 %v3784_v43 }
0x27eb   :  { %2966 = vmatprep.subr.bf16.mxu1 %v3669_v18  ;;  %2993 = vmatpush3.bf16.msra.mxu0 %v3711_v36 }
0x27ec   :  { %2998 = vmatprep.subr.bf16.mxu0 %v3669_v18 }
0x27ee   :  { %2967 = vmatpush3.bf16.msra.mxu1 %v3793_v45 }
0x27ef   :  { %2968 = vmatprep.subr.bf16.mxu1 %v3669_v18 }
0x27f2   :  { %2969 = vmatpush3.bf16.msra.mxu1 %v3800_v47 }
0x27f3   :  { %2970 = vmatprep.subr.bf16.mxu1 %v3669_v18 }
0x27f6   :  { %2971 = vmatpush3.bf16.msra.mxu1 %v3807_v48 }
0x27f7   :  { %2972 = vmatprep.subr.bf16.mxu1 %v3669_v18 }
0x27fa   :  { %2973 = vmatpush3.bf16.msra.mxu1 %v3814_v50 }
0x27fb   :  { %2974 = vmatprep.subr.bf16.mxu1 %v3669_v18 }
0x27fe   :  { %2975 = vmatpush3.bf16.msra.mxu1 %v3821_v51 }
0x27ff   :  { %2976 = vmatprep.subr.bf16.mxu1 %v3669_v18 }
0x2802   :  { %2977 = vmatpush3.bf16.msra.mxu1 %v3879_v39 }
0x2803   :  { %3018 = vmatprep.subr.bf16.mxu1 %v3669_v18 }
0x28b8   :  { %v1876_v53 = vpop.f32.mrb[44].mxu1  ;;  %v1988_v59 = vpop.f32.mrb[44].mxu0 }
0x28b9   :  { %v1877_v10 = vadd.f32 %v3739_v46, %v1876_v53  ;;  %v2960_v41 = vpop.f32.mrb[45].mxu1  ;;  %v2988_v60 = vpop.f32.mrb[45].mxu0  ;;  %v2003_v9 = vadd.f32 %v1988_v59, %v3686_v12 }
0x28ba   :  { %v1879_v1 = vpop.f32.mrb[46].mxu1  ;;  %v1991_v3 = vpop.f32.mrb[46].mxu0 }
0x28bb   :  { %2557 = vst [vmem:[%s4070_s15 + $0x20] sm:$0xff] %v1877_v10  ;;  %1884 = vmax.xlane.f32.xlu1 %v1877_v10  ;;  %v2961_v0 = vpop.f32.mrb[47].mxu1  ;;  %v2989_v8 = vpop.f32.mrb[47].mxu0 }
0x28cc   :  { %2005 = vrot.lane.b32.xlu1 %v2003_v9, %s3225_s24 }
0x2948   :  { %v1885_v11 = vpop.xlane.xlu1 %1884 }
0x2949   :  { %vm1886_vm13 = vcmp.eq.f32.partialorder %v1877_v10, %v1885_v11 }
0x294a   :  { %v1887_v13 = vsel %vm1886_vm13, %v3375_v23, 128 }
0x294b   :  { %v1889_v14 = vshra.s32 %v1887_v13, 16  ;;  %v1888_v16 = vand.u32 65535, %v1887_v13 }
0x294c   :  { %v2006_v38 = vpop.permute.xlu1 %2005 }
0x294d   :  { %v1891_v15 = vcvt.s32.f32 %v1889_v14  ;;  %v1890_v61 = vcvt.s32.f32 %v1888_v16 }
0x294f   :  { %1892 = vmin.xlane.f32.xlu0 %v1891_v15 }
0x29dc   :  { %v1893_v17 = vpop.xlane.xlu0 %1892 }
0x29dd   :  { %vm1894_vm14 = vcmp.eq.f32.partialorder %v1891_v15, %v1893_v17  ;;  %v1899_v63 = vcvt.f32.s32 %v1893_v17 }
0x29de   :  { %v1895_v62 = vsel %vm1894_vm14, %v1890_v61, inf }
0x29df   :  { %1896 = vmin.xlane.f32.xlu0 %v1895_v62  ;;  %v1900_v5 = vshll.u32 %v1899_v63, 16 }
0x2a6c   :  { %v1897_v4 = vpop.xlane.xlu0 %1896 }
0x2a6d   :  { %v1898_v6 = vcvt.f32.s32 %v1897_v4 }
0x2a6f   :  { %v1901_v7 = vadd.s32 %v1900_v5, %v1898_v6 }
0x2a71   :  { %vm1902_vm15 = vcmp.eq.s32.totalorder %v3375_v23, %v1901_v7 }
0x2a72   :  { %vm2559_vm0 = vmpackc.low %vm1902_vm15, %vm1902_vm15 }
0x2a73   :  { %2979 = vmatmul.mubr.msk.bf16.vlgmr.msra.gmra.mrb[48].mxu1 %vm2559_vm0, %v3226_v27 }
0x2a74   :  { %3019 = vmatpush3.bf16.msra.mxu1 %v3638_v2  ;;  %3022 = vmatprep.mubr.msk.bf16.mxu1 %vm3227_vm12, %v3669_v18 }
0x2a75   :  { %3020 = vmatprep.subr.bf16.mxu1 %v3669_v18 }
0x2a78   :  { %3021 = vmatpush3.bf16.msra.mxu1 %v3644_v49 }
0x2a79   :  { %3026 = vmatprep.subr.bf16.mxu1 %v3669_v18 }
0x2b46   :  { %v1940_v21 = vpop.f32.mrb[48].mxu1 }
0x2b47   :  { %v1953_v24 = vsel %vm1952_vm1, %v1949_v22, %v1940_v21  ;;  %v2980_v25 = vpop.f32.mrb[49].mxu1  ;;  %v3203_v22 = vld [vmem:[%s4064_s9] sm:$0xff]  }
0x2b48   :  { %v1994_v28 = vadd.f32 %v1988_v59, %v1953_v24  ;;  %v1943_v2 = vpop.f32.mrb[50].mxu1  ;;  %v2002_v42 = vadd.f32 %v1953_v24, %v3699_v31  ;;  %v3204_v24 = vld [vmem:[%s4064_s9 + $0x8] sm:$0xff]   ;;  %v2139_v25 = vstv %s2138_s12 }
0x2b49   :  { %v2981_v29 = vpop.f32.mrb[51].mxu1  ;;  %vm2140_vm6 = vcmp.eq.s32.totalorder %v2139_v25, 1  ;;  %v2137_v2 = vld [vmem:[#allocation3 + $0x30] sm:$0xff] }
0x2b4a   :  { %v1995_v32 = vadd.f32 %v3695_v19, %v1994_v28 }
0x2b4c   :  { %v2563_v33 = vmul.f32 -1.442695, %v1995_v32 }
0x2b4e   :  { %3176 = vpow2.f32 %v2563_v33 }
0x2b58   :  { %v3177_v34 = vpop.eup %3176 }
0x2b59   :  { %v1999_v49 = vadd.f32 1.0, %v3177_v34 }
0x2b5b   :  { %3178 = vrcp.f32 %v1999_v49 }
0x2b65   :  { %v3179_v37 = vpop.eup %3178 }
0x2b66   :  { %v2008_v40 = vmul.f32 %v3179_v37, %v2006_v38  ;;  %v2015_v55 = vsub.f32 1.0, %v3179_v37  ;;  %v2021_v30 = vmul.f32 %v3179_v37, %v3903_v57 }
0x2b68   :  { %2010 = vrot.lane.b32.xlu0 %v2008_v40, %s3225_s24 }
0x2bda   :  { %v2011_v52 = vpop.permute.xlu0 %2010 }
0x2bdb   :  { %v2013_v54 = vadd.f32 %v2011_v52, %v2002_v42 }
0x2bdd   :  { %3180 = vtanh.f32 %v2013_v54 }
0x2be7   :  { %v3181_v26 = vpop.eup %3180 }
0x2be8   :  { %2017 = vrot.lane.b32.xlu1 %v3181_v26, %s3228_s16 }
0x2c5a   :  { %v2018_v56 = vpop.permute.xlu1 %2017 }
0x2c5b   :  { %v2020_v58 = vmul.f32 %v2018_v56, %v2015_v55 }
0x2c5d   :  { %v3954_v53 = vadd.f32 %v2021_v30, %v2020_v58 }
0x2c5f   :  { %v2023_v59 = vpack.c.bf16 %v3954_v53, %v3954_v53 }
0x2c61   :  { %2025 = vrot.lane.b32.xlu1 %v2023_v59, %s3228_s16 }
0x2cd3   :  { %v2026_v10 = vpop.permute.xlu1 %2025 }
0x2cd4   :  { %2995 = vmatmul.mubr.msk.bf16.vlgmr.msra.gmra.mrb[48].mxu0 %vm493_vm10, %v2026_v10  ;;  %3023 = vmatmul.mubr.msk.bf16.vlgmr.msra.gmra.mrb[52].mxu1 %vm493_vm10, %v2026_v10 }
0x2cd5   :  { %2999 = vmatpush3.bf16.msra.mxu0 %v3771_v44  ;;  %3014 = vmatprep.mubr.msk.bf16.mxu0 %vm3227_vm12, %v3669_v18 }
0x2cd6   :  { %3000 = vmatprep.subr.bf16.mxu0 %v3669_v18  ;;  %3027 = vmatpush3.bf16.msra.mxu1 %v3705_v35 }
0x2cd7   :  { %3028 = vmatprep.subr.bf16.mxu1 %v3669_v18  ;;  %3030 = vmatprep.mubr.msk.bf16.mxu1 %vm3227_vm12, %v3669_v18 }
0x2cd9   :  { %3001 = vmatpush3.bf16.msra.mxu0 %v3784_v43 }
0x2cda   :  { %3002 = vmatprep.subr.bf16.mxu0 %v3669_v18  ;;  %3029 = vmatpush3.bf16.msra.mxu1 %v3711_v36 }
0x2cdb   :  { %3034 = vmatprep.subr.bf16.mxu1 %v3669_v18 }
0x2cdd   :  { %3003 = vmatpush3.bf16.msra.mxu0 %v3793_v45 }
0x2cde   :  { %3004 = vmatprep.subr.bf16.mxu0 %v3669_v18 }
0x2ce1   :  { %3005 = vmatpush3.bf16.msra.mxu0 %v3800_v47 }
0x2ce2   :  { %3006 = vmatprep.subr.bf16.mxu0 %v3669_v18 }
0x2ce5   :  { %3007 = vmatpush3.bf16.msra.mxu0 %v3807_v48 }
0x2ce6   :  { %3008 = vmatprep.subr.bf16.mxu0 %v3669_v18 }
0x2ce9   :  { %3009 = vmatpush3.bf16.msra.mxu0 %v3814_v50 }
0x2cea   :  { %3010 = vmatprep.subr.bf16.mxu0 %v3669_v18 }
0x2ced   :  { %3011 = vmatpush3.bf16.msra.mxu0 %v3821_v51 }
0x2cee   :  { %3012 = vmatprep.subr.bf16.mxu0 %v3669_v18 }
0x2cf1   :  { %3013 = vmatpush3.bf16.msra.mxu0 %v3879_v39 }
0x2cf2   :  { %3054 = vmatprep.subr.bf16.mxu0 %v3669_v18 }
0x2da7   :  { %v2064_v57 = vpop.f32.mrb[48].mxu0  ;;  %v2176_v41 = vpop.f32.mrb[52].mxu1 }
0x2da8   :  { %v2065_v60 = vadd.f32 %v3739_v46, %v2064_v57  ;;  %v2996_v1 = vpop.f32.mrb[49].mxu0  ;;  %v3024_v3 = vpop.f32.mrb[53].mxu1  ;;  %v2191_v4 = vadd.f32 %v2176_v41, %v3686_v12 }
0x2da9   :  { %v2067_v0 = vpop.f32.mrb[50].mxu0  ;;  %v2179_v8 = vpop.f32.mrb[54].mxu1  ;;  %v3205_v1 = vld [vmem:[%s4070_s15] sm:$0xff] }
0x2daa   :  { %2565 = vst [vmem:[%s4070_s15 + $0x28] sm:$0xff] %v2065_v60  ;;  %v3025_v9 = vpop.f32.mrb[55].mxu1  ;;  %2072 = vmax.xlane.f32.xlu0 %v2065_v60  ;;  %v2997_v11 = vpop.f32.mrb[51].mxu0 }
0x2e37   :  { %v2073_v13 = vpop.xlane.xlu0 %2072 }
0x2e38   :  { %vm2074_vm2 = vcmp.eq.f32.partialorder %v2065_v60, %v2073_v13 }
0x2e39   :  { %v2075_v14 = vsel %vm2074_vm2, %v3375_v23, 128 }
0x2e3a   :  { %v2077_v15 = vshra.s32 %v2075_v14, 16  ;;  %v2076_v17 = vand.u32 65535, %v2075_v14 }
0x2e3c   :  { %v2079_v16 = vcvt.s32.f32 %v2077_v15  ;;  %v2078_v62 = vcvt.s32.f32 %v2076_v17 }
0x2e3e   :  { %2080 = vmin.xlane.f32.xlu1 %v2079_v16 }
0x2ecb   :  { %v2081_v61 = vpop.xlane.xlu1 %2080 }
0x2ecc   :  { %vm2082_vm3 = vcmp.eq.f32.partialorder %v2079_v16, %v2081_v61  ;;  %v2087_v5 = vcvt.f32.s32 %v2081_v61  ;;  %v2327_v61 = vstv %s2326_s18 }
0x2ecd   :  { %v2083_v63 = vsel %vm2082_vm3, %v2078_v62, inf  ;;  %vm2328_vm11 = vcmp.eq.s32.totalorder %v2327_v61, 1 }
0x2ece   :  { %2084 = vmin.xlane.f32.xlu0 %v2083_v63  ;;  %v2088_v7 = vshll.u32 %v2087_v5, 16  ;;  %v2325_v63 = vld [vmem:[#allocation3 + $0x38] sm:$0xff] }
0x2ee4   :  { %2193 = vrot.lane.b32.xlu0 %v2191_v4, %s3225_s24 }
0x2f5b   :  { %v2085_v6 = vpop.xlane.xlu0 %2084 }
0x2f5c   :  { %v2086_v20 = vcvt.f32.s32 %v2085_v6 }
0x2f5e   :  { %v2089_v21 = vadd.s32 %v2088_v7, %v2086_v20 }
0x2f5f   :  { %v2194_v52 = vpop.permute.xlu0 %2193 }
0x2f60   :  { %vm2090_vm4 = vcmp.eq.s32.totalorder %v3375_v23, %v2089_v21  ;;  %v3206_v21 = vld [vmem:[%s4065_s10] ss:$0 sm:$0xff] }
0x2f61   :  { %vm2567_vm5 = vmpackc.low %vm2090_vm4, %vm2090_vm4 }
0x2f62   :  { %3015 = vmatmul.mubr.msk.bf16.vlgmr.msra.gmra.mrb[52].mxu0 %vm2567_vm5, %v3226_v27 }
0x2f63   :  { %3055 = vmatpush3.bf16.msra.mxu0 %v3203_v22  ;;  %3058 = vmatprep.mubr.msk.bf16.mxu0 %vm3227_vm12, %v3669_v18 }
0x2f64   :  { %3056 = vmatprep.subr.bf16.mxu0 %v3669_v18 }
0x2f67   :  { %3057 = vmatpush3.bf16.msra.mxu0 %v3204_v24 }
0x2f68   :  { %3062 = vmatprep.subr.bf16.mxu0 %v3669_v18 }
0x3035   :  { %v2128_v28 = vpop.f32.mrb[52].mxu0 }
0x3036   :  { %v2141_v29 = vsel %vm2140_vm6, %v2137_v2, %v2128_v28  ;;  %v3016_v32 = vpop.f32.mrb[53].mxu0 }
0x3037   :  { %v2182_v33 = vadd.f32 %v2176_v41, %v2141_v29  ;;  %v2131_v34 = vpop.f32.mrb[54].mxu0  ;;  %v2190_v26 = vadd.f32 %v2141_v29, %v3699_v31 }
0x3038   :  { %v3017_v49 = vpop.f32.mrb[55].mxu0 }
0x3039   :  { %v2183_v37 = vadd.f32 %v3695_v19, %v2182_v33 }
0x303b   :  { %v2571_v38 = vmul.f32 -1.442695, %v2183_v37 }
0x303d   :  { %3182 = vpow2.f32 %v2571_v38 }
0x3047   :  { %v3183_v40 = vpop.eup %3182 }
0x3048   :  { %v2187_v42 = vadd.f32 1.0, %v3183_v40 }
0x304a   :  { %3184 = vrcp.f32 %v2187_v42 }
0x3054   :  { %v3185_v18 = vpop.eup %3184 }
0x3055   :  { %v2196_v54 = vmul.f32 %v3185_v18, %v2194_v52  ;;  %v2203_v58 = vsub.f32 1.0, %v3185_v18  ;;  %v2209_v59 = vmul.f32 %v3185_v18, %v3954_v53 }
0x3057   :  { %2198 = vrot.lane.b32.xlu1 %v2196_v54, %s3225_s24 }
0x30c9   :  { %v2199_v55 = vpop.permute.xlu1 %2198 }
0x30ca   :  { %v2201_v56 = vadd.f32 %v2199_v55, %v2190_v26 }
0x30cc   :  { %3186 = vtanh.f32 %v2201_v56 }
0x30d6   :  { %v3187_v30 = vpop.eup %3186 }
0x30d7   :  { %2205 = vrot.lane.b32.xlu1 %v3187_v30, %s3228_s16 }
0x3149   :  { %v2206_v19 = vpop.permute.xlu1 %2205 }
0x314a   :  { %v2208_v10 = vmul.f32 %v2206_v19, %v2203_v58 }
0x314c   :  { %v4009_v57 = vadd.f32 %v2209_v59, %v2208_v10 }
0x314e   :  { %v2211_v41 = vpack.c.bf16 %v4009_v57, %v4009_v57 }
0x3150   :  { %2213 = vrot.lane.b32.xlu0 %v2211_v41, %s3228_s16 }
0x31c2   :  { %v2214_v60 = vpop.permute.xlu0 %2213 }
0x31c3   :  { %3031 = vmatmul.mubr.msk.bf16.vlgmr.msra.gmra.mrb[56].mxu1 %vm493_vm10, %v2214_v60  ;;  %3059 = vmatmul.mubr.msk.bf16.vlgmr.msra.gmra.mrb[56].mxu0 %vm493_vm10, %v2214_v60 }
0x31c4   :  { %3035 = vmatpush3.bf16.msra.mxu1 %v3771_v44  ;;  %3050 = vmatprep.mubr.msk.bf16.mxu1 %vm3227_vm12, %v3205_v1 }
0x31c5   :  { %3036 = vmatprep.subr.bf16.mxu1 %v3205_v1  ;;  %3063 = vmatpush3.bf16.msra.mxu0 %v3705_v35 }
0x31c6   :  { %3064 = vmatprep.subr.bf16.mxu0 %v3205_v1  ;;  %3066 = vmatprep.mubr.msk.bf16.mxu0 %vm3227_vm12, %v3205_v1 }
0x31c8   :  { %3037 = vmatpush3.bf16.msra.mxu1 %v3784_v43 }
0x31c9   :  { %3038 = vmatprep.subr.bf16.mxu1 %v3205_v1  ;;  %3065 = vmatpush3.bf16.msra.mxu0 %v3711_v36 }
0x31cc   :  { %3039 = vmatpush3.bf16.msra.mxu1 %v3793_v45 }
0x31cd   :  { %3040 = vmatprep.subr.bf16.mxu1 %v3205_v1 }
0x31d0   :  { %3041 = vmatpush3.bf16.msra.mxu1 %v3800_v47 }
0x31d1   :  { %3042 = vmatprep.subr.bf16.mxu1 %v3205_v1 }
0x31d4   :  { %3043 = vmatpush3.bf16.msra.mxu1 %v3807_v48 }
0x31d5   :  { %3044 = vmatprep.subr.bf16.mxu1 %v3205_v1 }
0x31d8   :  { %3045 = vmatpush3.bf16.msra.mxu1 %v3814_v50 }
0x31d9   :  { %3046 = vmatprep.subr.bf16.mxu1 %v3205_v1 }
0x31dc   :  { %3047 = vmatpush3.bf16.msra.mxu1 %v3821_v51 }
0x31dd   :  { %3048 = vmatprep.subr.bf16.mxu1 %v3205_v1 }
0x31e0   :  { %3049 = vmatpush3.bf16.msra.mxu1 %v3879_v39 }
0x3296   :  { %v2252_v35 = vpop.f32.mrb[56].mxu1  ;;  %v2364_v44 = vpop.f32.mrb[56].mxu0 }
0x3297   :  { %v2253_v36 = vadd.f32 %v3739_v46, %v2252_v35  ;;  %v3032_v43 = vpop.f32.mrb[57].mxu1  ;;  %v3060_v45 = vpop.f32.mrb[57].mxu0  ;;  %v2379_v51 = vadd.f32 %v2364_v44, %v3686_v12 }
0x3298   :  { %v2255_v53 = vpop.f32.mrb[58].mxu1  ;;  %v2367_v47 = vpop.f32.mrb[58].mxu0 }
0x3299   :  { %2573 = vst [vmem:[%s4070_s15 + $0x30] sm:$0xff] %v2253_v36  ;;  %2260 = vmax.xlane.f32.xlu1 %v2253_v36  ;;  %v3033_v48 = vpop.f32.mrb[59].mxu1  ;;  %v3061_v50 = vpop.f32.mrb[59].mxu0 }
0x32aa   :  { %2381 = vrot.lane.b32.xlu1 %v2379_v51, %s3225_s24 }
0x3326   :  { %v2261_v39 = vpop.xlane.xlu1 %2260 }
0x3327   :  { %vm2262_vm12 = vcmp.eq.f32.partialorder %v2253_v36, %v2261_v39 }
0x3328   :  { %v2263_v3 = vsel %vm2262_vm12, %v3375_v23, 128 }
0x3329   :  { %v2265_v46 = vshra.s32 %v2263_v3, 16  ;;  %v2264_v8 = vand.u32 65535, %v2263_v3 }
0x332a   :  { %v2382_v28 = vpop.permute.xlu1 %2381 }
0x332b   :  { %v2267_v0 = vcvt.s32.f32 %v2265_v46  ;;  %v2266_v11 = vcvt.s32.f32 %v2264_v8 }
0x332d   :  { %2268 = vmin.xlane.f32.xlu0 %v2267_v0 }
0x33ba   :  { %v2269_v9 = vpop.xlane.xlu0 %2268 }
0x33bb   :  { %vm2270_vm7 = vcmp.eq.f32.partialorder %v2267_v0, %v2269_v9  ;;  %v2275_v14 = vcvt.f32.s32 %v2269_v9 }
0x33bc   :  { %v2271_v13 = vsel %vm2270_vm7, %v2266_v11, inf }
0x33bd   :  { %2272 = vmin.xlane.f32.xlu0 %v2271_v13  ;;  %v2276_v16 = vshll.u32 %v2275_v14, 16 }
0x344a   :  { %v2273_v15 = vpop.xlane.xlu0 %2272 }
0x344b   :  { %v2274_v17 = vcvt.f32.s32 %v2273_v15 }
0x344d   :  { %v2277_v12 = vadd.s32 %v2276_v16, %v2274_v17 }
0x344f   :  { %vm2278_vm8 = vcmp.eq.s32.totalorder %v3375_v23, %v2277_v12 }
0x3450   :  { %vm2575_vm9 = vmpackc.low %vm2278_vm8, %vm2278_vm8 }
0x3451   :  { %3051 = vmatmul.mubr.msk.bf16.vlgmr.msra.gmra.mrb[60].mxu1 %vm2575_vm9, %v3226_v27 }
0x3524   :  { %v2316_v62 = vpop.f32.mrb[60].mxu1 }
0x3525   :  { %v2329_v4 = vsel %vm2328_vm11, %v2325_v63, %v2316_v62  ;;  %v3052_v5 = vpop.f32.mrb[61].mxu1 }
0x3526   :  { %v2370_v6 = vadd.f32 %v2364_v44, %v2329_v4  ;;  %v2319_v7 = vpop.f32.mrb[62].mxu1  ;;  %v2378_v29 = vadd.f32 %v2329_v4, %v3699_v31  ;;  %v3207_v31 = vld [vmem:[%s4069_s14] ss:$0 sm:$0xff] }
0x3527   :  { %v3053_v20 = vpop.f32.mrb[63].mxu1 }
0x3528   :  { %v2371_v23 = vadd.f32 %v3206_v21, %v2370_v6 }
0x352a   :  { %v2579_v22 = vmul.f32 -1.442695, %v2371_v23 }
0x352c   :  { %3188 = vpow2.f32 %v2579_v22 }
0x3536   :  { %v3189_v27 = vpop.eup %3188 }
0x3537   :  { %v2375_v24 = vadd.f32 1.0, %v3189_v27 }
0x3539   :  { %3190 = vrcp.f32 %v2375_v24 }
0x3543   :  { %v3191_v25 = vpop.eup %3190 }
0x3544   :  { %v2384_v2 = vmul.f32 %v3191_v25, %v2382_v28  ;;  %v2391_v49 = vsub.f32 1.0, %v3191_v25  ;;  %v2397_v38 = vmul.f32 %v3191_v25, %v4009_v57 }
0x3546   :  { %2386 = vrot.lane.b32.xlu0 %v2384_v2, %s3225_s24 }
0x35b8   :  { %v2387_v32 = vpop.permute.xlu0 %2386 }
0x35b9   :  { %v2389_v33 = vadd.f32 %v2387_v32, %v2378_v29 }
0x35bb   :  { %3192 = vtanh.f32 %v2389_v33 }
0x35c5   :  { %v3193_v34 = vpop.eup %3192 }
0x35c6   :  { %2393 = vrot.lane.b32.xlu1 %v3193_v34, %s3228_s16 }
0x3638   :  { %v2394_v37 = vpop.permute.xlu1 %2393 }
0x3639   :  { %v2396_v40 = vmul.f32 %v2394_v37, %v2391_v49 }
0x363b   :  { %v2398_v42 = vadd.f32 %v2397_v38, %v2396_v40 }
0x363d   :  { %v2399_v18 = vpack.c.bf16 %v2398_v42, %v2398_v42 }
0x363f   :  { %2401 = vrot.lane.b32.xlu1 %v2399_v18, %s3228_s16 }
0x36b1   :  { %v2402_v52 = vpop.permute.xlu1 %2401 }
0x36b2   :  { %3067 = vmatmul.mubr.msk.bf16.vlgmr.msra.gmra.mrb[60].mxu0 %vm493_vm10, %v2402_v52 }
0x3785   :  { %v2440_v54 = vpop.f32.mrb[60].mxu0 }
0x3786   :  { %v2441_v26 = vadd.f32 %v3207_v31, %v2440_v54  ;;  %v3068_v55 = vpop.f32.mrb[61].mxu0 }
0x3787   :  { %v2443_v56 = vpop.f32.mrb[62].mxu0 }
0x3788   :  { %2581 = vst [vmem:[%s4070_s15 + $0x38] sm:$0xff] %v2441_v26  ;;  %v3069_v30 = vpop.f32.mrb[63].mxu0 }
0x3789   :  { %2452 = vsyncpa [#allocation5], 1 }

</bundles_post_ra>
